<compile_context>
chip_gen: v6e
topology: v6e:2x2x1
jax: 0.10.0
libtpu: 0.0.40
codegen_flags: <defaults>
</compile_context>

<pallas_src>
import jax
import jax.numpy as jnp
from jax import lax
from jax.experimental import pallas as pl
from jax.experimental.pallas import tpu as pltpu

LANES = 128
SUBLANES = 8


def _round_up(x, m):
    return (x + m - 1) // m * m


def basic_block_kernel(x_ref, w1_ref, w2_ref, b1_ref, b2_ref, o_ref, y1_ref, acc_ref):
    """One (batch, row-tile) grid step of the fused BasicBlock.

    x_ref  : (H+4, Wp, Cp) bf16   whole padded image: 2 zero rows top/bottom (1 conv
                                  halo + 1 guard so every tile window is in bounds),
                                  1 zero col left, Wp-1-W zero cols right, Cp channels
    w1_ref : (9*Cp, Cp)   bf16    conv1 weights, tap-major, bn1 scale folded in
    w2_ref : (9*Cp, Cp)   bf16    conv2 weights, tap-major, bn2 scale folded in
    b1_ref : (1, Cp)      f32     folded bn1 bias
    b2_ref : (1, Cp)      f32     folded bn2 bias
    o_ref  : (TH, W, Cp)  bf16    output row tile
    y1_ref : (TH+2, Wp, Cp) bf16  scratch: relu(bn1(conv1)) for the tile + 1-row halo
    acc_ref: ((TH+2)*W, Cp) f32   scratch: matmul accumulator
    """
    TH, W, Cp = o_ref.shape
    Wp = x_ref.shape[1]
    R1 = TH + 2                        # conv1 rows needed (tile + 1-row halo each side)
    h = pl.program_id(1)
    r0 = h * TH                        # first output row of this tile

    # ---- conv1 + bn1 + relu: 9 accumulating K=Cp dots, no concatenated LHS ----
    # TODO(synk): group taps by dy (K=3*Cp) on v6e/v7x to fill the 256-deep MXU.
    for dy in range(3):
        for dx in range(3):
            t = dy * 3 + dx
            tap = x_ref[pl.ds(r0 + dy, R1), dx:dx + W, :].reshape(R1 * W, Cp)
            prod = jnp.dot(tap, w1_ref[t * Cp:(t + 1) * Cp, :],
                           preferred_element_type=jnp.float32)
            if t == 0:
                acc_ref[...] = prod
            else:
                acc_ref[...] += prod
    y1 = jnp.maximum(acc_ref[...] + b1_ref[0, :], 0.0).reshape(R1, W, Cp)

    # One lane-dense full-width store per row: fold the column halo / right padding
    # into the value instead of issuing strided column zero-stores.
    y1_ref[...] = jnp.concatenate(
        [jnp.zeros((R1, 1, Cp), jnp.float32),
         y1,
         jnp.zeros((R1, Wp - 1 - W, Cp), jnp.float32)], axis=1).astype(jnp.bfloat16)

    # Zero the 1-row y1 halo only where this tile touches the image boundary.
    # Interior tiles recompute the true neighbouring conv1 rows, so no zeroing there.
    @pl.when(h == 0)
    def _():
        y1_ref[0:1, :, :] = jnp.zeros((1, Wp, Cp), jnp.bfloat16)

    @pl.when(h == pl.num_programs(1) - 1)
    def _():
        y1_ref[R1 - 1:R1, :, :] = jnp.zeros((1, Wp, Cp), jnp.bfloat16)

    # ---- conv2 + bn2: 9 accumulating dots over the y1 scratch (all static slices) ----
    M2 = TH * W
    for dy in range(3):
        for dx in range(3):
            t = dy * 3 + dx
            tap = y1_ref[dy:dy + TH, dx:dx + W, :].reshape(M2, Cp)
            prod = jnp.dot(tap, w2_ref[t * Cp:(t + 1) * Cp, :],
                           preferred_element_type=jnp.float32)
            if t == 0:
                acc_ref[0:M2, :] = prod
            else:
                acc_ref[0:M2, :] += prod

    # ---- residual add (f32) + relu, bf16 store ----
    res = x_ref[pl.ds(r0 + 2, TH), 1:1 + W, :].reshape(M2, Cp).astype(jnp.float32)
    out = jnp.maximum(acc_ref[0:M2, :] + b2_ref[0, :] + res, 0.0)
    o_ref[...] = out.reshape(TH, W, Cp).astype(o_ref.dtype)


def _fold_bn(gamma, beta, mean, var, eps):
    scale = gamma / jnp.sqrt(var + eps)
    return scale, beta - mean * scale


def basic_block_forward(x_nchw, params, eps=1e-5, row_tile=8):
    """BasicBlock forward.  x_nchw: (N, C, H, W); stride=1, downsample=None."""
    N, Cin, H, W = x_nchw.shape
    w1, w2 = params["w1"], params["w2"]   # HWIO: (3,3,Cin,planes), (3,3,planes,planes)
    planes = w1.shape[-1]
    assert w1.shape == (3, 3, Cin, planes) and w2.shape == (3, 3, planes, planes)
    assert Cin == planes, "downsample=None + stride=1 requires inplanes == planes"
    # TODO(synk): stride>1 / downsample branch of BasicBlock not implemented (spec uses None).

    Cp = _round_up(max(planes, LANES), LANES)   # lane-dense channel padding
    Wp = _round_up(W + 2, SUBLANES)             # sublane-aligned padded width
    # Spatial row tile: per-step working set scales with TH*W*Cp (v7x: 64 MiB VMEM).
    # Larger row_tile amortizes grid-step overhead on v6e/v5e (128 MiB VMEM).
    TH = row_tile if (row_tile < H and H % row_tile == 0) else H

    s1, b1 = _fold_bn(params["g1"], params["be1"], params["m1"], params["v1"], eps)
    s2, b2 = _fold_bn(params["g2"], params["be2"], params["m2"], params["v2"], eps)

    def prep_w(w, scale):
        w = w * scale[None, None, None, :]      # fold BN scale into conv weights
        kh, kw, ci, co = w.shape
        wp = jnp.zeros((kh, kw, Cp, Cp), jnp.float32).at[:, :, :ci, :co].set(w)
        return wp.reshape(kh * kw * Cp, Cp).astype(jnp.bfloat16)   # tap-major (9*Cp, Cp)
    # TODO(synk): for tiny channel counts (9*Cin <= 128) pack all 9 taps into one
    # 128-lane K group instead of padding every tap to Cp (padding-dominated regime).

    w1k, w2k = prep_w(w1, s1), prep_w(w2, s2)
    b1k = jnp.zeros((1, Cp), jnp.float32).at[0, :planes].set(b1)
    b2k = jnp.zeros((1, Cp), jnp.float32).at[0, :planes].set(b2)

    # NCHW -> NHWC bf16 (halves HBM traffic vs f32); pad rows by 2 (conv halo + tile
    # guard), cols to Wp (1 halo col left, remainder right), channels to Cp.
    x = jnp.transpose(x_nchw, (0, 2, 3, 1)).astype(jnp.bfloat16)
    x = jnp.pad(x, ((0, 0), (2, 2), (1, Wp - 1 - W), (0, Cp - Cin)))

    out_nhwc = pl.pallas_call(
        basic_block_kernel,
        out_shape=jax.ShapeDtypeStruct((N, H, W, Cp), jnp.bfloat16),
        grid=(N, H // TH),
        in_specs=[
            # Whole padded image; its block index only changes with n, so it is DMA'd
            # once per batch element and stays VMEM-resident across the row tiles.
            pl.BlockSpec((None, H + 4, Wp, Cp), lambda n, h: (n, 0, 0, 0)),
            # Grid-invariant weights / biases (constant index map -> fetched once).
            pl.BlockSpec((9 * Cp, Cp), lambda n, h: (0, 0)),
            pl.BlockSpec((9 * Cp, Cp), lambda n, h: (0, 0)),
            pl.BlockSpec((1, Cp), lambda n, h: (0, 0)),
            pl.BlockSpec((1, Cp), lambda n, h: (0, 0)),
        ],
        out_specs=pl.BlockSpec((None, TH, W, Cp), lambda n, h: (n, h, 0, 0)),
        scratch_shapes=[
            pltpu.VMEM((TH + 2, Wp, Cp), jnp.bfloat16),    # y1 tile (+ 1-row halo)
            pltpu.VMEM(((TH + 2) * W, Cp), jnp.float32),   # f32 matmul accumulator
        ],
        compiler_params=pltpu.CompilerParams(
            dimension_semantics=("parallel", "parallel"),
            # Ample for this working set (<2 MiB); raise together with row_tile when
            # using big spatial tiles on v6e/v5e.
            vmem_limit_bytes=32 * 1024 * 1024),
    )(x, w1k, w2k, b1k, b2k)

    # TODO(synk): when chaining fused blocks, keep the padded NHWC bf16 layout instead
    # of slicing + transposing back to NCHW after every block.
    return jnp.transpose(out_nhwc[..., :planes].astype(x_nchw.dtype), (0, 3, 1, 2))


def basic_block_reference(x_nchw, params, eps=1e-5):
    """Pure-JAX f32 reference (NCHW convs) for the correctness check."""
    def conv(x, w_hwio):
        return lax.conv_general_dilated(
            x, jnp.transpose(w_hwio, (3, 2, 0, 1)), (1, 1), "SAME",
            dimension_numbers=("NCHW", "OIHW", "NCHW"))

    def bn(x, g, b, m, v):
        s = g / jnp.sqrt(v + eps)
        return x * s[None, :, None, None] + (b - m * s)[None, :, None, None]

    y = jax.nn.relu(bn(conv(x_nchw, params["w1"]),
                       params["g1"], params["be1"], params["m1"], params["v1"]))
    y = bn(conv(y, params["w2"]),
           params["g2"], params["be2"], params["m2"], params["v2"])
    return jax.nn.relu(y + x_nchw)


if __name__ == "__main__":
    # BasicBlock(inplanes=4, planes=4), expansion=1, stride=1, downsample=None.
    N, H, W = 2, 16, 16
    inplanes = planes = 4

    key = jax.random.PRNGKey(0)
    keys = jax.random.split(key, 12)
    params = {
        "w1": 0.2 * jax.random.normal(keys[0], (3, 3, inplanes, planes), jnp.float32),
        "w2": 0.2 * jax.random.normal(keys[1], (3, 3, planes, planes), jnp.float32),
        "g1": jax.random.uniform(keys[2], (planes,), jnp.float32, 0.5, 1.5),
        "be1": 0.1 * jax.random.normal(keys[3], (planes,), jnp.float32),
        "m1": 0.1 * jax.random.normal(keys[4], (planes,), jnp.float32),
        "v1": jax.random.uniform(keys[5], (planes,), jnp.float32, 0.5, 1.5),
        "g2": jax.random.uniform(keys[6], (planes,), jnp.float32, 0.5, 1.5),
        "be2": 0.1 * jax.random.normal(keys[7], (planes,), jnp.float32),
        "m2": 0.1 * jax.random.normal(keys[8], (planes,), jnp.float32),
        "v2": jax.random.uniform(keys[9], (planes,), jnp.float32, 0.5, 1.5),
    }
    x = jax.random.normal(keys[10], (N, inplanes, H, W), jnp.float32)

    out = jax.block_until_ready(basic_block_forward(x, params))
    ref = jax.block_until_ready(basic_block_reference(x, params))

    assert out.shape == (N, planes, H, W), out.shape
    err = jnp.max(jnp.abs(out - ref))
    # bf16 I/O + bf16 MXU operands => ~1e-2-level deviation from the f32 reference.
    assert jnp.allclose(out, ref, rtol=5e-2, atol=5e-2), f"max abs err {err}"
    print("KERNEL_OK")
</pallas_src>

<mosaic_0001>
module attributes {stable_mosaic.version = 11 : i64} {
  func.func @basic_block_kernel(%arg0: i32, %arg1: i32, %arg2: memref<1x20x24x128xbf16, #tpu.memory_space<vmem>>, %arg3: memref<1152x128xbf16, #tpu.memory_space<vmem>>, %arg4: memref<1152x128xbf16, #tpu.memory_space<vmem>>, %arg5: memref<1x128xf32, #tpu.memory_space<vmem>>, %arg6: memref<1x128xf32, #tpu.memory_space<vmem>>, %arg7: memref<1x8x16x128xbf16, #tpu.memory_space<vmem>>, %arg8: memref<10x24x128xbf16, #tpu.memory_space<vmem>>, %arg9: memref<160x128xf32, #tpu.memory_space<vmem>>) attributes {dimension_semantics = [#tpu.dimension_semantics<parallel>, #tpu.dimension_semantics<parallel>], iteration_bounds = array<i64: 2, 2>, scalar_prefetch = 0 : i64, scratch_operands = 2 : i64, tpu.core_type = #tpu.core_type<tc>, window_params = [{transform_indices = @transform_0, window_bounds = array<i64: 1, 20, 24, 128>}, {pipeline_mode = #tpu.pipeline_mode<synchronous>, transform_indices = @transform_1, window_bounds = array<i64: 1152, 128>}, {pipeline_mode = #tpu.pipeline_mode<synchronous>, transform_indices = @transform_2, window_bounds = array<i64: 1152, 128>}, {pipeline_mode = #tpu.pipeline_mode<synchronous>, transform_indices = @transform_3, window_bounds = array<i64: 1, 128>}, {pipeline_mode = #tpu.pipeline_mode<synchronous>, transform_indices = @transform_4, window_bounds = array<i64: 1, 128>}, {transform_indices = @transform_5, window_bounds = array<i64: 1, 8, 16, 128>}]} {
    %c8_i32 = arith.constant 8 : i32
    %0 = arith.muli %arg1, %c8_i32 : i32
    %c0_i32 = arith.constant 0 : i32
    %1 = arith.addi %0, %c0_i32 : i32
    %c0 = arith.constant 0 : index
    %2 = arith.index_cast %1 : i32 to index
    %c0_0 = arith.constant 0 : index
    %c0_1 = arith.constant 0 : index
    %3 = vector.load %arg2[%c0, %2, %c0_0, %c0_1] : memref<1x20x24x128xbf16, #tpu.memory_space<vmem>>, vector<1x10x16x128xbf16>
    %4 = vector.shape_cast %3 : vector<1x10x16x128xbf16> to vector<10x16x128xbf16>
    %5 = vector.shape_cast %4 : vector<10x16x128xbf16> to vector<160x128xbf16>
    %c0_2 = arith.constant 0 : index
    %c0_3 = arith.constant 0 : index
    %6 = vector.load %arg3[%c0_2, %c0_3] : memref<1152x128xbf16, #tpu.memory_space<vmem>>, vector<128x128xbf16>
    %cst = arith.constant dense<0.000000e+00> : vector<160x128xf32>
    %7 = tpu.matmul %5, %6, %cst {dimension_numbers = #tpu.dot_dimension_numbers<[1], [0], [0], [1], [0, 0, 1, 1], [], []>} : vector<160x128xbf16>, vector<128x128xbf16>, vector<160x128xf32> -> vector<160x128xf32>
    %c0_4 = arith.constant 0 : index
    %c0_5 = arith.constant 0 : index
    %8 = vector.load %arg9[%c0_4, %c0_5] : memref<160x128xf32, #tpu.memory_space<vmem>>, vector<160x128xf32>
    tpu.vector_store %arg9[%c0_4, %c0_5], %7 {strides = array<i32>} : memref<160x128xf32, #tpu.memory_space<vmem>>, vector<160x128xf32>,
    %c0_i32_6 = arith.constant 0 : i32
    %9 = arith.addi %0, %c0_i32_6 : i32
    %c0_7 = arith.constant 0 : index
    %10 = arith.index_cast %9 : i32 to index
    %c1 = arith.constant 1 : index
    %c0_8 = arith.constant 0 : index
    %11 = vector.load %arg2[%c0_7, %10, %c1, %c0_8] : memref<1x20x24x128xbf16, #tpu.memory_space<vmem>>, vector<1x10x16x128xbf16>
    %12 = vector.shape_cast %11 : vector<1x10x16x128xbf16> to vector<10x16x128xbf16>
    %13 = vector.shape_cast %12 : vector<10x16x128xbf16> to vector<160x128xbf16>
    %c128 = arith.constant 128 : index
    %c0_9 = arith.constant 0 : index
    %14 = vector.load %arg3[%c128, %c0_9] : memref<1152x128xbf16, #tpu.memory_space<vmem>>, vector<128x128xbf16>
    %cst_10 = arith.constant dense<0.000000e+00> : vector<160x128xf32>
    %15 = tpu.matmul %13, %14, %cst_10 {dimension_numbers = #tpu.dot_dimension_numbers<[1], [0], [0], [1], [0, 0, 1, 1], [], []>} : vector<160x128xbf16>, vector<128x128xbf16>, vector<160x128xf32> -> vector<160x128xf32>
    %c0_11 = arith.constant 0 : index
    %c0_12 = arith.constant 0 : index
    %16 = vector.load %arg9[%c0_11, %c0_12] : memref<160x128xf32, #tpu.memory_space<vmem>>, vector<160x128xf32>
    %17 = arith.addf %16, %15 : vector<160x128xf32>
    %c0_13 = arith.constant 0 : index
    %c0_14 = arith.constant 0 : index
    %18 = vector.load %arg9[%c0_13, %c0_14] : memref<160x128xf32, #tpu.memory_space<vmem>>, vector<160x128xf32>
    tpu.vector_store %arg9[%c0_13, %c0_14], %17 {strides = array<i32>} : memref<160x128xf32, #tpu.memory_space<vmem>>, vector<160x128xf32>,
    %c0_i32_15 = arith.constant 0 : i32
    %19 = arith.addi %0, %c0_i32_15 : i32
    %c0_16 = arith.constant 0 : index
    %20 = arith.index_cast %19 : i32 to index
    %c2 = arith.constant 2 : index
    %c0_17 = arith.constant 0 : index
    %21 = vector.load %arg2[%c0_16, %20, %c2, %c0_17] : memref<1x20x24x128xbf16, #tpu.memory_space<vmem>>, vector<1x10x16x128xbf16>
    %22 = vector.shape_cast %21 : vector<1x10x16x128xbf16> to vector<10x16x128xbf16>
    %23 = vector.shape_cast %22 : vector<10x16x128xbf16> to vector<160x128xbf16>
    %c256 = arith.constant 256 : index
    %c0_18 = arith.constant 0 : index
    %24 = vector.load %arg3[%c256, %c0_18] : memref<1152x128xbf16, #tpu.memory_space<vmem>>, vector<128x128xbf16>
    %cst_19 = arith.constant dense<0.000000e+00> : vector<160x128xf32>
    %25 = tpu.matmul %23, %24, %cst_19 {dimension_numbers = #tpu.dot_dimension_numbers<[1], [0], [0], [1], [0, 0, 1, 1], [], []>} : vector<160x128xbf16>, vector<128x128xbf16>, vector<160x128xf32> -> vector<160x128xf32>
    %c0_20 = arith.constant 0 : index
    %c0_21 = arith.constant 0 : index
    %26 = vector.load %arg9[%c0_20, %c0_21] : memref<160x128xf32, #tpu.memory_space<vmem>>, vector<160x128xf32>
    %27 = arith.addf %26, %25 : vector<160x128xf32>
    %c0_22 = arith.constant 0 : index
    %c0_23 = arith.constant 0 : index
    %28 = vector.load %arg9[%c0_22, %c0_23] : memref<160x128xf32, #tpu.memory_space<vmem>>, vector<160x128xf32>
    tpu.vector_store %arg9[%c0_22, %c0_23], %27 {strides = array<i32>} : memref<160x128xf32, #tpu.memory_space<vmem>>, vector<160x128xf32>,
    %c1_i32 = arith.constant 1 : i32
    %29 = arith.addi %0, %c1_i32 : i32
    %c0_24 = arith.constant 0 : index
    %30 = arith.index_cast %29 : i32 to index
    %c0_25 = arith.constant 0 : index
    %c0_26 = arith.constant 0 : index
    %31 = vector.load %arg2[%c0_24, %30, %c0_25, %c0_26] : memref<1x20x24x128xbf16, #tpu.memory_space<vmem>>, vector<1x10x16x128xbf16>
    %32 = vector.shape_cast %31 : vector<1x10x16x128xbf16> to vector<10x16x128xbf16>
    %33 = vector.shape_cast %32 : vector<10x16x128xbf16> to vector<160x128xbf16>
    %c384 = arith.constant 384 : index
    %c0_27 = arith.constant 0 : index
    %34 = vector.load %arg3[%c384, %c0_27] : memref<1152x128xbf16, #tpu.memory_space<vmem>>, vector<128x128xbf16>
    %cst_28 = arith.constant dense<0.000000e+00> : vector<160x128xf32>
    %35 = tpu.matmul %33, %34, %cst_28 {dimension_numbers = #tpu.dot_dimension_numbers<[1], [0], [0], [1], [0, 0, 1, 1], [], []>} : vector<160x128xbf16>, vector<128x128xbf16>, vector<160x128xf32> -> vector<160x128xf32>
    %c0_29 = arith.constant 0 : index
    %c0_30 = arith.constant 0 : index
    %36 = vector.load %arg9[%c0_29, %c0_30] : memref<160x128xf32, #tpu.memory_space<vmem>>, vector<160x128xf32>
    %37 = arith.addf %36, %35 : vector<160x128xf32>
    %c0_31 = arith.constant 0 : index
    %c0_32 = arith.constant 0 : index
    %38 = vector.load %arg9[%c0_31, %c0_32] : memref<160x128xf32, #tpu.memory_space<vmem>>, vector<160x128xf32>
    tpu.vector_store %arg9[%c0_31, %c0_32], %37 {strides = array<i32>} : memref<160x128xf32, #tpu.memory_space<vmem>>, vector<160x128xf32>,
    %c1_i32_33 = arith.constant 1 : i32
    %39 = arith.addi %0, %c1_i32_33 : i32
    %c0_34 = arith.constant 0 : index
    %40 = arith.index_cast %39 : i32 to index
    %c1_35 = arith.constant 1 : index
    %c0_36 = arith.constant 0 : index
    %41 = vector.load %arg2[%c0_34, %40, %c1_35, %c0_36] : memref<1x20x24x128xbf16, #tpu.memory_space<vmem>>, vector<1x10x16x128xbf16>
    %42 = vector.shape_cast %41 : vector<1x10x16x128xbf16> to vector<10x16x128xbf16>
    %43 = vector.shape_cast %42 : vector<10x16x128xbf16> to vector<160x128xbf16>
    %c512 = arith.constant 512 : index
    %c0_37 = arith.constant 0 : index
    %44 = vector.load %arg3[%c512, %c0_37] : memref<1152x128xbf16, #tpu.memory_space<vmem>>, vector<128x128xbf16>
    %cst_38 = arith.constant dense<0.000000e+00> : vector<160x128xf32>
    %45 = tpu.matmul %43, %44, %cst_38 {dimension_numbers = #tpu.dot_dimension_numbers<[1], [0], [0], [1], [0, 0, 1, 1], [], []>} : vector<160x128xbf16>, vector<128x128xbf16>, vector<160x128xf32> -> vector<160x128xf32>
    %c0_39 = arith.constant 0 : index
    %c0_40 = arith.constant 0 : index
    %46 = vector.load %arg9[%c0_39, %c0_40] : memref<160x128xf32, #tpu.memory_space<vmem>>, vector<160x128xf32>
    %47 = arith.addf %46, %45 : vector<160x128xf32>
    %c0_41 = arith.constant 0 : index
    %c0_42 = arith.constant 0 : index
    %48 = vector.load %arg9[%c0_41, %c0_42] : memref<160x128xf32, #tpu.memory_space<vmem>>, vector<160x128xf32>
    tpu.vector_store %arg9[%c0_41, %c0_42], %47 {strides = array<i32>} : memref<160x128xf32, #tpu.memory_space<vmem>>, vector<160x128xf32>,
    %c1_i32_43 = arith.constant 1 : i32
    %49 = arith.addi %0, %c1_i32_43 : i32
    %c0_44 = arith.constant 0 : index
    %50 = arith.index_cast %49 : i32 to index
    %c2_45 = arith.constant 2 : index
    %c0_46 = arith.constant 0 : index
    %51 = vector.load %arg2[%c0_44, %50, %c2_45, %c0_46] : memref<1x20x24x128xbf16, #tpu.memory_space<vmem>>, vector<1x10x16x128xbf16>
    %52 = vector.shape_cast %51 : vector<1x10x16x128xbf16> to vector<10x16x128xbf16>
    %53 = vector.shape_cast %52 : vector<10x16x128xbf16> to vector<160x128xbf16>
    %c640 = arith.constant 640 : index
    %c0_47 = arith.constant 0 : index
    %54 = vector.load %arg3[%c640, %c0_47] : memref<1152x128xbf16, #tpu.memory_space<vmem>>, vector<128x128xbf16>
    %cst_48 = arith.constant dense<0.000000e+00> : vector<160x128xf32>
    %55 = tpu.matmul %53, %54, %cst_48 {dimension_numbers = #tpu.dot_dimension_numbers<[1], [0], [0], [1], [0, 0, 1, 1], [], []>} : vector<160x128xbf16>, vector<128x128xbf16>, vector<160x128xf32> -> vector<160x128xf32>
    %c0_49 = arith.constant 0 : index
    %c0_50 = arith.constant 0 : index
    %56 = vector.load %arg9[%c0_49, %c0_50] : memref<160x128xf32, #tpu.memory_space<vmem>>, vector<160x128xf32>
    %57 = arith.addf %56, %55 : vector<160x128xf32>
    %c0_51 = arith.constant 0 : index
    %c0_52 = arith.constant 0 : index
    %58 = vector.load %arg9[%c0_51, %c0_52] : memref<160x128xf32, #tpu.memory_space<vmem>>, vector<160x128xf32>
    tpu.vector_store %arg9[%c0_51, %c0_52], %57 {strides = array<i32>} : memref<160x128xf32, #tpu.memory_space<vmem>>, vector<160x128xf32>,
    %c2_i32 = arith.constant 2 : i32
    %59 = arith.addi %0, %c2_i32 : i32
    %c0_53 = arith.constant 0 : index
    %60 = arith.index_cast %59 : i32 to index
    %c0_54 = arith.constant 0 : index
    %c0_55 = arith.constant 0 : index
    %61 = vector.load %arg2[%c0_53, %60, %c0_54, %c0_55] : memref<1x20x24x128xbf16, #tpu.memory_space<vmem>>, vector<1x10x16x128xbf16>
    %62 = vector.shape_cast %61 : vector<1x10x16x128xbf16> to vector<10x16x128xbf16>
    %63 = vector.shape_cast %62 : vector<10x16x128xbf16> to vector<160x128xbf16>
    %c768 = arith.constant 768 : index
    %c0_56 = arith.constant 0 : index
    %64 = vector.load %arg3[%c768, %c0_56] : memref<1152x128xbf16, #tpu.memory_space<vmem>>, vector<128x128xbf16>
    %cst_57 = arith.constant dense<0.000000e+00> : vector<160x128xf32>
    %65 = tpu.matmul %63, %64, %cst_57 {dimension_numbers = #tpu.dot_dimension_numbers<[1], [0], [0], [1], [0, 0, 1, 1], [], []>} : vector<160x128xbf16>, vector<128x128xbf16>, vector<160x128xf32> -> vector<160x128xf32>
    %c0_58 = arith.constant 0 : index
    %c0_59 = arith.constant 0 : index
    %66 = vector.load %arg9[%c0_58, %c0_59] : memref<160x128xf32, #tpu.memory_space<vmem>>, vector<160x128xf32>
    %67 = arith.addf %66, %65 : vector<160x128xf32>
    %c0_60 = arith.constant 0 : index
    %c0_61 = arith.constant 0 : index
    %68 = vector.load %arg9[%c0_60, %c0_61] : memref<160x128xf32, #tpu.memory_space<vmem>>, vector<160x128xf32>
    tpu.vector_store %arg9[%c0_60, %c0_61], %67 {strides = array<i32>} : memref<160x128xf32, #tpu.memory_space<vmem>>, vector<160x128xf32>,
    %c2_i32_62 = arith.constant 2 : i32
    %69 = arith.addi %0, %c2_i32_62 : i32
    %c0_63 = arith.constant 0 : index
    %70 = arith.index_cast %69 : i32 to index
    %c1_64 = arith.constant 1 : index
    %c0_65 = arith.constant 0 : index
    %71 = vector.load %arg2[%c0_63, %70, %c1_64, %c0_65] : memref<1x20x24x128xbf16, #tpu.memory_space<vmem>>, vector<1x10x16x128xbf16>
    %72 = vector.shape_cast %71 : vector<1x10x16x128xbf16> to vector<10x16x128xbf16>
    %73 = vector.shape_cast %72 : vector<10x16x128xbf16> to vector<160x128xbf16>
    %c896 = arith.constant 896 : index
    %c0_66 = arith.constant 0 : index
    %74 = vector.load %arg3[%c896, %c0_66] : memref<1152x128xbf16, #tpu.memory_space<vmem>>, vector<128x128xbf16>
    %cst_67 = arith.constant dense<0.000000e+00> : vector<160x128xf32>
    %75 = tpu.matmul %73, %74, %cst_67 {dimension_numbers = #tpu.dot_dimension_numbers<[1], [0], [0], [1], [0, 0, 1, 1], [], []>} : vector<160x128xbf16>, vector<128x128xbf16>, vector<160x128xf32> -> vector<160x128xf32>
    %c0_68 = arith.constant 0 : index
    %c0_69 = arith.constant 0 : index
    %76 = vector.load %arg9[%c0_68, %c0_69] : memref<160x128xf32, #tpu.memory_space<vmem>>, vector<160x128xf32>
    %77 = arith.addf %76, %75 : vector<160x128xf32>
    %c0_70 = arith.constant 0 : index
    %c0_71 = arith.constant 0 : index
    %78 = vector.load %arg9[%c0_70, %c0_71] : memref<160x128xf32, #tpu.memory_space<vmem>>, vector<160x128xf32>
    tpu.vector_store %arg9[%c0_70, %c0_71], %77 {strides = array<i32>} : memref<160x128xf32, #tpu.memory_space<vmem>>, vector<160x128xf32>,
    %c2_i32_72 = arith.constant 2 : i32
    %79 = arith.addi %0, %c2_i32_72 : i32
    %c0_73 = arith.constant 0 : index
    %80 = arith.index_cast %79 : i32 to index
    %c2_74 = arith.constant 2 : index
    %c0_75 = arith.constant 0 : index
    %81 = vector.load %arg2[%c0_73, %80, %c2_74, %c0_75] : memref<1x20x24x128xbf16, #tpu.memory_space<vmem>>, vector<1x10x16x128xbf16>
    %82 = vector.shape_cast %81 : vector<1x10x16x128xbf16> to vector<10x16x128xbf16>
    %83 = vector.shape_cast %82 : vector<10x16x128xbf16> to vector<160x128xbf16>
    %c1024 = arith.constant 1024 : index
    %c0_76 = arith.constant 0 : index
    %84 = vector.load %arg3[%c1024, %c0_76] : memref<1152x128xbf16, #tpu.memory_space<vmem>>, vector<128x128xbf16>
    %cst_77 = arith.constant dense<0.000000e+00> : vector<160x128xf32>
    %85 = tpu.matmul %83, %84, %cst_77 {dimension_numbers = #tpu.dot_dimension_numbers<[1], [0], [0], [1], [0, 0, 1, 1], [], []>} : vector<160x128xbf16>, vector<128x128xbf16>, vector<160x128xf32> -> vector<160x128xf32>
    %c0_78 = arith.constant 0 : index
    %c0_79 = arith.constant 0 : index
    %86 = vector.load %arg9[%c0_78, %c0_79] : memref<160x128xf32, #tpu.memory_space<vmem>>, vector<160x128xf32>
    %87 = arith.addf %86, %85 : vector<160x128xf32>
    %c0_80 = arith.constant 0 : index
    %c0_81 = arith.constant 0 : index
    %88 = vector.load %arg9[%c0_80, %c0_81] : memref<160x128xf32, #tpu.memory_space<vmem>>, vector<160x128xf32>
    tpu.vector_store %arg9[%c0_80, %c0_81], %87 {strides = array<i32>} : memref<160x128xf32, #tpu.memory_space<vmem>>, vector<160x128xf32>,
    %c0_82 = arith.constant 0 : index
    %c0_83 = arith.constant 0 : index
    %89 = vector.load %arg9[%c0_82, %c0_83] : memref<160x128xf32, #tpu.memory_space<vmem>>, vector<160x128xf32>
    %c0_84 = arith.constant 0 : index
    %c0_85 = arith.constant 0 : index
    %90 = vector.load %arg5[%c0_84, %c0_85] : memref<1x128xf32, #tpu.memory_space<vmem>>, vector<1x128xf32>
    %91 = vector.shape_cast %90 : vector<1x128xf32> to vector<128xf32>
    %92 = vector.shape_cast %91 : vector<128xf32> to vector<1x128xf32>
    %93 = vector.broadcast %92 : vector<1x128xf32> to vector<160x128xf32>
    %94 = arith.addf %89, %93 : vector<160x128xf32>
    %cst_86 = arith.constant 0.000000e+00 : f32
    %95 = vector.broadcast %cst_86 : f32 to vector<160x128xf32>
    %96 = arith.maximumf %94, %95 : vector<160x128xf32>
    %97 = vector.shape_cast %96 : vector<160x128xf32> to vector<10x16x128xf32>
    %cst_87 = arith.constant 0.000000e+00 : f32
    %98 = vector.broadcast %cst_87 : f32 to vector<10x1x128xf32>
    %cst_88 = arith.constant 0.000000e+00 : f32
    %99 = vector.broadcast %cst_88 : f32 to vector<10x7x128xf32>
    %100 = tpu.concatenate %98, %97, %99 in 1 : vector<10x1x128xf32>, vector<10x16x128xf32>, vector<10x7x128xf32> -> vector<10x24x128xf32>
    %101 = arith.truncf %100 : vector<10x24x128xf32> to vector<10x24x128xbf16>
    %c0_89 = arith.constant 0 : index
    %c0_90 = arith.constant 0 : index
    %c0_91 = arith.constant 0 : index
    %102 = vector.load %arg8[%c0_89, %c0_90, %c0_91] : memref<10x24x128xbf16, #tpu.memory_space<vmem>>, vector<10x24x128xbf16>
    tpu.vector_store %arg8[%c0_89, %c0_90, %c0_91], %101 {strides = array<i32>} : memref<10x24x128xbf16, #tpu.memory_space<vmem>>, vector<10x24x128xbf16>,
    %c0_i32_92 = arith.constant 0 : i32
    %103 = arith.cmpi eq, %arg1, %c0_i32_92 : i32
    %104 = arith.extui %103 : i1 to i32
    %c0_i32_93 = arith.constant 0 : i32
    %105 = arith.cmpi ne, %104, %c0_i32_93 : i32
    scf.if %105 {
      %cst_197 = arith.constant 0.000000e+00 : bf16
      %190 = vector.broadcast %cst_197 : bf16 to vector<1x24x128xbf16>
      %c0_198 = arith.constant 0 : index
      %c0_199 = arith.constant 0 : index
      %c0_200 = arith.constant 0 : index
      %191 = vector.load %arg8[%c0_198, %c0_199, %c0_200] : memref<10x24x128xbf16, #tpu.memory_space<vmem>>, vector<1x24x128xbf16>
      tpu.vector_store %arg8[%c0_198, %c0_199, %c0_200], %190 {strides = array<i32>} : memref<10x24x128xbf16, #tpu.memory_space<vmem>>, vector<1x24x128xbf16>,
    } else {
    }
    %c1_i32_94 = arith.constant 1 : i32
    %106 = arith.cmpi eq, %arg1, %c1_i32_94 : i32
    %107 = arith.extui %106 : i1 to i32
    %c0_i32_95 = arith.constant 0 : i32
    %108 = arith.cmpi ne, %107, %c0_i32_95 : i32
    scf.if %108 {
      %cst_197 = arith.constant 0.000000e+00 : bf16
      %190 = vector.broadcast %cst_197 : bf16 to vector<1x24x128xbf16>
      %c9 = arith.constant 9 : index
      %c0_198 = arith.constant 0 : index
      %c0_199 = arith.constant 0 : index
      %191 = vector.load %arg8[%c9, %c0_198, %c0_199] : memref<10x24x128xbf16, #tpu.memory_space<vmem>>, vector<1x24x128xbf16>
      tpu.vector_store %arg8[%c9, %c0_198, %c0_199], %190 {strides = array<i32>} : memref<10x24x128xbf16, #tpu.memory_space<vmem>>, vector<1x24x128xbf16>,
    } else {
    }
    %c0_96 = arith.constant 0 : index
    %c0_97 = arith.constant 0 : index
    %c0_98 = arith.constant 0 : index
    %109 = vector.load %arg8[%c0_96, %c0_97, %c0_98] : memref<10x24x128xbf16, #tpu.memory_space<vmem>>, vector<8x16x128xbf16>
    %110 = vector.shape_cast %109 : vector<8x16x128xbf16> to vector<128x128xbf16>
    %c0_99 = arith.constant 0 : index
    %c0_100 = arith.constant 0 : index
    %111 = vector.load %arg4[%c0_99, %c0_100] : memref<1152x128xbf16, #tpu.memory_space<vmem>>, vector<128x128xbf16>
    %cst_101 = arith.constant dense<0.000000e+00> : vector<128x128xf32>
    %112 = tpu.matmul %110, %111, %cst_101 {dimension_numbers = #tpu.dot_dimension_numbers<[1], [0], [0], [1], [0, 0, 1, 1], [], []>} : vector<128x128xbf16>, vector<128x128xbf16>, vector<128x128xf32> -> vector<128x128xf32>
    %c0_102 = arith.constant 0 : index
    %c0_103 = arith.constant 0 : index
    %113 = vector.load %arg9[%c0_102, %c0_103] : memref<160x128xf32, #tpu.memory_space<vmem>>, vector<128x128xf32>
    tpu.vector_store %arg9[%c0_102, %c0_103], %112 {strides = array<i32>} : memref<160x128xf32, #tpu.memory_space<vmem>>, vector<128x128xf32>,
    %c0_104 = arith.constant 0 : index
    %c1_105 = arith.constant 1 : index
    %c0_106 = arith.constant 0 : index
    %114 = vector.load %arg8[%c0_104, %c1_105, %c0_106] : memref<10x24x128xbf16, #tpu.memory_space<vmem>>, vector<8x16x128xbf16>
    %115 = vector.shape_cast %114 : vector<8x16x128xbf16> to vector<128x128xbf16>
    %c128_107 = arith.constant 128 : index
    %c0_108 = arith.constant 0 : index
    %116 = vector.load %arg4[%c128_107, %c0_108] : memref<1152x128xbf16, #tpu.memory_space<vmem>>, vector<128x128xbf16>
    %cst_109 = arith.constant dense<0.000000e+00> : vector<128x128xf32>
    %117 = tpu.matmul %115, %116, %cst_109 {dimension_numbers = #tpu.dot_dimension_numbers<[1], [0], [0], [1], [0, 0, 1, 1], [], []>} : vector<128x128xbf16>, vector<128x128xbf16>, vector<128x128xf32> -> vector<128x128xf32>
    %c0_110 = arith.constant 0 : index
    %c0_111 = arith.constant 0 : index
    %118 = vector.load %arg9[%c0_110, %c0_111] : memref<160x128xf32, #tpu.memory_space<vmem>>, vector<128x128xf32>
    %119 = arith.addf %118, %117 : vector<128x128xf32>
    %c0_112 = arith.constant 0 : index
    %c0_113 = arith.constant 0 : index
    %120 = vector.load %arg9[%c0_112, %c0_113] : memref<160x128xf32, #tpu.memory_space<vmem>>, vector<128x128xf32>
    tpu.vector_store %arg9[%c0_112, %c0_113], %119 {strides = array<i32>} : memref<160x128xf32, #tpu.memory_space<vmem>>, vector<128x128xf32>,
    %c0_114 = arith.constant 0 : index
    %c2_115 = arith.constant 2 : index
    %c0_116 = arith.constant 0 : index
    %121 = vector.load %arg8[%c0_114, %c2_115, %c0_116] : memref<10x24x128xbf16, #tpu.memory_space<vmem>>, vector<8x16x128xbf16>
    %122 = vector.shape_cast %121 : vector<8x16x128xbf16> to vector<128x128xbf16>
    %c256_117 = arith.constant 256 : index
    %c0_118 = arith.constant 0 : index
    %123 = vector.load %arg4[%c256_117, %c0_118] : memref<1152x128xbf16, #tpu.memory_space<vmem>>, vector<128x128xbf16>
    %cst_119 = arith.constant dense<0.000000e+00> : vector<128x128xf32>
    %124 = tpu.matmul %122, %123, %cst_119 {dimension_numbers = #tpu.dot_dimension_numbers<[1], [0], [0], [1], [0, 0, 1, 1], [], []>} : vector<128x128xbf16>, vector<128x128xbf16>, vector<128x128xf32> -> vector<128x128xf32>
    %c0_120 = arith.constant 0 : index
    %c0_121 = arith.constant 0 : index
    %125 = vector.load %arg9[%c0_120, %c0_121] : memref<160x128xf32, #tpu.memory_space<vmem>>, vector<128x128xf32>
    %126 = arith.addf %125, %124 : vector<128x128xf32>
    %c0_122 = arith.constant 0 : index
    %c0_123 = arith.constant 0 : index
    %127 = vector.load %arg9[%c0_122, %c0_123] : memref<160x128xf32, #tpu.memory_space<vmem>>, vector<128x128xf32>
    tpu.vector_store %arg9[%c0_122, %c0_123], %126 {strides = array<i32>} : memref<160x128xf32, #tpu.memory_space<vmem>>, vector<128x128xf32>,
    %c1_124 = arith.constant 1 : index
    %c0_125 = arith.constant 0 : index
    %c0_126 = arith.constant 0 : index
    %128 = vector.load %arg8[%c1_124, %c0_125, %c0_126] : memref<10x24x128xbf16, #tpu.memory_space<vmem>>, vector<8x16x128xbf16>
    %129 = vector.shape_cast %128 : vector<8x16x128xbf16> to vector<128x128xbf16>
    %c384_127 = arith.constant 384 : index
    %c0_128 = arith.constant 0 : index
    %130 = vector.load %arg4[%c384_127, %c0_128] : memref<1152x128xbf16, #tpu.memory_space<vmem>>, vector<128x128xbf16>
    %cst_129 = arith.constant dense<0.000000e+00> : vector<128x128xf32>
    %131 = tpu.matmul %129, %130, %cst_129 {dimension_numbers = #tpu.dot_dimension_numbers<[1], [0], [0], [1], [0, 0, 1, 1], [], []>} : vector<128x128xbf16>, vector<128x128xbf16>, vector<128x128xf32> -> vector<128x128xf32>
    %c0_130 = arith.constant 0 : index
    %c0_131 = arith.constant 0 : index
    %132 = vector.load %arg9[%c0_130, %c0_131] : memref<160x128xf32, #tpu.memory_space<vmem>>, vector<128x128xf32>
    %133 = arith.addf %132, %131 : vector<128x128xf32>
    %c0_132 = arith.constant 0 : index
    %c0_133 = arith.constant 0 : index
    %134 = vector.load %arg9[%c0_132, %c0_133] : memref<160x128xf32, #tpu.memory_space<vmem>>, vector<128x128xf32>
    tpu.vector_store %arg9[%c0_132, %c0_133], %133 {strides = array<i32>} : memref<160x128xf32, #tpu.memory_space<vmem>>, vector<128x128xf32>,
    %c1_134 = arith.constant 1 : index
    %c1_135 = arith.constant 1 : index
    %c0_136 = arith.constant 0 : index
    %135 = vector.load %arg8[%c1_134, %c1_135, %c0_136] : memref<10x24x128xbf16, #tpu.memory_space<vmem>>, vector<8x16x128xbf16>
    %136 = vector.shape_cast %135 : vector<8x16x128xbf16> to vector<128x128xbf16>
    %c512_137 = arith.constant 512 : index
    %c0_138 = arith.constant 0 : index
    %137 = vector.load %arg4[%c512_137, %c0_138] : memref<1152x128xbf16, #tpu.memory_space<vmem>>, vector<128x128xbf16>
    %cst_139 = arith.constant dense<0.000000e+00> : vector<128x128xf32>
    %138 = tpu.matmul %136, %137, %cst_139 {dimension_numbers = #tpu.dot_dimension_numbers<[1], [0], [0], [1], [0, 0, 1, 1], [], []>} : vector<128x128xbf16>, vector<128x128xbf16>, vector<128x128xf32> -> vector<128x128xf32>
    %c0_140 = arith.constant 0 : index
    %c0_141 = arith.constant 0 : index
    %139 = vector.load %arg9[%c0_140, %c0_141] : memref<160x128xf32, #tpu.memory_space<vmem>>, vector<128x128xf32>
    %140 = arith.addf %139, %138 : vector<128x128xf32>
    %c0_142 = arith.constant 0 : index
    %c0_143 = arith.constant 0 : index
    %141 = vector.load %arg9[%c0_142, %c0_143] : memref<160x128xf32, #tpu.memory_space<vmem>>, vector<128x128xf32>
    tpu.vector_store %arg9[%c0_142, %c0_143], %140 {strides = array<i32>} : memref<160x128xf32, #tpu.memory_space<vmem>>, vector<128x128xf32>,
    %c1_144 = arith.constant 1 : index
    %c2_145 = arith.constant 2 : index
    %c0_146 = arith.constant 0 : index
    %142 = vector.load %arg8[%c1_144, %c2_145, %c0_146] : memref<10x24x128xbf16, #tpu.memory_space<vmem>>, vector<8x16x128xbf16>
    %143 = vector.shape_cast %142 : vector<8x16x128xbf16> to vector<128x128xbf16>
    %c640_147 = arith.constant 640 : index
    %c0_148 = arith.constant 0 : index
    %144 = vector.load %arg4[%c640_147, %c0_148] : memref<1152x128xbf16, #tpu.memory_space<vmem>>, vector<128x128xbf16>
    %cst_149 = arith.constant dense<0.000000e+00> : vector<128x128xf32>
    %145 = tpu.matmul %143, %144, %cst_149 {dimension_numbers = #tpu.dot_dimension_numbers<[1], [0], [0], [1], [0, 0, 1, 1], [], []>} : vector<128x128xbf16>, vector<128x128xbf16>, vector<128x128xf32> -> vector<128x128xf32>
    %c0_150 = arith.constant 0 : index
    %c0_151 = arith.constant 0 : index
    %146 = vector.load %arg9[%c0_150, %c0_151] : memref<160x128xf32, #tpu.memory_space<vmem>>, vector<128x128xf32>
    %147 = arith.addf %146, %145 : vector<128x128xf32>
    %c0_152 = arith.constant 0 : index
    %c0_153 = arith.constant 0 : index
    %148 = vector.load %arg9[%c0_152, %c0_153] : memref<160x128xf32, #tpu.memory_space<vmem>>, vector<128x128xf32>
    tpu.vector_store %arg9[%c0_152, %c0_153], %147 {strides = array<i32>} : memref<160x128xf32, #tpu.memory_space<vmem>>, vector<128x128xf32>,
    %c2_154 = arith.constant 2 : index
    %c0_155 = arith.constant 0 : index
    %c0_156 = arith.constant 0 : index
    %149 = vector.load %arg8[%c2_154, %c0_155, %c0_156] : memref<10x24x128xbf16, #tpu.memory_space<vmem>>, vector<8x16x128xbf16>
    %150 = vector.shape_cast %149 : vector<8x16x128xbf16> to vector<128x128xbf16>
    %c768_157 = arith.constant 768 : index
    %c0_158 = arith.constant 0 : index
    %151 = vector.load %arg4[%c768_157, %c0_158] : memref<1152x128xbf16, #tpu.memory_space<vmem>>, vector<128x128xbf16>
    %cst_159 = arith.constant dense<0.000000e+00> : vector<128x128xf32>
    %152 = tpu.matmul %150, %151, %cst_159 {dimension_numbers = #tpu.dot_dimension_numbers<[1], [0], [0], [1], [0, 0, 1, 1], [], []>} : vector<128x128xbf16>, vector<128x128xbf16>, vector<128x128xf32> -> vector<128x128xf32>
    %c0_160 = arith.constant 0 : index
    %c0_161 = arith.constant 0 : index
    %153 = vector.load %arg9[%c0_160, %c0_161] : memref<160x128xf32, #tpu.memory_space<vmem>>, vector<128x128xf32>
    %154 = arith.addf %153, %152 : vector<128x128xf32>
    %c0_162 = arith.constant 0 : index
    %c0_163 = arith.constant 0 : index
    %155 = vector.load %arg9[%c0_162, %c0_163] : memref<160x128xf32, #tpu.memory_space<vmem>>, vector<128x128xf32>
    tpu.vector_store %arg9[%c0_162, %c0_163], %154 {strides = array<i32>} : memref<160x128xf32, #tpu.memory_space<vmem>>, vector<128x128xf32>,
    %c2_164 = arith.constant 2 : index
    %c1_165 = arith.constant 1 : index
    %c0_166 = arith.constant 0 : index
    %156 = vector.load %arg8[%c2_164, %c1_165, %c0_166] : memref<10x24x128xbf16, #tpu.memory_space<vmem>>, vector<8x16x128xbf16>
    %157 = vector.shape_cast %156 : vector<8x16x128xbf16> to vector<128x128xbf16>
    %c896_167 = arith.constant 896 : index
    %c0_168 = arith.constant 0 : index
    %158 = vector.load %arg4[%c896_167, %c0_168] : memref<1152x128xbf16, #tpu.memory_space<vmem>>, vector<128x128xbf16>
    %cst_169 = arith.constant dense<0.000000e+00> : vector<128x128xf32>
    %159 = tpu.matmul %157, %158, %cst_169 {dimension_numbers = #tpu.dot_dimension_numbers<[1], [0], [0], [1], [0, 0, 1, 1], [], []>} : vector<128x128xbf16>, vector<128x128xbf16>, vector<128x128xf32> -> vector<128x128xf32>
    %c0_170 = arith.constant 0 : index
    %c0_171 = arith.constant 0 : index
    %160 = vector.load %arg9[%c0_170, %c0_171] : memref<160x128xf32, #tpu.memory_space<vmem>>, vector<128x128xf32>
    %161 = arith.addf %160, %159 : vector<128x128xf32>
    %c0_172 = arith.constant 0 : index
    %c0_173 = arith.constant 0 : index
    %162 = vector.load %arg9[%c0_172, %c0_173] : memref<160x128xf32, #tpu.memory_space<vmem>>, vector<128x128xf32>
    tpu.vector_store %arg9[%c0_172, %c0_173], %161 {strides = array<i32>} : memref<160x128xf32, #tpu.memory_space<vmem>>, vector<128x128xf32>,
    %c2_174 = arith.constant 2 : index
    %c2_175 = arith.constant 2 : index
    %c0_176 = arith.constant 0 : index
    %163 = vector.load %arg8[%c2_174, %c2_175, %c0_176] : memref<10x24x128xbf16, #tpu.memory_space<vmem>>, vector<8x16x128xbf16>
    %164 = vector.shape_cast %163 : vector<8x16x128xbf16> to vector<128x128xbf16>
    %c1024_177 = arith.constant 1024 : index
    %c0_178 = arith.constant 0 : index
    %165 = vector.load %arg4[%c1024_177, %c0_178] : memref<1152x128xbf16, #tpu.memory_space<vmem>>, vector<128x128xbf16>
    %cst_179 = arith.constant dense<0.000000e+00> : vector<128x128xf32>
    %166 = tpu.matmul %164, %165, %cst_179 {dimension_numbers = #tpu.dot_dimension_numbers<[1], [0], [0], [1], [0, 0, 1, 1], [], []>} : vector<128x128xbf16>, vector<128x128xbf16>, vector<128x128xf32> -> vector<128x128xf32>
    %c0_180 = arith.constant 0 : index
    %c0_181 = arith.constant 0 : index
    %167 = vector.load %arg9[%c0_180, %c0_181] : memref<160x128xf32, #tpu.memory_space<vmem>>, vector<128x128xf32>
    %168 = arith.addf %167, %166 : vector<128x128xf32>
    %c0_182 = arith.constant 0 : index
    %c0_183 = arith.constant 0 : index
    %169 = vector.load %arg9[%c0_182, %c0_183] : memref<160x128xf32, #tpu.memory_space<vmem>>, vector<128x128xf32>
    tpu.vector_store %arg9[%c0_182, %c0_183], %168 {strides = array<i32>} : memref<160x128xf32, #tpu.memory_space<vmem>>, vector<128x128xf32>,
    %c2_i32_184 = arith.constant 2 : i32
    %170 = arith.addi %0, %c2_i32_184 : i32
    %c0_185 = arith.constant 0 : index
    %171 = arith.index_cast %170 : i32 to index
    %c1_186 = arith.constant 1 : index
    %c0_187 = arith.constant 0 : index
    %172 = vector.load %arg2[%c0_185, %171, %c1_186, %c0_187] : memref<1x20x24x128xbf16, #tpu.memory_space<vmem>>, vector<1x8x16x128xbf16>
    %173 = vector.shape_cast %172 : vector<1x8x16x128xbf16> to vector<8x16x128xbf16>
    %174 = vector.shape_cast %173 : vector<8x16x128xbf16> to vector<128x128xbf16>
    %175 = arith.extf %174 : vector<128x128xbf16> to vector<128x128xf32>
    %c0_188 = arith.constant 0 : index
    %c0_189 = arith.constant 0 : index
    %176 = vector.load %arg9[%c0_188, %c0_189] : memref<160x128xf32, #tpu.memory_space<vmem>>, vector<128x128xf32>
    %c0_190 = arith.constant 0 : index
    %c0_191 = arith.constant 0 : index
    %177 = vector.load %arg6[%c0_190, %c0_191] : memref<1x128xf32, #tpu.memory_space<vmem>>, vector<1x128xf32>
    %178 = vector.shape_cast %177 : vector<1x128xf32> to vector<128xf32>
    %179 = vector.shape_cast %178 : vector<128xf32> to vector<1x128xf32>
    %180 = vector.broadcast %179 : vector<1x128xf32> to vector<128x128xf32>
    %181 = arith.addf %176, %180 : vector<128x128xf32>
    %182 = arith.addf %181, %175 : vector<128x128xf32>
    %cst_192 = arith.constant 0.000000e+00 : f32
    %183 = vector.broadcast %cst_192 : f32 to vector<128x128xf32>
    %184 = arith.maximumf %182, %183 : vector<128x128xf32>
    %185 = vector.shape_cast %184 : vector<128x128xf32> to vector<8x16x128xf32>
    %186 = arith.truncf %185 : vector<8x16x128xf32> to vector<8x16x128xbf16>
    %c0_193 = arith.constant 0 : index
    %c0_194 = arith.constant 0 : index
    %c0_195 = arith.constant 0 : index
    %c0_196 = arith.constant 0 : index
    %187 = vector.load %arg7[%c0_193, %c0_194, %c0_195, %c0_196] : memref<1x8x16x128xbf16, #tpu.memory_space<vmem>>, vector<1x8x16x128xbf16>
    %188 = vector.shape_cast %187 : vector<1x8x16x128xbf16> to vector<8x16x128xbf16>
    %189 = vector.shape_cast %186 : vector<8x16x128xbf16> to vector<1x8x16x128xbf16>
    tpu.vector_store %arg7[%c0_193, %c0_194, %c0_195, %c0_196], %189 {strides = array<i32>} : memref<1x8x16x128xbf16, #tpu.memory_space<vmem>>, vector<1x8x16x128xbf16>,
    return
  }
  func.func @transform_0(%arg0: i32, %arg1: i32) -> (i32, i32, i32, i32) {
    %c0_i32 = arith.constant 0 : i32
    %c0_i32_0 = arith.constant 0 : i32
    %c0_i32_1 = arith.constant 0 : i32
    %c0_i32_2 = arith.constant 0 : i32
    return %arg0, %c0_i32, %c0_i32_0, %c0_i32_1 : i32, i32, i32, i32
  }
  func.func @transform_1(%arg0: i32, %arg1: i32) -> (i32, i32) {
    %c0_i32 = arith.constant 0 : i32
    %c0_i32_0 = arith.constant 0 : i32
    %c0_i32_1 = arith.constant 0 : i32
    return %c0_i32, %c0_i32_0 : i32, i32
  }
  func.func @transform_2(%arg0: i32, %arg1: i32) -> (i32, i32) {
    %c0_i32 = arith.constant 0 : i32
    %c0_i32_0 = arith.constant 0 : i32
    %c0_i32_1 = arith.constant 0 : i32
    return %c0_i32, %c0_i32_0 : i32, i32
  }
  func.func @transform_3(%arg0: i32, %arg1: i32) -> (i32, i32) {
    %c0_i32 = arith.constant 0 : i32
    %c0_i32_0 = arith.constant 0 : i32
    %c0_i32_1 = arith.constant 0 : i32
    return %c0_i32, %c0_i32_0 : i32, i32
  }
  func.func @transform_4(%arg0: i32, %arg1: i32) -> (i32, i32) {
    %c0_i32 = arith.constant 0 : i32
    %c0_i32_0 = arith.constant 0 : i32
    %c0_i32_1 = arith.constant 0 : i32
    return %c0_i32, %c0_i32_0 : i32, i32
  }
  func.func @transform_5(%arg0: i32, %arg1: i32) -> (i32, i32, i32, i32) {
    %c0_i32 = arith.constant 0 : i32
    %c0_i32_0 = arith.constant 0 : i32
    %c0_i32_1 = arith.constant 0 : i32
    return %arg0, %arg1, %c0_i32, %c0_i32_0 : i32, i32, i32, i32
  }
}

</mosaic_0001>

<bundles_post_ra>
// kernel: tpu_custom_call.1
= control target key start
LH: loop header
LB: loop body
LE: loop exit
PB: predicated region body
PF: predicated region fallthrough
CT: control target
= control target key end

     0   :  { %s12093_s0 = inlined_call_operand.hbm [shape: bf16[2,20,24,128], index: 0, kind: input, shape index: {}]   ;;  %s12094_s1 = inlined_call_operand.hbm [shape: bf16[1152,128], index: 1, kind: input, shape index: {}]   ;;  %s12095_s2 = inlined_call_operand.hbm [shape: bf16[1152,128], index: 2, kind: input, shape index: {}]   ;;  %s12096_s3 = inlined_call_operand.vmem [shape: f32[1,128], index: 3, kind: input, shape index: {}]   ;;  %s12097_s4 = inlined_call_operand.vmem [shape: f32[1,128], index: 4, kind: input, shape index: {}]   ;;  %s12098_s5 = inlined_call_operand.hbm [shape: bf16[2,16,16,128], index: 5, kind: output, shape index: {}]  }
   0x1   :  { %12112 = sst [smem:[#allocation45_spill]] %s12094_s1 }
   0x2   :  { %12113 = sst [smem:[#allocation46_spill]] %s12095_s2 }
   0x3   :  { %12114 = sst [smem:[#allocation47_spill]] %s12098_s5 }
   0x4   :  { %10 = vsyncpa [#allocation5], 0 }
   0x5   :  { %12 = vsyncpa [#allocation5 + $0x1], 0 }
   0x6   :  { %13 = vsyncpa [#allocation8], 0 }
   0x7   :  { %14 = vsyncpa [#allocation6], 0 }
   0x8   :  { %16 = vsyncpa [#allocation6 + $0x1], 0  ;;  %s10446_s18 = smov 0   ;;  %s10448_s19 = smov 0  }
   0x9   :  { %s10450_s20 = smov 0   ;;  %s10452_s21 = smov 0  }
   0xa   :  { %s10454_s22 = smov 0   ;;  %s10456_s23 = smov 0  }
   0xb   :  { %s10458_s24 = smov 0   ;;  %s10460_s25 = smov 0  }
   0xc   :  { %s10462_s26 = smov 0   ;;  %s10464_s27 = smov 0  }
   0xd   :  { %s10466_s28 = smov 0  }
   0xe LB: > { %12115 = sst [smem:[#allocation14_spill]] %s10364_s18  ;;  %s8149_s29 = sadd.s32 4294967295, %s10404_s28   ;;  %s10404_s28 = sphi %s10466_s28, %s22_s28   ;;  %s10400_s27 = sphi %s10464_s27, %s12238_s27   ;;  %s10396_s26 = sphi %s10462_s26, %s12230_s26   ;;  %s10392_s25 = sphi %s10460_s25, %s12237_s25   ;;  %s10388_s24 = sphi %s10458_s24, %s12229_s24   ;;  %s10384_s23 = sphi %s10456_s23, %s12236_s23   ;;  %s10380_s22 = sphi %s10454_s22, %s12235_s22   ;;  %s10376_s21 = sphi %s10452_s21, %s12234_s21   ;;  %s10372_s20 = sphi %s10450_s20, %s12233_s20   ;;  %s10368_s19 = sphi %s10448_s19, %s12232_s19   ;;  %s10364_s18 = sphi %s10446_s18, %s12231_s18  }
   0xf   : > { %12116 = sst [smem:[#allocation15_spill]] %s10392_s25  ;;  %s8150_s30 = sadd.s32 4294967294, %s10404_s28  }
  0x10   : > { %12117 = sst [smem:[#allocation16_spill]] %s10396_s26  ;;  %p54_p0 = scmp.ne.s32.totalorder %s10380_s22, %s10376_s21 }
  0x11   : > { %p10502_p1 = scmp.eq.s32.totalorder %s8149_s29, 0  ;;  %p163_p2 = scmp.ne.s32.totalorder %s10372_s20, %s10368_s19 }
  0x12   : > { %p164_p4 = scmp.eq.s32.totalorder %s8149_s29, 3  ;;  %p169_p5 = scmp.ne.s32.totalorder %s10368_s19, %s10364_s18 }
  0x13   : > { %p10511_p3 = por %p10502_p1, %p54_p0  ;;  %p170_p6 = scmp.eq.s32.totalorder %s8150_s30, 3 }
  0x14   : > { %p10517_p7 = por %p164_p4, %p163_p2  ;;  %p8151_p8 = scmp.ge.s32.totalorder %s10404_s28, 1 }
  0x15   : > { %p10522_p9 = por %p170_p6, %p169_p5  ;;  %p177_p10 = scmp.lt.s32.totalorder %s10404_s28, 5 }
  0x16   : > { %s12120_s9 = scalar_select %p10517_p7, 1, 0 }
  0x17   : > { %s12122_s10 = scalar_select %p10522_p9, 1, 0 }
  0x18   : > { %12121 = sst [smem:[#allocation17_spill]] %s12120_s9  ;;  %p10527_p11 = pnand %p8151_p8, %p177_p10 }
  0x19   : > { %12123 = sst [smem:[#allocation18_spill]] %s12122_s10  ;;  %s10406_s12 = smov [#allocation7]  }
  0x1a   : > { %s189_s13 = sshll.u32 %s10406_s12, 4  ;;  %p9885_p12 = pneg %p10527_p11  ;;  %s190_s13 = int_to_ptr.vmem [resolvable:$true] %s189_s13 }
  0x1b   : > { %s10407_s15 = smov [#allocation9]   ;;  %s10211_s17 = scalar_lea.vmem %s190_s13, 9216 }
  0x1c   : > { %p10535_p13 = pnand %p9885_p12, %p10502_p1  ;;  %s202_s16 = sshll.u32 %s10407_s15, 4  ;;  %s203_s16 = int_to_ptr.vmem [resolvable:$true] %s202_s16 }
  0x1d   : > { %p10212_p2 = scmp.ne.s32.totalorder %s190_s13, %s10211_s17  ;;  %p10219_p6 = scmp.lt.s32.totalorder %s190_s13, %s190_s13 }
  0x1e   : > { %p10202_p0 = pneg %p10535_p13  ;;  %p10220_p8 = scmp.lt.s32.totalorder %s10211_s17, %s10211_s17 }
  0x20   : > { %p10214_p4 = pnand %p10212_p2, %p10202_p0  ;;  %p10221_p10 = por %p10220_p8, %p10219_p6 }
  0x22   : > { %p10215_p5 = pneg %p10214_p4 }
  0x24   : > { %p10222_p12 = pnand %p10221_p10, %p10215_p5 }
  0x26   : > { %10225 = shalt.err (!%p10222_p12)
}
  0x27   : > { %s12099_s21 = smov 64   ;;  %s12100_s29 = smov 4  }
  0x28   : > { %s12126_s1 = sld [smem:[#allocation45_spill]]  ;;  %s10237_s15 = scalar_lea.vmem %s203_s16, 9216 }
  0x29   : > { %p10238_p2 = scmp.ne.s32.totalorder %s203_s16, %s10237_s15  ;;  %p10245_p5 = scmp.lt.s32.totalorder %s203_s16, %s203_s16 }
  0x2a   : > { %p10246_p8 = scmp.lt.s32.totalorder %s10237_s15, %s10237_s15 }
  0x2b   : > { %p10240_p4 = pnand %p10238_p2, %p10202_p0 }
  0x2c   : > { %p10247_p10 = por %p10246_p8, %p10245_p5 }
  0x2d   : > { %p10241_p6 = pneg %p10240_p4 }
  0x2e   : > { %9888 = dma.hbm_to_vmem [thread:$0]  (!%p10535_p13), %s12126_s1, 9216, %s190_s13, [#allocation8], %s12099_s21, %s12099_s21, %s12100_s29  }
  0x2f   : > { %p10248_p12 = pnand %p10247_p10, %p10241_p6 }
  0x31   : > { %10251 = shalt.err (!%p10248_p12)
}
  0x32   : > { %s12127_s2 = sld [smem:[#allocation46_spill]]  ;;  %s31_s13 = sadd.s32 1, %s10396_s26 }
  0x33   : > { %s34_s14 = sadd.s32 1, %s10400_s27  ;;  %p32_p0 = scmp.ge.s32.totalorder %s31_s13, 2 }
  0x34   : > { %s41_s30 = sadd.s32 1, %s10384_s23  ;;  %p48_p2 = scmp.ne.s32.totalorder %s10384_s23, %s10380_s22 }
  0x35   : > { %p49_p4 = scmp.eq.s32.totalorder %s10404_s28, 0  ;;  %s12240_s13 = smov (%p32_p0, %s31_s13), 0 }
  0x36   : > { %12128 = sst [smem:[#allocation19_spill]] %s12240_s13  ;;  %s12242_s14 = smov (!%p32_p0, %s34_s14), %s10400_s27 }
  0x37   : > { %p10572_p6 = por %p49_p4, %p48_p2  ;;  %s149_s12 = ssub.s32 %s10396_s26, %s12240_s13 }
  0x38   : > { %9891 = dma.hbm_to_vmem [thread:$0]  (!%p10535_p13), %s12127_s2, 9216, %s203_s16, [#allocation8], %s12099_s21, %s12099_s21, %s12100_s29  }
  0x39   : > { %p36_p13 = scmp.ge.s32.totalorder %s12242_s14, 2  ;;  %p9902_p5 = scmp.lt.s32.totalorder %s10404_s28, 4 }
  0x3a   : > { %s222_s16 = sand.u32 1, %s10384_s23   ;;  %s9871_s15 = smul.u32 3840, %s10400_s27 }
  0x3b   : > { %s12244_s14 = smov (%p36_p13, %s12242_s14), 0  ;;  %s9870_s17 = smul.u32 240, %s222_s16 }
  0x3c   : > { %s38_s21 = ssub.s32 %s10400_s27, %s12244_s14  ;;  %s10588_s2 = scalar_lea.hbm %s12093_s0, %s9871_s15 }
  0x3d   : > { %p39_p8 = scmp.eq.s32.totalorder %s38_s21, 0  ;;  %s150_s10 = sor.u32 %s149_s12, %s38_s21 }
  0x3e   : > { %p151_p10 = scmp.eq.s32.totalorder %s150_s10, 0  ;;  %s12130_s26 = sadd.s32 1, %s10372_s20 }
  0x3f   : > { %s10591_s13 = scalar_select %p39_p8, %s10384_s23, %s41_s30  }
  0x40   : > { %s10596_s18 = scalar_select %p151_p10, %s10372_s20, %s12130_s26  }
  0x41   : > { %s226_s5 = scalar_lea.vmem [#allocation4], %s9870_s17  ;;  %p10602_p12 = pnand %p9902_p5, %p10572_p6 }
  0x42   : > { %s233_s9 = sshll.u32 %s226_s5, 4  ;;  %s223_s1 = scalar_lea.sflag [#allocation5], %s222_s16  ;;  %s234_s9 = int_to_ptr.vmem [resolvable:$true] %s233_s9 }
  0x43   : > { %p10254_p0 = pneg %p10602_p12  ;;  %s10265_s21 = scalar_lea.vmem %s234_s9, 3840 }
  0x44   : > { %p10266_p2 = scmp.ne.s32.totalorder %s234_s9, %s10265_s21  ;;  %s10410_s10 = smov [#allocation4]  }
  0x45   : > { %s10270_s26 = sshll.u32 %s10410_s10, 4  ;;  %s10271_s26 = int_to_ptr.vmem [resolvable:$false] %s10270_s26 }
  0x46   : > { %p10268_p4 = pnand %p10266_p2, %p10254_p0  ;;  %s10272_s29 = scalar_lea.vmem %s10271_s26, 7680 }
  0x47   : > { %p10273_p8 = scmp.lt.s32.totalorder %s234_s9, %s10271_s26  ;;  %p10274_p10 = scmp.lt.s32.totalorder %s10272_s29, %s10265_s21 }
  0x48   : > { %p10269_p13 = pneg %p10268_p4 }
  0x49   : > { %p10275_p9 = por %p10274_p10, %p10273_p8 }
  0x4b   : > { %p10276_p6 = pnand %p10275_p9, %p10269_p13 }
  0x4d   : > { %10279 = shalt.err (!%p10276_p6)
}
  0x4e   : > { %s12132_s5 = smov 4   ;;  %s12133_s30 = smov 64  }
  0x4f   : > { %9895 = dma.hbm_to_vmem [thread:$0]  (!%p10602_p12), %s10588_s2, 3840, %s234_s9, %s223_s1, %s12133_s30, %s12133_s30, %s12132_s5  }
  0x50   : > { %245 = sbr.rel (%p10527_p11) target bundleno = 981 (0x3d5), region = 40 }
  0x55   : > { %s247_s7 = sand.u32 1, %s10380_s22  }
  0x56   : > { %s10617_s12 = smul.u32 240, %s247_s7  ;;  %s248_s16 = scalar_lea.sflag [#allocation5], %s247_s7 }
  0x58   : > { %s251_s15 = scalar_lea.vmem [#allocation4], %s10617_s12 }
  0x59   : > { %10351 = dma.done.wait (%p10511_p3), %s248_s16, 3840  }
  0x5a   : > { %10353 = vsyncadd (%p10511_p3), %s248_s16, 4294963456 }
  0x5b   : > { %10355 = dma.done.wait (%p10502_p1), [#allocation8], 18432  }
  0x5c   : > { %10357 = vsyncadd (%p10502_p1), [#allocation8], 4294948864  ;;  %s283_s2 = sand.u32 1, %s10368_s19   ;;  %v10002_v0 = vld [vmem:[#allocation7 + $0x38] sm:$0xff]   ;;  %v10003_v1 = vld [vmem:[#allocation7 + $0x30] sm:$0xff]   ;;  %s8768_s6 = smul.u32 96, %s10388_s24 }
  0x5d   : > { %s10631_s25 = sshll.u32 %s283_s2, 6  ;;  %9258 = vmatprep.subr.bf16.mxu0 %v10002_v0  ;;  %v10005_v2 = vld [vmem:[#allocation7 + $0x78] sm:$0xff]   ;;  %v10004_v3 = vld [vmem:[#allocation7 + $0x28] sm:$0xff]   ;;  %v10007_v4 = vld [vmem:[#allocation7 + $0x70] sm:$0xff]   ;;  %vm599_vm0 = vsmask.f32 3328 }
  0x5e   : > { %9259 = vmatpush3.bf16.msra.mxu0 %v10002_v0  ;;  %9294 = vmatprep.subr.bf16.mxu1 %v10005_v2  ;;  %v10009_v5 = vld [vmem:[#allocation7 + $0x68] sm:$0xff]   ;;  %v10006_v6 = vld [vmem:[#allocation7 + $0x20] sm:$0xff]   ;;  %v10008_v8 = vld [vmem:[#allocation7 + $0x18] sm:$0xff]   ;;  %s10636_s8 = scalar_lea.vmem %s251_s15, %s8768_s6 [#allocation4]  ;;  %vm600_vm1 = vsmask.f32 7440  ;;  %v12134_v40 = vmov 0 }
  0x5f   : > { %9260 = vmatprep.subr.bf16.mxu0 %v10003_v1  ;;  %9295 = vmatpush3.bf16.msra.mxu1 %v10005_v2  ;;  %v10011_v7 = vld [vmem:[#allocation7 + $0x60] sm:$0xff]   ;;  %v10016_v9 = vld [vmem:[%s10636_s8] sm:$0xff]   ;;  %v10013_v10 = vld [vmem:[#allocation7 + $0x58] sm:$0xff]   ;;  %vm1179_vm3 = vcmask 1042432   ;;  %vm1180_vm4 = vcmask 1046532   ;;  %vm4166_vm6 = vcmask 1040384  }
  0x60   : > { %9296 = vmatprep.subr.bf16.mxu1 %v10007_v4  ;;  %v10010_v11 = vld [vmem:[#allocation7 + $0x10] sm:$0xff]   ;;  %9274 = vmatprep.mubr.bf16.mxu0 %v10016_v9  ;;  %v10012_v13 = vld [vmem:[#allocation7 + $0x8] sm:$0xff]   ;;  %v10014_v17 = vld [vmem:[#allocation7] sm:$0xff]   ;;  %s11412_s17 = scalar_lea.vmem [#allocation10], %s10631_s25  ;;  %p8550_p1 = scmp.ne.s32.totalorder %s10388_s24, 0 }
  0x61   : > { %v10015_v12 = vld [vmem:[#allocation7 + $0x50] sm:$0xff]   ;;  %v569_v14 = vld [vmem:[%s10636_s8] sm:$0xf]  ;;  %v570_v15 = vld [vmem:[%s10636_s8 + $0x4] sm:$0xf] }
  0x62   : > { %9261 = vmatpush3.bf16.msra.mxu0 %v10003_v1  ;;  %v571_v16 = vld [vmem:[%s10636_s8 + $0x8] sm:$0x1]  ;;  %v603_v18 = vshrl.u32 %v569_v14, 16  ;;  %v606_v19 = vshll.u32 %v569_v14, 16  ;;  %v612_v20 = vshll.u32 %v570_v15, 16  ;;  %v616_v21 = vshrl.u32 %v570_v15, 16  ;;  %vm10647_vm2 = vmor %vm599_vm0, %vm600_vm1 }
  0x63   : > { %9262 = vmatprep.subr.bf16.mxu0 %v10004_v3  ;;  %9297 = vmatpush3.bf16.msra.mxu1 %v10007_v4  ;;  %v10018_v22 = vld [vmem:[#allocation7 + $0x48] sm:$0xff]   ;;  %v622_v23 = vshll.u32 %v571_v16, 16  ;;  %v572_v24 = vld [vmem:[%s10636_s8 + $0xc] sm:$0xf]  ;;  %v573_v29 = vld [vmem:[%s10636_s8 + $0x10] sm:$0xf] }
  0x64   : > { %9298 = vmatprep.subr.bf16.mxu1 %v10009_v5  ;;  %v605_v25 = vrot.slane %v603_v18, 4  ;;  %v608_v26 = vrot.slane %v606_v19, 5  ;;  %v614_v27 = vrot.slane %v612_v20, 5  ;;  %v618_v28 = vrot.slane %v616_v21, 4  ;;  %v574_v31 = vld [vmem:[%s10636_s8 + $0x14] sm:$0x1]  ;;  %vm10718_vm5 = vmor %vm1179_vm3, %vm1180_vm4 }
  0x65   : > { %v624_v30 = vrot.slane %v622_v23, 5  ;;  %v627_v32 = vshrl.u32 %v572_v24, 16  ;;  %v630_v33 = vshll.u32 %v572_v24, 16  ;;  %v636_v34 = vshll.u32 %v573_v29, 16  ;;  %v10020_v39 = vld [vmem:[#allocation7 + $0x40] sm:$0xff]   ;;  %v10019_v44 = vld [vmem:[#allocation7 + $0xb8] sm:$0xff]  }
  0x66   : > { %9263 = vmatpush3.bf16.msra.mxu0 %v10004_v3  ;;  %v609_v35 = vor.u32 %v608_v26, %v605_v25  ;;  %v619_v36 = vor.u32 %v618_v28, %v614_v27  ;;  %v640_v37 = vshrl.u32 %v573_v29, 16  ;;  %v646_v38 = vshll.u32 %v574_v31, 16  ;;  %v10017_v48 = vld [vmem:[%s10636_s8 + $0xc] sm:$0xff]   ;;  %v575_v51 = vld [vmem:[%s10636_s8 + $0x18] sm:$0xf]  ;;  %v10024_v9 = vld [vmem:[#allocation7 + $0xa8] sm:$0xff]  }
  0x67   : > { %9264 = vmatprep.subr.bf16.mxu0 %v10006_v6  ;;  %9299 = vmatpush3.bf16.msra.mxu1 %v10009_v5  ;;  %v12135_v40 = vsel %vm10647_vm2, 4294967295, %v12134_v40  ;;  %v629_v41 = vrot.slane %v627_v32, 4  ;;  %v632_v42 = vrot.slane %v630_v33, 5  ;;  %v638_v43 = vrot.slane %v636_v34, 5  ;;  %v576_v52 = vld [vmem:[%s10636_s8 + $0x1c] sm:$0xf] }
  0x68   : > { %9300 = vmatprep.subr.bf16.mxu1 %v10011_v7  ;;  %12136 = vst [vmem:[#allocation20_spill] sm:$0xff] %v12135_v40  ;;  %v610_v45 = vrot.slane %v609_v35, 4  ;;  %v620_v46 = vrot.slane %v619_v36, 4  ;;  %v642_v47 = vrot.slane %v640_v37, 4  ;;  %v648_v50 = vrot.slane %v646_v38, 5  ;;  %v10021_v53 = vld [vmem:[#allocation7 + $0xb0] sm:$0xff]  }
  0x69   : > { %v633_v49 = vor.u32 %v632_v42, %v629_v41  ;;  %v577_v57 = vld [vmem:[%s10636_s8 + $0x20] sm:$0x1]  ;;  %v651_v58 = vshrl.u32 %v575_v51, 16  ;;  %v10022_v59 = vld [vmem:[%s10636_s8 + $0x18] sm:$0xff]   ;;  %v654_v62 = vshll.u32 %v575_v51, 16  ;;  %v660_v63 = vshll.u32 %v576_v52, 16 }
  0x6a   : > { %9265 = vmatpush3.bf16.msra.mxu0 %v10006_v6  ;;  %v615_v54 = vsel %vm10647_vm2, %v610_v45, %v614_v27  ;;  %v625_v55 = vsel %vm10647_vm2, %v620_v46, %v624_v30  ;;  %v643_v56 = vor.u32 %v642_v47, %v638_v43  ;;  %v664_v2 = vshrl.u32 %v576_v52, 16  ;;  %v10023_v23 = vld [vmem:[%s10636_s8 + $0x24] sm:$0xff]   ;;  %v10025_v27 = vld [vmem:[%s10636_s8 + $0x30] sm:$0xff]   ;;  %v10026_v35 = vld [vmem:[#allocation7 + $0xa0] sm:$0xff]  }
  0x6b   : > { %9266 = vmatprep.subr.bf16.mxu0 %v10008_v8  ;;  %9301 = vmatpush3.bf16.msra.mxu1 %v10011_v7  ;;  %v8181_v60 = vcombine.low %v615_v54, %v625_v55  ;;  %v634_v61 = vrot.slane %v633_v49, 4  ;;  %v653_v1 = vrot.slane %v651_v58, 4  ;;  %v670_v3 = vshll.u32 %v577_v57, 16  ;;  %v578_v7 = vld [vmem:[%s10636_s8 + $0x24] sm:$0xf]  ;;  %v10030_v33 = vld [vmem:[#allocation7 + $0xf0] sm:$0xff]  }
  0x6c   : > { %9302 = vmatprep.subr.bf16.mxu1 %v10013_v10  ;;  %v644_v0 = vrot.slane %v643_v56, 4  ;;  %v656_v5 = vrot.slane %v654_v62, 5  ;;  %v662_v6 = vrot.slane %v660_v63, 5  ;;  %v675_v16 = vshrl.u32 %v578_v7, 16  ;;  %v581_v38 = vld [vmem:[%s10636_s8 + $0x30] sm:$0xf] }
  0x6d   : > { %9310 = vmatprep.mubr.bf16.mxu1 %v8181_v60  ;;  %v639_v4 = vsel %vm10647_vm2, %v634_v61, %v638_v43  ;;  %v582_v42 = vld [vmem:[%s10636_s8 + $0x34] sm:$0xf]  ;;  %v583_v43 = vld [vmem:[%s10636_s8 + $0x38] sm:$0x1]  ;;  %v702_v46 = vshll.u32 %v581_v38, 16  ;;  %v10031_v61 = vld [vmem:[%s10636_s8 + $0x48] sm:$0xff]  }
  0x6e   : > { %9267 = vmatpush3.bf16.msra.mxu0 %v10008_v8  ;;  %v649_v8 = vsel %vm10647_vm2, %v644_v0, %v648_v50  ;;  %v657_v15 = vor.u32 %v656_v5, %v653_v1  ;;  %v677_v25 = vrot.slane %v675_v16, 4  ;;  %v708_v47 = vshll.u32 %v582_v42, 16  ;;  %v10029_v50 = vld [vmem:[#allocation7 + $0x98] sm:$0xff]   ;;  %v584_v58 = vld [vmem:[%s10636_s8 + $0x3c] sm:$0xf] }
  0x6f   : > { %9268 = vmatprep.subr.bf16.mxu0 %v10010_v11  ;;  %9303 = vmatpush3.bf16.msra.mxu1 %v10013_v10  ;;  %v666_v10 = vrot.slane %v664_v2, 4  ;;  %v8182_v14 = vcombine.low %v639_v4, %v649_v8  ;;  %v718_v52 = vshll.u32 %v583_v43, 16  ;;  %v704_v55 = vrot.slane %v702_v46, 5  ;;  %v585_v63 = vld [vmem:[%s10636_s8 + $0x40] sm:$0xf] }
  0x70   : > { %9304 = vmatprep.subr.bf16.mxu1 %v10015_v12  ;;  %v658_v24 = vrot.slane %v657_v15, 4  ;;  %v710_v56 = vrot.slane %v708_v47, 5  ;;  %v586_v0 = vld [vmem:[%s10636_s8 + $0x44] sm:$0x1]  ;;  %v723_v1 = vshrl.u32 %v584_v58, 16  ;;  %v726_v4 = vshll.u32 %v584_v58, 16 }
  0x71   : > { %v667_v18 = vor.u32 %v666_v10, %v662_v6  ;;  %v720_v62 = vrot.slane %v718_v52, 5  ;;  %v732_v5 = vshll.u32 %v585_v63, 16  ;;  %v742_v8 = vshll.u32 %v586_v0, 16  ;;  %v591_v46 = vld [vmem:[%s10636_s8 + $0x58] sm:$0xf]  ;;  %v10041_v0 = vld [vmem:[#allocation7 + $0xd0] sm:$0xff]  }
  0x72   : > { %9269 = vmatpush3.bf16.msra.mxu0 %v10010_v11  ;;  %v672_v11 = vrot.slane %v670_v3, 5  ;;  %v663_v31 = vsel %vm10647_vm2, %v658_v24, %v662_v6  ;;  %v725_v6 = vrot.slane %v723_v1, 4  ;;  %v10035_v24 = vld [vmem:[#allocation7 + $0x88] sm:$0xff]   ;;  %v592_v47 = vld [vmem:[%s10636_s8 + $0x5c] sm:$0x1] }
  0x73   : > { %9270 = vmatprep.subr.bf16.mxu0 %v10012_v13  ;;  %9305 = vmatpush3.bf16.msra.mxu1 %v10015_v12  ;;  %v579_v12 = vld [vmem:[%s10636_s8 + $0x28] sm:$0xf]  ;;  %v668_v28 = vrot.slane %v667_v18, 4  ;;  %v10036_v18 = vld [vmem:[#allocation7 + $0xe0] sm:$0xff]  }
  0x74   : > { %9306 = vmatprep.subr.bf16.mxu1 %v10018_v22  ;;  %v684_v19 = vshll.u32 %v579_v12, 16  ;;  %v688_v20 = vshrl.u32 %v579_v12, 16  ;;  %v728_v12 = vrot.slane %v726_v4, 5  ;;  %v10040_v52 = vld [vmem:[#allocation7 + $0x80] sm:$0xff]   ;;  %v594_v4 = vld [vmem:[%s10636_s8 + $0x64] sm:$0xf] }
  0x75   : > { %v673_v34 = vsel %vm10647_vm2, %v668_v28, %v672_v11  ;;  %v10037_v28 = vld [vmem:[%s10636_s8 + $0x60] sm:$0xff]  }
  0x76   : > { %9271 = vmatpush3.bf16.msra.mxu0 %v10012_v13  ;;  %v580_v13 = vld [vmem:[%s10636_s8 + $0x2c] sm:$0x1]  ;;  %v686_v29 = vrot.slane %v684_v19, 5  ;;  %v690_v30 = vrot.slane %v688_v20, 4 }
  0x77   : > { %9272 = vmatprep.subr.bf16.mxu0 %v10014_v17  ;;  %9307 = vmatpush3.bf16.msra.mxu1 %v10018_v22  ;;  %v694_v21 = vshll.u32 %v580_v13, 16  ;;  %v10028_v22 = vld [vmem:[#allocation7 + $0xf8] sm:$0xff]   ;;  %v734_v13 = vrot.slane %v732_v5, 5 }
  0x78   : > { %9308 = vmatprep.subr.bf16.mxu1 %v10020_v39  ;;  %v691_v36 = vor.u32 %v690_v30, %v686_v29 }
  0x79   : > { %v696_v37 = vrot.slane %v694_v21, 5  ;;  %v744_v21 = vrot.slane %v742_v8, 5 }
  0x7a   : > { %9273 = vmatpush3.bf16.msra.mxu0 %v10014_v17  ;;  %v678_v17 = vshll.u32 %v578_v7, 16  ;;  %v692_v45 = vrot.slane %v691_v36, 4  ;;  %v736_v7 = vshrl.u32 %v585_v63, 16 }
  0x7b   : > { %9330 = vmatprep.subr.bf16.mxu0 %v10019_v44  ;;  %9309 = vmatpush3.bf16.msra.mxu1 %v10020_v39  ;;  %v8183_v39 = vcombine.low %v663_v31, %v673_v34 }
  0x7c   : > { %v680_v26 = vrot.slane %v678_v17, 5  ;;  %9366 = vmatprep.subr.bf16.mxu1 %v10028_v22  ;;  %v697_v54 = vsel %vm10647_vm2, %v692_v45, %v696_v37  ;;  %v729_v17 = vor.u32 %v728_v12, %v725_v6 }
  0x7d   : > { %9275 = vmatmul.mubr.bf16.vlgmr.msra.gmra.mxu0 %v10017_v48  ;;  %v712_v48 = vshrl.u32 %v582_v42, 16  ;;  %v10039_v42 = vld [vmem:[#allocation7 + $0xd8] sm:$0xff]  }
  0x7e   : > { %9331 = vmatpush3.bf16.msra.mxu0 %v10019_v44  ;;  %9278 = vmatprep.mubr.bf16.mxu0 %v10022_v59  ;;  %v681_v32 = vor.u32 %v680_v26, %v677_v25  ;;  %v699_v44 = vshrl.u32 %v581_v38, 16  ;;  %v10034_v59 = vld [vmem:[#allocation7 + $0xe8] sm:$0xff]   ;;  %v587_v25 = vld [vmem:[%s10636_s8 + $0x48] sm:$0xf]  ;;  %v588_v26 = vld [vmem:[%s10636_s8 + $0x4c] sm:$0xf] }
  0x7f   : > { %9332 = vmatprep.subr.bf16.mxu0 %v10021_v53  ;;  %9311 = vmatmul.mubr.bf16.vlgmr.msra.gmra.mxu1 %v8182_v14  ;;  %v714_v57 = vrot.slane %v712_v48, 4  ;;  %v738_v14 = vrot.slane %v736_v7, 4  ;;  %v747_v30 = vshrl.u32 %v587_v25, 16  ;;  %v750_v31 = vshll.u32 %v587_v25, 16  ;;  %v595_v7 = vld [vmem:[%s10636_s8 + $0x68] sm:$0x1] }
  0x80   : > { %9367 = vmatpush3.bf16.msra.mxu1 %v10028_v22  ;;  %v682_v41 = vrot.slane %v681_v32, 4  ;;  %v701_v51 = vrot.slane %v699_v44, 4  ;;  %9314 = vmatprep.mubr.bf16.mxu1 %v8183_v39  ;;  %v10032_v22 = vld [vmem:[%s10636_s8 + $0x54] sm:$0xff]   ;;  %v756_v32 = vshll.u32 %v588_v26, 16  ;;  %v760_v34 = vshrl.u32 %v588_v26, 16 }
  0x81   : > { %9368 = vmatprep.subr.bf16.mxu1 %v10030_v33  ;;  %v715_v3 = vor.u32 %v714_v57, %v710_v56  ;;  %v739_v20 = vor.u32 %v738_v14, %v734_v13  ;;  %v749_v37 = vrot.slane %v747_v30, 4  ;;  %v752_v38 = vrot.slane %v750_v31, 5 }
  0x82   : > { %9333 = vmatpush3.bf16.msra.mxu0 %v10021_v53  ;;  %v687_v49 = vsel %vm10647_vm2, %v682_v41, %v686_v29  ;;  %v10027_v53 = vld [vmem:[%s10636_s8 + $0x3c] sm:$0xff]   ;;  %v705_v2 = vor.u32 %v704_v55, %v701_v51  ;;  %v589_v29 = vld [vmem:[%s10636_s8 + $0x50] sm:$0x1]  ;;  %v758_v39 = vrot.slane %v756_v32, 5  ;;  %v590_v41 = vld [vmem:[%s10636_s8 + $0x54] sm:$0xf] }
  0x83   : > { %9334 = vmatprep.subr.bf16.mxu0 %v10024_v9  ;;  %v8184_v60 = vcombine.low %v687_v49, %v697_v54  ;;  %v716_v11 = vrot.slane %v715_v3, 4  ;;  %v762_v44 = vrot.slane %v760_v34, 4  ;;  %v753_v48 = vor.u32 %v752_v38, %v749_v37  ;;  %v593_v3 = vld [vmem:[%s10636_s8 + $0x60] sm:$0xf]  ;;  %v598_v37 = vld [vmem:[%s10636_s8 + $0x74] sm:$0x1] }
  0x84   : > { %9369 = vmatpush3.bf16.msra.mxu1 %v10030_v33  ;;  %v706_v10 = vrot.slane %v705_v2, 4  ;;  %v771_v49 = vshrl.u32 %v590_v41, 16  ;;  %v780_v51 = vshll.u32 %v591_v46, 16  ;;  %v784_v54 = vshrl.u32 %v591_v46, 16  ;;  %v1124_v46 = vld [vmem:[%s10636_s8 + $0x14] sm:$0x1] }
  0x85   : > { %9279 = vmatmul.mubr.bf16.gmra.mxu0 %v10023_v23  ;;  %9370 = vmatprep.subr.bf16.mxu1 %v10034_v59  ;;  %v721_v16 = vsel %vm10647_vm2, %v716_v11, %v720_v62  ;;  %v730_v23 = vrot.slane %v729_v17, 4  ;;  %v790_v55 = vshll.u32 %v592_v47, 16  ;;  %v795_v8 = vshrl.u32 %v593_v3, 16 }
  0x86   : > { %9335 = vmatpush3.bf16.msra.mxu0 %v10024_v9  ;;  %9282 = vmatprep.mubr.bf16.mxu0 %v10025_v27  ;;  %v10033_v9 = vld [vmem:[#allocation7 + $0x90] sm:$0xff]   ;;  %v711_v15 = vsel %vm10647_vm2, %v706_v10, %v710_v56  ;;  %v740_v27 = vrot.slane %v739_v20, 4  ;;  %v754_v56 = vrot.slane %v753_v48, 4  ;;  %v773_v57 = vrot.slane %v771_v49, 4  ;;  %v1119_v10 = vld [vmem:[%s10636_s8] sm:$0xe] }
  0x87   : > { %9336 = vmatprep.subr.bf16.mxu0 %v10026_v35  ;;  %9315 = vmatmul.mubr.bf16.gmra.mxu1 %v8184_v60  ;;  %v8185_v19 = vcombine.low %v711_v15, %v721_v16  ;;  %v735_v33 = vsel %vm10647_vm2, %v730_v23, %v734_v13  ;;  %v786_v62 = vrot.slane %v784_v54, 4  ;;  %v792_v63 = vrot.slane %v790_v55, 5  ;;  %v1120_v15 = vld [vmem:[%s10636_s8 + $0x4] sm:$0xf]  ;;  %v10711_v16 = vld [vmem:[#allocation7 + $0x138] sm:$0xff]  }
  0x88   : > { %9371 = vmatpush3.bf16.msra.mxu1 %v10034_v59  ;;  %v745_v36 = vsel %vm10647_vm2, %v740_v27, %v744_v21  ;;  %v782_v59 = vrot.slane %v780_v51, 5  ;;  %v759_v1 = vsel %vm10647_vm2, %v754_v56, %v758_v39  ;;  %v804_v13 = vshll.u32 %v594_v4, 16  ;;  %v1121_v21 = vld [vmem:[%s10636_s8 + $0x8] sm:$0x1]  ;;  %v596_v27 = vld [vmem:[%s10636_s8 + $0x6c] sm:$0xf] }
  0x89   : > { %9372 = vmatprep.subr.bf16.mxu1 %v10036_v18  ;;  %9318 = vmatprep.mubr.bf16.mxu1 %v8185_v19  ;;  %v8186_v43 = vcombine.low %v735_v33, %v745_v36  ;;  %v808_v14 = vshrl.u32 %v594_v4, 16  ;;  %v814_v20 = vshll.u32 %v595_v7, 16  ;;  %v12137_v25 = vmov 0  ;;  %v597_v33 = vld [vmem:[%s10636_s8 + $0x70] sm:$0xf] }
  0x8a   : > { %9337 = vmatpush3.bf16.msra.mxu0 %v10026_v35  ;;  %v766_v35 = vshll.u32 %v589_v29, 16  ;;  %v787_v6 = vor.u32 %v786_v62, %v782_v59  ;;  %v806_v23 = vrot.slane %v804_v13, 5  ;;  %v12138_v25 = vsel %vm10718_vm5, 4294967295, %v12137_v25  ;;  %v1125_v4 = vld [vmem:[%s10636_s8 + $0x18] sm:$0xe] }
  0x8b   : > { %9338 = vmatprep.subr.bf16.mxu0 %v10029_v50  ;;  %12139 = vst [vmem:[#allocation21_spill] sm:$0xff] %v12138_v25  ;;  %v8199_v26 = vrot.slane %v1119_v10, 9  ;;  %v816_v31 = vrot.slane %v814_v20, 5  ;;  %v1184_v32 = vrot.slane %v1120_v15, 5  ;;  %v1187_v36 = vrot.slane %v1121_v21, 5 }
  0x8c   : > { %9373 = vmatpush3.bf16.msra.mxu1 %v10036_v18  ;;  %v768_v45 = vrot.slane %v766_v35, 5  ;;  %v788_v17 = vrot.slane %v787_v6, 4  ;;  %v797_v18 = vrot.slane %v795_v8, 4  ;;  %v819_v38 = vshrl.u32 %v596_v27, 16  ;;  %v1128_v15 = vld [vmem:[%s10636_s8 + $0x24] sm:$0xe] }
  0x8d   : > { %9283 = vmatmul.mubr.bf16.gmra.mxu0 %v10027_v53  ;;  %9374 = vmatprep.subr.bf16.mxu1 %v10039_v42  ;;  %v763_v53 = vor.u32 %v762_v44, %v758_v39  ;;  %v1122_v39 = vld [vmem:[%s10636_s8 + $0xc] sm:$0xe]  ;;  %v822_v44 = vshll.u32 %v596_v27, 16  ;;  %v828_v49 = vshll.u32 %v597_v33, 16  ;;  %v838_v54 = vshll.u32 %v598_v37, 16 }
  0x8e   : > { %9339 = vmatpush3.bf16.msra.mxu0 %v10029_v50  ;;  %9286 = vmatprep.mubr.bf16.mxu0 %v10031_v61  ;;  %v774_v50 = vshll.u32 %v590_v41, 16  ;;  %v10038_v61 = vld [vmem:[%s10636_s8 + $0x6c] sm:$0xff]   ;;  %v793_v29 = vsel %vm10647_vm2, %v788_v17, %v792_v63  ;;  %v821_v48 = vrot.slane %v819_v38, 4  ;;  %v8201_v10 = vrot.slane %v1125_v4, 9  ;;  %v1129_v17 = vld [vmem:[%s10636_s8 + $0x28] sm:$0xf] }
  0x8f   : > { %9340 = vmatprep.subr.bf16.mxu0 %v10033_v9  ;;  %9319 = vmatmul.mubr.bf16.gmra.mxu1 %v8186_v43  ;;  %v764_v60 = vrot.slane %v763_v53, 4  ;;  %v1186_v43 = vrot.slane %v1184_v32, 4  ;;  %v824_v53 = vrot.slane %v822_v44, 5  ;;  %v840_v63 = vrot.slane %v838_v54, 5  ;;  %v1130_v20 = vld [vmem:[%s10636_s8 + $0x2c] sm:$0x1] }
  0x90   : > { %v776_v58 = vrot.slane %v774_v50, 5  ;;  %9375 = vmatpush3.bf16.msra.mxu1 %v10039_v42  ;;  %v1185_v42 = vsel %vm10718_vm5, %v8199_v26, %v1184_v32  ;;  %v832_v50 = vshrl.u32 %v597_v33, 16  ;;  %v8202_v21 = vrot.slane %v1128_v15, 9  ;;  %v10044_v26 = vld [vmem:[#allocation7 + $0x130] sm:$0xff]   ;;  %v1131_v33 = vld [vmem:[%s10636_s8 + $0x30] sm:$0xe] }
  0x91   : > { %v769_v5 = vsel %vm10647_vm2, %v764_v60, %v768_v45  ;;  %9376 = vmatprep.subr.bf16.mxu1 %v10041_v0  ;;  %v1123_v45 = vld [vmem:[%s10636_s8 + $0x10] sm:$0xf]  ;;  %v825_v60 = vor.u32 %v824_v53, %v821_v48  ;;  %v1133_v37 = vld [vmem:[%s10636_s8 + $0x38] sm:$0x1]  ;;  %v8203_v38 = vrot.slane %v1131_v33, 9  ;;  %v10056_v15 = vld [vmem:[#allocation7 + $0x110] sm:$0xff]  }
  0x92   : > { %9341 = vmatpush3.bf16.msra.mxu0 %v10033_v9  ;;  %v777_v2 = vor.u32 %v776_v58, %v773_v57  ;;  %v798_v9 = vshll.u32 %v593_v3, 16  ;;  %v8187_v11 = vcombine.low %v759_v1, %v769_v5  ;;  %v830_v57 = vrot.slane %v828_v49, 5  ;;  %v1126_v5 = vld [vmem:[%s10636_s8 + $0x1c] sm:$0xf]  ;;  %v1140_v4 = vld [vmem:[%s10636_s8 + $0x54] sm:$0xe] }
  0x93   : > { %9342 = vmatprep.subr.bf16.mxu0 %v10035_v24  ;;  %v834_v58 = vrot.slane %v832_v50, 4  ;;  %v1194_v1 = vrot.slane %v1124_v46, 5  ;;  %v826_v3 = vrot.slane %v825_v60, 4  ;;  %v1198_v13 = vrot.slane %v1126_v5, 5  ;;  %v1134_v44 = vld [vmem:[%s10636_s8 + $0x3c] sm:$0xe] }
  0x94   : > { %v778_v12 = vrot.slane %v777_v2, 4  ;;  %v800_v19 = vrot.slane %v798_v9, 5  ;;  %9377 = vmatpush3.bf16.msra.mxu1 %v10041_v0  ;;  %9322 = vmatprep.mubr.bf16.mxu1 %v8187_v11  ;;  %v1191_v0 = vrot.slane %v1123_v45, 5  ;;  %v10045_v2 = vld [vmem:[#allocation7 + $0xc0] sm:$0xff]   ;;  %v1127_v9 = vld [vmem:[%s10636_s8 + $0x20] sm:$0x1] }
  0x95   : > { %9287 = vmatmul.mubr.bf16.gmra.mxu0 %v10032_v22  ;;  %v835_v62 = vor.u32 %v834_v58, %v830_v57  ;;  %v10046_v11 = vld [vmem:[%s10636_s8 + $0xc] sm:$0xff]   ;;  %v1199_v27 = vsel %vm10718_vm5, %v8201_v10, %v1198_v13  ;;  %v1135_v46 = vld [vmem:[%s10636_s8 + $0x40] sm:$0xf]  ;;  %v8204_v48 = vrot.slane %v1134_v44, 9  ;;  %v10049_v53 = vld [vmem:[#allocation7 + $0x120] sm:$0xff]  }
  0x96   : > { %9290 = vmatprep.mubr.bf16.mxu0 %v10037_v28  ;;  %9343 = vmatpush3.bf16.msra.mxu0 %v10035_v24  ;;  %v783_v22 = vsel %vm10647_vm2, %v778_v12, %v782_v59  ;;  %v810_v24 = vrot.slane %v808_v14, 4  ;;  %v10043_v28 = vld [vmem:[#allocation7 + $0xc8] sm:$0xff]   ;;  %v801_v30 = vor.u32 %v800_v19, %v797_v18  ;;  %v1193_v8 = vrot.slane %v1191_v0, 4  ;;  %v10054_v60 = vld [vmem:[#allocation7 + $0x170] sm:$0xff]  }
  0x97   : > { %9344 = vmatprep.subr.bf16.mxu0 %v10040_v52  ;;  %v8188_v34 = vcombine.low %v783_v22, %v793_v29  ;;  %9378 = vmatprep.subr.bf16.mxu1 %v10043_v28  ;;  %v836_v6 = vrot.slane %v835_v62, 4  ;;  %v831_v12 = vsel %vm10647_vm2, %v826_v3, %v830_v57  ;;  %v1201_v14 = vrot.slane %v1127_v9, 5  ;;  %v10052_v57 = vld [vmem:[#allocation7 + $0x178] sm:$0xff]   ;;  %v1138_v62 = vld [vmem:[%s10636_s8 + $0x4c] sm:$0xf] }
  0x98   : > { %v811_v35 = vor.u32 %v810_v24, %v806_v23  ;;  %v802_v41 = vrot.slane %v801_v30, 4  ;;  %9379 = vmatpush3.bf16.msra.mxu1 %v10043_v28  ;;  %v1195_v19 = vsel %vm10718_vm5, %v1193_v8, %v1194_v1  ;;  %v1205_v22 = vrot.slane %v1129_v17, 5  ;;  %v1142_v8 = vld [vmem:[%s10636_s8 + $0x5c] sm:$0x1]  ;;  %v1146_v33 = vld [vmem:[%s10636_s8 + $0x6c] sm:$0xe] }
  0x99   : > { %9323 = vmatmul.mubr.bf16.gmra.mxu1 %v8188_v34  ;;  %9380 = vmatprep.subr.bf16.mxu1 %v10045_v2  ;;  %v841_v18 = vsel %vm10647_vm2, %v836_v6, %v840_v63  ;;  %v1200_v28 = vrot.slane %v1198_v13, 4  ;;  %v1208_v30 = vrot.slane %v1130_v20, 5  ;;  %v1132_v34 = vld [vmem:[%s10636_s8 + $0x34] sm:$0xf]  ;;  %v1219_v50 = vrot.slane %v1135_v46, 5 }
  0x9a   : > { %9345 = vmatpush3.bf16.msra.mxu0 %v10040_v52  ;;  %v812_v47 = vrot.slane %v811_v35, 4  ;;  %v807_v51 = vsel %vm10647_vm2, %v802_v41, %v806_v23  ;;  %v1188_v52 = vsel %vm10718_vm5, %v1186_v43, %v1187_v36  ;;  %v8190_v23 = vcombine.low %v831_v12, %v841_v18  ;;  %v10047_v41 = vld [vmem:[%s10636_s8 + $0x18] sm:$0xff]   ;;  %v1139_v63 = vld [vmem:[%s10636_s8 + $0x50] sm:$0x1] }
  0x9b   : > { %9402 = vmatprep.subr.bf16.mxu0 %v10711_v16  ;;  %v8209_v56 = vcombine.low %v1185_v42, %v1188_v52  ;;  %v1207_v29 = vrot.slane %v1205_v22, 4  ;;  %v1206_v32 = vsel %vm10718_vm5, %v8202_v21, %v1205_v22  ;;  %v10048_v42 = vld [vmem:[#allocation7 + $0x128] sm:$0xff]   ;;  %v1215_v43 = vrot.slane %v1133_v37, 5  ;;  %v10051_v6 = vld [vmem:[%s10636_s8 + $0x30] sm:$0xff]  }
  0x9c   : > { %v817_v55 = vsel %vm10647_vm2, %v812_v47, %v816_v31  ;;  %9381 = vmatpush3.bf16.msra.mxu1 %v10045_v2  ;;  %v1202_v31 = vsel %vm10718_vm5, %v1200_v28, %v1201_v14  ;;  %v1136_v47 = vld [vmem:[%s10636_s8 + $0x44] sm:$0x1]  ;;  %v1220_v58 = vsel %vm10718_vm5, %v8204_v48, %v1219_v50  ;;  %v1226_v2 = vrot.slane %v1138_v62, 5  ;;  %v10055_v14 = vld [vmem:[%s10636_s8 + $0x3c] sm:$0xff]   ;;  %v1148_v37 = vld [vmem:[%s10636_s8 + $0x74] sm:$0x1] }
  0x9d   : > { %9291 = vmatmul.mubr.bf16.gmra.mxu0 %v10038_v61  ;;  %v8189_v59 = vcombine.low %v807_v51, %v817_v55  ;;  %v8200_v61 = vrot.slane %v1122_v39, 9  ;;  %v8211_v35 = vcombine.low %v1199_v27, %v1202_v31  ;;  %v1209_v36 = vsel %vm10718_vm5, %v1207_v29, %v1208_v30  ;;  %9438 = vmatprep.subr.bf16.mxu1 %v10052_v57  ;;  %v10060_v27 = vld [vmem:[#allocation7 + $0x160] sm:$0xff]   ;;  %v1144_v28 = vld [vmem:[%s10636_s8 + $0x64] sm:$0xf]  ;;  %v1145_v29 = vld [vmem:[%s10636_s8 + $0x68] sm:$0x1] }
  0x9e   : > { %9346 = vmatprep.mubr.bf16.mxu0 %v8209_v56  ;;  %v1212_v39 = vrot.slane %v1132_v34, 5  ;;  %v8212_v49 = vcombine.low %v1206_v32, %v1209_v36  ;;  %v1222_v51 = vrot.slane %v1136_v47, 5  ;;  %v1221_v55 = vrot.slane %v1219_v50, 4  ;;  %v10050_v56 = vld [vmem:[%s10636_s8 + $0x24] sm:$0xff]   ;;  %v1147_v34 = vld [vmem:[%s10636_s8 + $0x70] sm:$0xf] }
  0x9f   : > { %9326 = vmatprep.mubr.bf16.mxu1 %v8189_v59  ;;  %v1192_v7 = vsel %vm10718_vm5, %v8200_v61, %v1191_v0  ;;  %v1137_v61 = vld [vmem:[%s10636_s8 + $0x48] sm:$0xe]  ;;  %v10053_v0 = vld [vmem:[#allocation7 + $0x118] sm:$0xff]   ;;  %v1229_v3 = vrot.slane %v1139_v63, 5  ;;  %v8206_v9 = vrot.slane %v1140_v4, 9  ;;  %v1236_v13 = vrot.slane %v1142_v8, 5 }
  0xa0   : > { %v8210_v24 = vcombine.low %v1192_v7, %v1195_v19  ;;  %v1213_v45 = vsel %vm10718_vm5, %v8203_v38, %v1212_v39  ;;  %v1223_v59 = vsel %vm10718_vm5, %v1221_v55, %v1222_v51  ;;  %v8205_v1 = vrot.slane %v1137_v61, 9  ;;  %v1141_v7 = vld [vmem:[%s10636_s8 + $0x58] sm:$0xf]  ;;  %v10058_v19 = vld [vmem:[#allocation7 + $0x168] sm:$0xff]   ;;  %v10065_v50 = vld [vmem:[#allocation7 + $0x150] sm:$0xff]  }
  0xa1   : > { %9327 = vmatmul.mubr.bf16.gmra.mxu1 %v8190_v23  ;;  %v8214_v5 = vcombine.low %v1220_v58, %v1223_v59  ;;  %v1233_v12 = vrot.slane %v1141_v7, 5  ;;  %v10059_v23 = vld [vmem:[#allocation7 + $0x108] sm:$0xff]   ;;  %v1240_v31 = vrot.slane %v1144_v28, 5  ;;  %v1243_v32 = vrot.slane %v1145_v29, 5  ;;  %v10064_v47 = vld [vmem:[#allocation7 + $0x100] sm:$0xff]   ;;  %v10816_v61 = vld [vmem:[#allocation7 + $0x1b8] sm:$0xff]  }
  0xa2   : > { %9382 = vmatprep.mubr.bf16.mxu1 %v10046_v11  ;;  %v1227_v10 = vsel %vm10718_vm5, %v8205_v1, %v1226_v2  ;;  %v1228_v11 = vrot.slane %v1226_v2, 4  ;;  %v8208_v38 = vrot.slane %v1146_v33, 9  ;;  %v8267_v51 = vld [vmem:[%s10636_s8 + $0xc] sm:$0xf]  ;;  %v8271_v1 = vld [vmem:[%s10636_s8 + $0x1c] sm:$0xf] }
  0xa3   : > { %v1235_v18 = vrot.slane %v1233_v12, 4  ;;  %v1234_v21 = vsel %vm10718_vm5, %v8206_v9, %v1233_v12  ;;  %v1881_v55 = vshrl.u32 %v8267_v51, 16  ;;  %v8272_v2 = vld [vmem:[%s10636_s8 + $0x20] sm:$0x1]  ;;  %v1914_v9 = vshll.u32 %v8271_v1, 16 }
  0xa4   : > { %v1230_v17 = vsel %vm10718_vm5, %v1228_v11, %v1229_v3  ;;  %v10067_v11 = vld [vmem:[%s10636_s8 + $0x6c] sm:$0xff]   ;;  %v8273_v33 = vld [vmem:[%s10636_s8 + $0x24] sm:$0xf] }
  0xa5   : > { %9347 = vmatmul.mubr.bf16.vlgmr.msra.gmra.mxu0 %v8210_v24  ;;  %v8215_v20 = vcombine.low %v1227_v10, %v1230_v17  ;;  %v1237_v22 = vsel %vm10718_vm5, %v1235_v18, %v1236_v13  ;;  %v1143_v24 = vld [vmem:[%s10636_s8 + $0x60] sm:$0xe]  ;;  %v1883_v63 = vrot.slane %v1881_v55, 4  ;;  %v1918_v10 = vshrl.u32 %v8271_v1, 16 }
  0xa6   : > { %9403 = vmatpush3.bf16.msra.mxu0 %v10711_v16  ;;  %9350 = vmatprep.mubr.bf16.mxu0 %v8211_v35  ;;  %v1214_v16 = vrot.slane %v1212_v39, 4  ;;  %v8207_v30 = vrot.slane %v1143_v24, 9  ;;  %v10061_v35 = vld [vmem:[%s10636_s8 + $0x54] sm:$0xff]   ;;  %v8216_v36 = vcombine.low %v1234_v21, %v1237_v22  ;;  %v1247_v39 = vrot.slane %v1147_v34, 5  ;;  %v10069_v22 = vld [vmem:[#allocation7 + $0x148] sm:$0xff]  }
  0xa7   : > { %9404 = vmatprep.subr.bf16.mxu0 %v10044_v26  ;;  %v1916_v18 = vrot.slane %v1914_v9, 5  ;;  %v8274_v34 = vld [vmem:[%s10636_s8 + $0x28] sm:$0xf] }
  0xa8   : > { %v1216_v52 = vsel %vm10718_vm5, %v1214_v16, %v1215_v43  ;;  %v1250_v43 = vrot.slane %v1148_v37, 5  ;;  %v1249_v44 = vrot.slane %v1247_v39, 4  ;;  %v10063_v16 = vld [vmem:[#allocation7 + $0x158] sm:$0xff]   ;;  %v1248_v48 = vsel %vm10718_vm5, %v8208_v38, %v1247_v39 }
  0xa9   : > { %v8213_v54 = vcombine.low %v1213_v45, %v1216_v52  ;;  %9383 = vmatmul.mubr.bf16.vlgmr.msra.gmra.mxu1 %v10047_v41  ;;  %v1241_v41 = vsel %vm10718_vm5, %v8207_v30, %v1240_v31  ;;  %v10062_v52 = vld [vmem:[%s10636_s8 + $0x60] sm:$0xff]   ;;  %v1929_v38 = vshrl.u32 %v8273_v33, 16  ;;  %v1932_v39 = vshll.u32 %v8273_v33, 16 }
  0xaa   : > { %9405 = vmatpush3.bf16.msra.mxu0 %v10044_v26  ;;  %9386 = vmatprep.mubr.bf16.mxu1 %v10050_v56  ;;  %v10057_v26 = vld [vmem:[%s10636_s8 + $0x48] sm:$0xff]   ;;  %v1884_v56 = vshll.u32 %v8267_v51, 16 }
  0xab   : > { %9406 = vmatprep.subr.bf16.mxu0 %v10048_v42  ;;  %9439 = vmatpush3.bf16.msra.mxu1 %v10052_v57 }
  0xac   : > { %9440 = vmatprep.subr.bf16.mxu1 %v10054_v60 }
  0xad   : > { %9351 = vmatmul.mubr.bf16.gmra.mxu0 %v8212_v49  ;;  %v1251_v49 = vsel %vm10718_vm5, %v1249_v44, %v1250_v43  ;;  %v10070_v44 = vld [vmem:[#allocation7 + $0x1b0] sm:$0xff]  }
  0xae   : > { %9407 = vmatpush3.bf16.msra.mxu0 %v10048_v42  ;;  %9354 = vmatprep.mubr.bf16.mxu0 %v8213_v54  ;;  %v1242_v42 = vrot.slane %v1240_v31, 4  ;;  %v8269_v54 = vld [vmem:[%s10636_s8 + $0x14] sm:$0x1]  ;;  %v8218_v62 = vcombine.low %v1248_v48, %v1251_v49  ;;  %v10068_v31 = vld [vmem:[%s10636_s8 + $0x78] sm:$0xff]   ;;  %v1931_v48 = vrot.slane %v1929_v38, 4  ;;  %v1934_v49 = vrot.slane %v1932_v39, 5 }
  0xaf   : > { %9408 = vmatprep.subr.bf16.mxu0 %v10049_v53  ;;  %9441 = vmatpush3.bf16.msra.mxu1 %v10054_v60  ;;  %v1900_v59 = vshll.u32 %v8269_v54, 16  ;;  %v8270_v60 = vld [vmem:[%s10636_s8 + $0x18] sm:$0xf]  ;;  %v10075_v38 = vld [vmem:[#allocation7 + $0x198] sm:$0xff]  }
  0xb0   : > { %9442 = vmatprep.subr.bf16.mxu1 %v10058_v19  ;;  %v1244_v45 = vsel %vm10718_vm5, %v1242_v42, %v1243_v32  ;;  %v1908_v8 = vshll.u32 %v8270_v60, 16  ;;  %v10071_v32 = vld [vmem:[#allocation7 + $0x140] sm:$0xff]   ;;  %v8277_v42 = vld [vmem:[%s10636_s8 + $0x34] sm:$0xf] }
  0xb1   : > { %9387 = vmatmul.mubr.bf16.gmra.mxu1 %v10051_v6  ;;  %v8217_v46 = vcombine.low %v1241_v41, %v1244_v45  ;;  %v1905_v6 = vshrl.u32 %v8270_v60, 16  ;;  %v8276_v41 = vld [vmem:[%s10636_s8 + $0x30] sm:$0xf]  ;;  %v1938_v45 = vshll.u32 %v8274_v34, 16 }
  0xb2   : > { %9409 = vmatpush3.bf16.msra.mxu0 %v10049_v53  ;;  %9390 = vmatprep.mubr.bf16.mxu1 %v10055_v14  ;;  %v8268_v53 = vld [vmem:[%s10636_s8 + $0x10] sm:$0xf]  ;;  %v1924_v14 = vshll.u32 %v8272_v2, 16  ;;  %v1910_v17 = vrot.slane %v1908_v8, 5  ;;  %v1956_v51 = vshll.u32 %v8276_v41, 16 }
  0xb3   : > { %9410 = vmatprep.subr.bf16.mxu0 %v10053_v0  ;;  %9443 = vmatpush3.bf16.msra.mxu1 %v10058_v19  ;;  %v1890_v57 = vshll.u32 %v8268_v53, 16  ;;  %v1894_v58 = vshrl.u32 %v8268_v53, 16  ;;  %v1907_v13 = vrot.slane %v1905_v6, 4  ;;  %v1920_v19 = vrot.slane %v1918_v10, 4  ;;  %v10072_v6 = vld [vmem:[#allocation7 + $0x1a8] sm:$0xff]  }
  0xb4   : > { %9444 = vmatprep.subr.bf16.mxu1 %v10060_v27  ;;  %v1926_v21 = vrot.slane %v1924_v14, 5  ;;  %v1940_v53 = vrot.slane %v1938_v45, 5  ;;  %v1958_v60 = vrot.slane %v1956_v51, 5  ;;  %v8319_v10 = vld [vmem:[%s10636_s8 + $0x1c] sm:$0xf] }
  0xb5   : > { %9355 = vmatmul.mubr.bf16.gmra.mxu0 %v8214_v5  ;;  %v1892_v3 = vrot.slane %v1890_v57, 5  ;;  %v1896_v4 = vrot.slane %v1894_v58, 4  ;;  %v1902_v5 = vrot.slane %v1900_v59, 5  ;;  %v1911_v24 = vor.u32 %v1910_v17, %v1907_v13  ;;  %v8316_v57 = vld [vmem:[%s10636_s8 + $0x10] sm:$0xf] }
  0xb6   : > { %9411 = vmatpush3.bf16.msra.mxu0 %v10053_v0  ;;  %9358 = vmatprep.mubr.bf16.mxu0 %v8215_v20  ;;  %v1886_v0 = vrot.slane %v1884_v56, 5  ;;  %v1962_v56 = vshll.u32 %v8277_v42, 16  ;;  %v1935_v58 = vor.u32 %v1934_v49, %v1931_v48  ;;  %v2459_v9 = vrot.slane %v8316_v57, 5  ;;  %v8320_v14 = vld [vmem:[%s10636_s8 + $0x20] sm:$0x1] }
  0xb7   : > { %9412 = vmatprep.subr.bf16.mxu0 %v10056_v15  ;;  %9445 = vmatpush3.bf16.msra.mxu1 %v10060_v27  ;;  %v1897_v12 = vor.u32 %v1896_v4, %v1892_v3  ;;  %v1912_v29 = vrot.slane %v1911_v24, 4  ;;  %v2469_v24 = vrot.slane %v8320_v14, 5  ;;  %v8283_v45 = vld [vmem:[%s10636_s8 + $0x4c] sm:$0xf]  ;;  %v8284_v49 = vld [vmem:[%s10636_s8 + $0x50] sm:$0x1] }
  0xb8   : > { %9446 = vmatprep.subr.bf16.mxu1 %v10063_v16  ;;  %v1887_v7 = vor.u32 %v1886_v0, %v1883_v63  ;;  %v8317_v63 = vld [vmem:[%s10636_s8 + $0x14] sm:$0x1]  ;;  %v1964_v2 = vrot.slane %v1962_v56, 5  ;;  %v10076_v56 = vld [vmem:[#allocation7 + $0x1f0] sm:$0xff]  }
  0xb9   : > { %9391 = vmatmul.mubr.bf16.gmra.mxu1 %v10057_v26  ;;  %v1898_v20 = vrot.slane %v1897_v12, 4  ;;  %v1921_v26 = vor.u32 %v1920_v19, %v1916_v18  ;;  %v10841_v0 = vld [vmem:[#allocation7 + $0x1f8] sm:$0xff]   ;;  %v2462_v13 = vrot.slane %v8317_v63, 5  ;;  %v10077_v63 = vld [vmem:[#allocation7 + $0x190] sm:$0xff]  }
  0xba   : > { %9413 = vmatpush3.bf16.msra.mxu0 %v10056_v15  ;;  %9394 = vmatprep.mubr.bf16.mxu1 %v10061_v35  ;;  %v1888_v15 = vrot.slane %v1887_v7, 4  ;;  %v8275_v35 = vld [vmem:[%s10636_s8 + $0x2c] sm:$0x1]  ;;  %v1936_v7 = vrot.slane %v1935_v58, 4 }
  0xbb   : > { %9414 = vmatprep.subr.bf16.mxu0 %v10059_v23  ;;  %9447 = vmatpush3.bf16.msra.mxu1 %v10063_v16  ;;  %v1903_v27 = vsel %vm10647_vm2, %v1898_v20, %v1902_v5  ;;  %v1922_v30 = vrot.slane %v1921_v26, 4  ;;  %v1942_v16 = vshrl.u32 %v8274_v34, 16  ;;  %v8318_v5 = vld [vmem:[%s10636_s8 + $0x18] sm:$0xe]  ;;  %v8279_v26 = vld [vmem:[%s10636_s8 + $0x3c] sm:$0xf] }
  0xbc   : > { %9448 = vmatprep.subr.bf16.mxu1 %v10065_v50  ;;  %v1941_v17 = vsel %vm10647_vm2, %v1936_v7, %v1940_v53  ;;  %v1977_v33 = vshrl.u32 %v8279_v26, 16 }
  0xbd   : > { %9359 = vmatmul.mubr.bf16.gmra.mxu0 %v8216_v36  ;;  %v1917_v36 = vsel %vm10647_vm2, %v1912_v29, %v1916_v18  ;;  %v1927_v37 = vsel %vm10647_vm2, %v1922_v30, %v1926_v21  ;;  %v1944_v54 = vrot.slane %v1942_v16, 4 }
  0xbe   : > { %9415 = vmatpush3.bf16.msra.mxu0 %v10059_v23  ;;  %9362 = vmatprep.mubr.bf16.mxu0 %v8217_v46  ;;  %v1893_v23 = vsel %vm10647_vm2, %v1888_v15, %v1892_v3  ;;  %v8298_v43 = vcombine.low %v1917_v36, %v1927_v37  ;;  %v1948_v46 = vshll.u32 %v8275_v35, 16  ;;  %v8346_v15 = vrot.slane %v8318_v5, 9  ;;  %v8324_v5 = vld [vmem:[%s10636_s8 + $0x30] sm:$0xe] }
  0xbf   : > { %9416 = vmatprep.subr.bf16.mxu0 %v10064_v47  ;;  %9449 = vmatpush3.bf16.msra.mxu1 %v10065_v50  ;;  %v8297_v28 = vcombine.low %v1893_v23, %v1903_v27  ;;  %v1953_v50 = vshrl.u32 %v8276_v41, 16  ;;  %v1945_v1 = vor.u32 %v1944_v54, %v1940_v53  ;;  %v2466_v23 = vrot.slane %v8319_v10, 5  ;;  %v10073_v27 = vld [vmem:[#allocation7 + $0x1a0] sm:$0xff]   ;;  %v10078_v10 = vld [vmem:[#allocation7 + $0x1e8] sm:$0xff]  }
  0xc0   : > { %9450 = vmatprep.subr.bf16.mxu1 %v10069_v22  ;;  %v1950_v55 = vrot.slane %v1948_v46, 5  ;;  %v1980_v37 = vshll.u32 %v8279_v26, 16 }
  0xc1   : > { %9395 = vmatmul.mubr.bf16.gmra.mxu1 %v10062_v52  ;;  %v8315_v52 = vld [vmem:[%s10636_s8 + $0xc] sm:$0xe]  ;;  %v1955_v59 = vrot.slane %v1953_v50, 4  ;;  %v2467_v35 = vsel %vm10718_vm5, %v8346_v15, %v2466_v23  ;;  %v2468_v36 = vrot.slane %v2466_v23, 4  ;;  %v8321_v50 = vld [vmem:[%s10636_s8 + $0x24] sm:$0xe] }
  0xc2   : > { %9417 = vmatpush3.bf16.msra.mxu0 %v10064_v47  ;;  %9398 = vmatprep.mubr.bf16.mxu1 %v10067_v11  ;;  %v8278_v47 = vld [vmem:[%s10636_s8 + $0x38] sm:$0x1]  ;;  %v8345_v4 = vrot.slane %v8315_v52, 9  ;;  %v1946_v11 = vrot.slane %v1945_v1, 4  ;;  %v8348_v23 = vrot.slane %v8324_v5, 9 }
  0xc3   : > { %9474 = vmatprep.subr.bf16.mxu0 %v10816_v61  ;;  %9451 = vmatpush3.bf16.msra.mxu1 %v10069_v22  ;;  %v1972_v3 = vshll.u32 %v8278_v47, 16  ;;  %v1959_v8 = vor.u32 %v1958_v60, %v1955_v59  ;;  %v2461_v22 = vrot.slane %v2459_v9, 4  ;;  %v2470_v46 = vsel %vm10718_vm5, %v2468_v36, %v2469_v24  ;;  %v8326_v15 = vld [vmem:[%s10636_s8 + $0x38] sm:$0x1] }
  0xc4   : > { %9452 = vmatprep.subr.bf16.mxu1 %v10071_v32  ;;  %v2460_v20 = vsel %vm10718_vm5, %v8345_v4, %v2459_v9  ;;  %v1951_v21 = vsel %vm10647_vm2, %v1946_v11, %v1950_v55  ;;  %v1982_v47 = vrot.slane %v1980_v37, 5  ;;  %v8356_v51 = vcombine.low %v2467_v35, %v2470_v46  ;;  %v8322_v55 = vld [vmem:[%s10636_s8 + $0x28] sm:$0xf]  ;;  %v8325_v9 = vld [vmem:[%s10636_s8 + $0x34] sm:$0xf]  ;;  %v10082_v46 = vld [vmem:[#allocation7 + $0x180] sm:$0xff]  }
  0xc5   : > { %9363 = vmatmul.mubr.bf16.gmra.mxu0 %v8218_v62  ;;  %v1966_v62 = vshrl.u32 %v8277_v42, 16  ;;  %v1974_v12 = vrot.slane %v1972_v3, 5  ;;  %v1960_v18 = vrot.slane %v1959_v8, 4  ;;  %v2463_v34 = vsel %vm10718_vm5, %v2461_v22, %v2462_v13 }
  0xc6   : > { %9418 = vmatprep.mubr.bf16.mxu0 %v8297_v28  ;;  %v8299_v28 = vcombine.low %v1941_v17, %v1951_v21  ;;  %v8355_v41 = vcombine.low %v2460_v20, %v2463_v34  ;;  %v1979_v42 = vrot.slane %v1977_v33, 4  ;;  %v2010_v60 = vshll.u32 %v8283_v45, 16  ;;  %v8285_v33 = vld [vmem:[%s10636_s8 + $0x54] sm:$0xf]  ;;  %v10080_v34 = vld [vmem:[#allocation7 + $0x1e0] sm:$0xff]  }
  0xc7   : > { %9453 = vmatpush3.bf16.msra.mxu1 %v10071_v32  ;;  %v1965_v29 = vsel %vm10647_vm2, %v1960_v18, %v1964_v2  ;;  %v8281_v32 = vld [vmem:[%s10636_s8 + $0x44] sm:$0x1]  ;;  %v2014_v3 = vshrl.u32 %v8283_v45, 16  ;;  %v2020_v4 = vshll.u32 %v8284_v49, 16  ;;  %v8347_v13 = vrot.slane %v8321_v50, 9 }
  0xc8   : > { %9510 = vmatprep.subr.bf16.mxu1 %v10841_v0  ;;  %v1996_v53 = vshll.u32 %v8281_v32, 16  ;;  %v1983_v57 = vor.u32 %v1982_v47, %v1979_v42  ;;  %v2473_v14 = vrot.slane %v8322_v55, 5 }
  0xc9   : > { %9399 = vmatmul.mubr.bf16.gmra.mxu1 %v10068_v31  ;;  %v8280_v31 = vld [vmem:[%s10636_s8 + $0x40] sm:$0xf]  ;;  %v2016_v11 = vrot.slane %v2014_v3, 4 }
  0xca   : > { %v1990_v48 = vshrl.u32 %v8280_v31, 16  ;;  %9454 = vmatprep.mubr.bf16.mxu1 %v8355_v41  ;;  %v1998_v1 = vrot.slane %v1996_v53, 5  ;;  %v2474_v22 = vsel %vm10718_vm5, %v8347_v13, %v2473_v14  ;;  %v8287_v41 = vld [vmem:[%s10636_s8 + $0x5c] sm:$0x1] }
  0xcb   : > { %v2044_v50 = vshll.u32 %v8287_v41, 16 }
  0xcc   : > { %v1992_v58 = vrot.slane %v1990_v48, 4 }
  0xcd   : > { %9419 = vmatmul.mubr.bf16.vlgmr.msra.gmra.mxu0 %v8298_v43  ;;  %v1986_v43 = vshll.u32 %v8280_v31, 16 }
  0xce   : > { %9475 = vmatpush3.bf16.msra.mxu0 %v10816_v61  ;;  %v1968_v61 = vrot.slane %v1966_v62, 4  ;;  %9422 = vmatprep.mubr.bf16.mxu0 %v8299_v28  ;;  %v8323_v62 = vld [vmem:[%s10636_s8 + $0x2c] sm:$0x1]  ;;  %v2483_v28 = vrot.slane %v8326_v15, 5 }
  0xcf   : > { %9476 = vmatprep.subr.bf16.mxu0 %v10070_v44  ;;  %v1988_v52 = vrot.slane %v1986_v43, 5  ;;  %v2476_v20 = vrot.slane %v8323_v62, 5  ;;  %v2025_v43 = vshrl.u32 %v8285_v33, 16 }
  0xd0   : > { %v1969_v19 = vor.u32 %v1968_v61, %v1964_v2  ;;  %v2012_v61 = vrot.slane %v2010_v60, 5  ;;  %v2046_v60 = vrot.slane %v2044_v50, 5 }
  0xd1   : > { %9455 = vmatmul.mubr.bf16.vlgmr.msra.gmra.mxu1 %v8356_v51  ;;  %v1993_v7 = vor.u32 %v1992_v58, %v1988_v52  ;;  %v8289_v51 = vld [vmem:[%s10636_s8 + $0x64] sm:$0xf]  ;;  %v10081_v58 = vld [vmem:[#allocation7 + $0x1d8] sm:$0xff]  }
  0xd2   : > { %9477 = vmatpush3.bf16.msra.mxu0 %v10070_v44  ;;  %v1970_v30 = vrot.slane %v1969_v19, 4  ;;  %v8282_v44 = vld [vmem:[%s10636_s8 + $0x48] sm:$0xf]  ;;  %9511 = vmatpush3.bf16.msra.mxu1 %v10841_v0  ;;  %v2017_v21 = vor.u32 %v2016_v11, %v2012_v61  ;;  %v2475_v0 = vrot.slane %v2473_v14, 4  ;;  %v2058_v3 = vshll.u32 %v8289_v51, 16 }
  0xd3   : > { %9478 = vmatprep.subr.bf16.mxu0 %v10072_v6  ;;  %v2001_v54 = vshrl.u32 %v8282_v44, 16  ;;  %v2004_v59 = vshll.u32 %v8282_v44, 16  ;;  %9512 = vmatprep.subr.bf16.mxu1 %v10076_v56  ;;  %v1994_v18 = vrot.slane %v1993_v7, 4  ;;  %v2028_v44 = vshll.u32 %v8285_v33, 16  ;;  %v10083_v14 = vld [vmem:[#allocation7 + $0x1d0] sm:$0xff]  }
  0xd4   : > { %v1975_v39 = vsel %vm10647_vm2, %v1970_v30, %v1974_v12  ;;  %v2022_v12 = vrot.slane %v2020_v4, 5  ;;  %v2018_v31 = vrot.slane %v2017_v21, 4  ;;  %v2477_v32 = vsel %vm10718_vm5, %v2475_v0, %v2476_v20  ;;  %v8330_v20 = vld [vmem:[%s10636_s8 + $0x48] sm:$0xe] }
  0xd5   : > { %v8300_v16 = vcombine.low %v1965_v29, %v1975_v39  ;;  %v2003_v2 = vrot.slane %v2001_v54, 4  ;;  %v2006_v8 = vrot.slane %v2004_v59, 5  ;;  %v1999_v24 = vsel %vm10647_vm2, %v1994_v18, %v1998_v1  ;;  %v10079_v29 = vld [vmem:[#allocation7 + $0x188] sm:$0xff]   ;;  %v8286_v39 = vld [vmem:[%s10636_s8 + $0x58] sm:$0xf] }
  0xd6   : > { %9479 = vmatpush3.bf16.msra.mxu0 %v10072_v6  ;;  %v1984_v6 = vrot.slane %v1983_v57, 4  ;;  %9513 = vmatpush3.bf16.msra.mxu1 %v10076_v56  ;;  %v8357_v36 = vcombine.low %v2474_v22, %v2477_v32  ;;  %v2023_v42 = vsel %vm10647_vm2, %v2018_v31, %v2022_v12  ;;  %v2034_v45 = vshll.u32 %v8286_v39, 16  ;;  %v8327_v57 = vld [vmem:[%s10636_s8 + $0x3c] sm:$0xe]  ;;  %v8328_v1 = vld [vmem:[%s10636_s8 + $0x40] sm:$0xf] }
  0xd7   : > { %9480 = vmatprep.subr.bf16.mxu0 %v10073_v27  ;;  %9423 = vmatmul.mubr.bf16.gmra.mxu0 %v8300_v16  ;;  %v2007_v19 = vor.u32 %v2006_v8, %v2003_v2  ;;  %v8288_v16 = vld [vmem:[%s10636_s8 + $0x60] sm:$0xf]  ;;  %v2038_v49 = vshrl.u32 %v8286_v39, 16  ;;  %v2027_v54 = vrot.slane %v2025_v43, 4  ;;  %v2030_v55 = vrot.slane %v2028_v44, 5 }
  0xd8   : > { %v1989_v17 = vsel %vm10647_vm2, %v1984_v6, %v1988_v52  ;;  %9514 = vmatprep.subr.bf16.mxu1 %v10078_v10  ;;  %9458 = vmatprep.mubr.bf16.mxu1 %v8357_v36  ;;  %v8290_v52 = vld [vmem:[%s10636_s8 + $0x68] sm:$0x1]  ;;  %v2036_v56 = vrot.slane %v2034_v45, 5  ;;  %v2049_v62 = vshrl.u32 %v8288_v16, 16  ;;  %v2062_v4 = vshrl.u32 %v8289_v51, 16 }
  0xd9   : > { %v2008_v26 = vrot.slane %v2007_v19, 4  ;;  %v8301_v30 = vcombine.low %v1989_v17, %v1999_v24  ;;  %v2040_v59 = vrot.slane %v2038_v49, 4  ;;  %v2031_v2 = vor.u32 %v2030_v55, %v2027_v54  ;;  %v8329_v6 = vld [vmem:[%s10636_s8 + $0x44] sm:$0x1]  ;;  %v8332_v24 = vld [vmem:[%s10636_s8 + $0x50] sm:$0x1] }
  0xda   : > { %9481 = vmatpush3.bf16.msra.mxu0 %v10073_v27  ;;  %v2480_v27 = vrot.slane %v8325_v9, 5  ;;  %9515 = vmatpush3.bf16.msra.mxu1 %v10078_v10  ;;  %v2068_v5 = vshll.u32 %v8290_v52, 16  ;;  %v2051_v8 = vrot.slane %v2049_v62, 4  ;;  %v8349_v9 = vrot.slane %v8327_v57, 9  ;;  %v10901_v10 = vld [vmem:[#allocation7 + $0x238] sm:$0xff]  }
  0xdb   : > { %9482 = vmatprep.subr.bf16.mxu0 %v10075_v38  ;;  %v2013_v35 = vsel %vm10647_vm2, %v2008_v26, %v2012_v61  ;;  %9426 = vmatprep.mubr.bf16.mxu0 %v8301_v30  ;;  %v2041_v7 = vor.u32 %v2040_v59, %v2036_v56  ;;  %v2032_v11 = vrot.slane %v2031_v2, 4  ;;  %v2060_v12 = vrot.slane %v2058_v3, 5  ;;  %v8291_v43 = vld [vmem:[%s10636_s8 + $0x6c] sm:$0xf]  ;;  %v8292_v44 = vld [vmem:[%s10636_s8 + $0x70] sm:$0xf] }
  0xdc   : > { %v2481_v37 = vsel %vm10718_vm5, %v8348_v23, %v2480_v27  ;;  %v8302_v47 = vcombine.low %v2013_v35, %v2023_v42  ;;  %9516 = vmatprep.subr.bf16.mxu1 %v10080_v34  ;;  %v2064_v13 = vrot.slane %v2062_v4, 4  ;;  %v2487_v18 = vrot.slane %v8328_v1, 5  ;;  %v8331_v23 = vld [vmem:[%s10636_s8 + $0x4c] sm:$0xf]  ;;  %v10087_v35 = vld [vmem:[#allocation7 + $0x1c8] sm:$0xff]   ;;  %v10089_v59 = vld [vmem:[#allocation7 + $0x1c0] sm:$0xff]  }
  0xdd   : > { %v2042_v15 = vrot.slane %v2041_v7, 4  ;;  %v2490_v19 = vrot.slane %v8329_v6, 5  ;;  %v2037_v21 = vsel %vm10647_vm2, %v2032_v11, %v2036_v56  ;;  %v2070_v0 = vrot.slane %v2068_v5, 5  ;;  %v8294_v52 = vld [vmem:[%s10636_s8 + $0x78] sm:$0xf] }
  0xde   : > { %9483 = vmatpush3.bf16.msra.mxu0 %v10075_v38  ;;  %v2482_v38 = vrot.slane %v2480_v27, 4  ;;  %9517 = vmatpush3.bf16.msra.mxu1 %v10080_v34  ;;  %v2065_v22 = vor.u32 %v2064_v13, %v2060_v12  ;;  %v8350_v26 = vrot.slane %v8330_v20, 9  ;;  %v2489_v30 = vrot.slane %v2487_v18, 4  ;;  %v8333_v2 = vld [vmem:[%s10636_s8 + $0x54] sm:$0xe] }
  0xdf   : > { %9484 = vmatprep.subr.bf16.mxu0 %v10077_v63  ;;  %9427 = vmatmul.mubr.bf16.gmra.mxu0 %v8302_v47  ;;  %v2047_v27 = vsel %vm10647_vm2, %v2042_v15, %v2046_v60  ;;  %v2494_v33 = vrot.slane %v8331_v23, 5  ;;  %v2497_v34 = vrot.slane %v8332_v24, 5  ;;  %v2076_v47 = vshll.u32 %v8291_v43, 16  ;;  %v8334_v7 = vld [vmem:[%s10636_s8 + $0x58] sm:$0xf] }
  0xe0   : > { %v2484_v48 = vsel %vm10718_vm5, %v2482_v38, %v2483_v28  ;;  %9518 = vmatprep.subr.bf16.mxu1 %v10081_v58  ;;  %v8303_v31 = vcombine.low %v2037_v21, %v2047_v27  ;;  %v2066_v32 = vrot.slane %v2065_v22, 4  ;;  %v2086_v50 = vshrl.u32 %v8292_v44, 16  ;;  %v8335_v11 = vld [vmem:[%s10636_s8 + $0x5c] sm:$0x1] }
  0xe1   : > { %v8358_v53 = vcombine.low %v2481_v37, %v2484_v48  ;;  %v2491_v37 = vsel %vm10718_vm5, %v2489_v30, %v2490_v19  ;;  %v2495_v41 = vsel %vm10718_vm5, %v8350_v26, %v2494_v33  ;;  %v2496_v42 = vrot.slane %v2494_v33, 4  ;;  %v8338_v26 = vld [vmem:[%s10636_s8 + $0x68] sm:$0x1] }
  0xe2   : > { %9485 = vmatpush3.bf16.msra.mxu0 %v10077_v63  ;;  %v2052_v63 = vshll.u32 %v8288_v16, 16  ;;  %9519 = vmatpush3.bf16.msra.mxu1 %v10081_v58  ;;  %v2071_v38 = vsel %vm10647_vm2, %v2066_v32, %v2070_v0  ;;  %v8293_v16 = vld [vmem:[%s10636_s8 + $0x74] sm:$0x1]  ;;  %v2082_v48 = vshll.u32 %v8292_v44, 16  ;;  %v2078_v56 = vrot.slane %v2076_v47, 5 }
  0xe3   : > { %9486 = vmatprep.subr.bf16.mxu0 %v10079_v29  ;;  %9459 = vmatmul.mubr.bf16.gmra.mxu1 %v8358_v53  ;;  %v2498_v49 = vsel %vm10718_vm5, %v2496_v42, %v2497_v34  ;;  %v2092_v51 = vshll.u32 %v8293_v16, 16  ;;  %v8295_v53 = vld [vmem:[%s10636_s8 + $0x7c] sm:$0xf]  ;;  %v8296_v58 = vld [vmem:[%s10636_s8 + $0x80] sm:$0x1]  ;;  %v2088_v60 = vrot.slane %v2086_v50, 4 }
  0xe4   : > { %v2054_v61 = vrot.slane %v2052_v63, 5  ;;  %9520 = vmatprep.subr.bf16.mxu1 %v10083_v14  ;;  %9430 = vmatprep.mubr.bf16.mxu0 %v8303_v31  ;;  %v8360_v54 = vcombine.low %v2495_v41, %v2498_v49  ;;  %v2084_v57 = vrot.slane %v2082_v48, 5  ;;  %v2097_v63 = vshrl.u32 %v8294_v52, 16  ;;  %v8337_v0 = vld [vmem:[%s10636_s8 + $0x64] sm:$0xf]  ;;  %v10084_v41 = vld [vmem:[%s10636_s8 + $0x18] sm:$0xff]  }
  0xe5   : > { %v2094_v62 = vrot.slane %v2092_v51, 5  ;;  %v2100_v1 = vshll.u32 %v8294_v52, 16  ;;  %v2106_v4 = vshll.u32 %v8295_v53, 16  ;;  %v2110_v5 = vshrl.u32 %v8295_v53, 16  ;;  %v8339_v16 = vld [vmem:[%s10636_s8 + $0x6c] sm:$0xe] }
  0xe6   : > { %9487 = vmatpush3.bf16.msra.mxu0 %v10079_v29  ;;  %v2055_v17 = vor.u32 %v2054_v61, %v2051_v8  ;;  %v2488_v29 = vsel %vm10718_vm5, %v8349_v9, %v2487_v18  ;;  %9521 = vmatpush3.bf16.msra.mxu1 %v10083_v14  ;;  %v2116_v6 = vshll.u32 %v8296_v58, 16  ;;  %v2089_v8 = vor.u32 %v2088_v60, %v2084_v57  ;;  %v8336_v18 = vld [vmem:[%s10636_s8 + $0x60] sm:$0xe]  ;;  %v8340_v47 = vld [vmem:[%s10636_s8 + $0x70] sm:$0xf]  ;;  %v10085_v60 = vld [vmem:[%s10636_s8 + $0x24] sm:$0xff]  }
  0xe7   : > { %9488 = vmatprep.subr.bf16.mxu0 %v10082_v46  ;;  %v8359_v39 = vcombine.low %v2488_v29, %v2491_v37  ;;  %9522 = vmatprep.subr.bf16.mxu1 %v10087_v35  ;;  %v2099_v61 = vrot.slane %v2097_v63, 4  ;;  %v2102_v9 = vrot.slane %v2100_v1, 5  ;;  %v2108_v14 = vrot.slane %v2106_v4, 5  ;;  %v8341_v48 = vld [vmem:[%s10636_s8 + $0x74] sm:$0x1] }
  0xe8   : > { %v2056_v28 = vrot.slane %v2055_v17, 4  ;;  %v2112_v15 = vrot.slane %v2110_v5, 4  ;;  %v2118_v17 = vrot.slane %v2116_v6, 5  ;;  %v2090_v19 = vrot.slane %v2089_v8, 4  ;;  %v8342_v52 = vld [vmem:[%s10636_s8 + $0x78] sm:$0xe] }
  0xe9   : > { %9462 = vmatprep.mubr.bf16.mxu1 %v8359_v39  ;;  %v2103_v20 = vor.u32 %v2102_v9, %v2099_v61  ;;  %v2501_v21 = vrot.slane %v8334_v7, 5  ;;  %v2504_v22 = vrot.slane %v8335_v11, 5  ;;  %v8352_v27 = vrot.slane %v8336_v18, 9  ;;  %v8343_v53 = vld [vmem:[%s10636_s8 + $0x7c] sm:$0xf] }
  0xea   : > { %9489 = vmatpush3.bf16.msra.mxu0 %v10082_v46  ;;  %v2061_v36 = vsel %vm10647_vm2, %v2056_v28, %v2060_v12  ;;  %v2073_v46 = vshrl.u32 %v8291_v43, 16  ;;  %v8351_v12 = vrot.slane %v8333_v2, 9  ;;  %9523 = vmatpush3.bf16.msra.mxu1 %v10087_v35  ;;  %v2113_v24 = vor.u32 %v2112_v15, %v2108_v14  ;;  %v10088_v2 = vld [vmem:[#allocation7 + $0x230] sm:$0xff]   ;;  %v8413_v6 = vld [vmem:[%s10636_s8 + $0x18] sm:$0xf] }
  0xeb   : > { %9546 = vmatprep.subr.bf16.mxu0 %v10901_v10  ;;  %v8304_v45 = vcombine.low %v2061_v36, %v2071_v38  ;;  %9463 = vmatmul.mubr.bf16.gmra.mxu1 %v8360_v54  ;;  %v2508_v28 = vrot.slane %v8337_v0, 5  ;;  %v2095_v29 = vsel %vm10647_vm2, %v2090_v19, %v2094_v62  ;;  %v2104_v30 = vrot.slane %v2103_v20, 4  ;;  %v8344_v54 = vld [vmem:[%s10636_s8 + $0x80] sm:$0x1]  ;;  %v8414_v8 = vld [vmem:[%s10636_s8 + $0x1c] sm:$0xf] }
  0xec   : > { %v2075_v55 = vrot.slane %v2073_v46, 4  ;;  %9524 = vmatprep.subr.bf16.mxu1 %v10089_v59  ;;  %v2502_v31 = vsel %vm10718_vm5, %v8351_v12, %v2501_v21  ;;  %v2503_v32 = vrot.slane %v2501_v21, 4  ;;  %v2114_v34 = vrot.slane %v2113_v24, 4  ;;  %v8415_v61 = vld [vmem:[%s10636_s8 + $0x20] sm:$0x1] }
  0xed   : > { %9431 = vmatmul.mubr.bf16.gmra.mxu0 %v8304_v45  ;;  %v2510_v35 = vrot.slane %v2508_v28, 4  ;;  %v2109_v36 = vsel %vm10647_vm2, %v2104_v30, %v2108_v14  ;;  %v2509_v38 = vsel %vm10718_vm5, %v8352_v27, %v2508_v28  ;;  %v2511_v39 = vrot.slane %v8338_v26, 5  ;;  %v8416_v15 = vld [vmem:[%s10636_s8 + $0x24] sm:$0xf]  ;;  %v8417_v19 = vld [vmem:[%s10636_s8 + $0x28] sm:$0xf] }
  0xee   : > { %v2079_v3 = vor.u32 %v2078_v56, %v2075_v55  ;;  %9525 = vmatpush3.bf16.msra.mxu1 %v10089_v59  ;;  %v2505_v37 = vsel %vm10718_vm5, %v2503_v32, %v2504_v22  ;;  %v2119_v42 = vsel %vm10647_vm2, %v2114_v34, %v2118_v17  ;;  %v8353_v49 = vrot.slane %v8339_v16, 9  ;;  %v8418_v20 = vld [vmem:[%s10636_s8 + $0x2c] sm:$0x1]  ;;  %v10091_v24 = vld [vmem:[%s10636_s8 + $0x3c] sm:$0xff]   ;;  %v8420_v16 = vld [vmem:[%s10636_s8 + $0x34] sm:$0xf] }
  0xef   : > { %v8361_v43 = vcombine.low %v2502_v31, %v2505_v37  ;;  %v8306_v44 = vcombine.low %v2109_v36, %v2119_v42  ;;  %v2512_v45 = vsel %vm10718_vm5, %v2510_v35, %v2511_v39  ;;  %v2515_v50 = vrot.slane %v8340_v47, 5  ;;  %v10092_v30 = vld [vmem:[#allocation7 + $0x228] sm:$0xff]   ;;  %v8421_v47 = vld [vmem:[%s10636_s8 + $0x38] sm:$0x1] }
  0xf0   : > { %v2080_v13 = vrot.slane %v2079_v3, 4  ;;  %v8362_v46 = vcombine.low %v2509_v38, %v2512_v45  ;;  %v2518_v51 = vrot.slane %v8341_v48, 5  ;;  %v8354_v55 = vrot.slane %v8342_v52, 9  ;;  %v10090_v3 = vld [vmem:[%s10636_s8 + $0x30] sm:$0xff]   ;;  %v10094_v38 = vld [vmem:[#allocation7 + $0x220] sm:$0xff]  }
  0xf1   : > { %9466 = vmatprep.mubr.bf16.mxu1 %v8361_v43  ;;  %v2522_v56 = vrot.slane %v8343_v53, 5  ;;  %v2517_v58 = vrot.slane %v2515_v50, 4  ;;  %v2525_v59 = vrot.slane %v8344_v54, 5  ;;  %v3156_v9 = vshrl.u32 %v8413_v6, 16  ;;  %v8419_v45 = vld [vmem:[%s10636_s8 + $0x30] sm:$0xf] }
  0xf2   : > { %v2085_v23 = vsel %vm10647_vm2, %v2080_v13, %v2084_v57  ;;  %v2516_v57 = vsel %vm10718_vm5, %v8353_v49, %v2515_v50  ;;  %v3159_v11 = vshll.u32 %v8413_v6, 16  ;;  %v3165_v12 = vshll.u32 %v8414_v8, 16 }
  0xf3   : > { %v8305_v33 = vcombine.low %v2085_v23, %v2095_v29  ;;  %9467 = vmatmul.mubr.bf16.gmra.mxu1 %v8362_v46  ;;  %v2523_v62 = vsel %vm10718_vm5, %v8354_v55, %v2522_v56  ;;  %v2524_v63 = vrot.slane %v2522_v56, 4  ;;  %v2519_v1 = vsel %vm10718_vm5, %v2517_v58, %v2518_v51  ;;  %v8422_v55 = vld [vmem:[%s10636_s8 + $0x3c] sm:$0xf]  ;;  %v10096_v56 = vld [vmem:[#allocation7 + $0x218] sm:$0xff]  }
  0xf4   : > { %v8363_v4 = vcombine.low %v2516_v57, %v2519_v1  ;;  %v3169_v13 = vshrl.u32 %v8414_v8, 16  ;;  %v3175_v14 = vshll.u32 %v8415_v61, 16  ;;  %v3158_v17 = vrot.slane %v3156_v9, 4  ;;  %v10095_v61 = vld [vmem:[%s10636_s8 + $0x54] sm:$0xff]  }
  0xf5   : > { %9434 = vmatprep.mubr.bf16.mxu0 %v8305_v33  ;;  %v2526_v5 = vsel %vm10718_vm5, %v2524_v63, %v2525_v59  ;;  %v3161_v18 = vrot.slane %v3159_v11, 5  ;;  %v3167_v21 = vrot.slane %v3165_v12, 5  ;;  %v3180_v23 = vshrl.u32 %v8416_v15, 16 }
  0xf6   : > { %9435 = vmatmul.mubr.bf16.gmra.mxu0 %v8306_v44  ;;  %v8364_v7 = vcombine.low %v2523_v62, %v2526_v5  ;;  %9470 = vmatprep.mubr.bf16.mxu1 %v8363_v4  ;;  %v3171_v22 = vrot.slane %v3169_v13, 4  ;;  %v3177_v0 = vrot.slane %v3175_v14, 5  ;;  %v3183_v27 = vshll.u32 %v8416_v15, 16  ;;  %v8423_v62 = vld [vmem:[%s10636_s8 + $0x40] sm:$0xf] }
  0xf7   : > { %9490 = vmatprep.mubr.bf16.mxu0 %v10084_v41  ;;  %v3162_v26 = vor.u32 %v3161_v18, %v3158_v17  ;;  %v3189_v28 = vshll.u32 %v8417_v19, 16  ;;  %v3193_v29 = vshrl.u32 %v8417_v19, 16  ;;  %v3182_v32 = vrot.slane %v3180_v23, 4  ;;  %v10097_v18 = vld [vmem:[%s10636_s8 + $0x60] sm:$0xff]  }
  0xf8   : > { %v3172_v31 = vor.u32 %v3171_v22, %v3167_v21  ;;  %v3199_v33 = vshll.u32 %v8418_v20, 16  ;;  %v3185_v35 = vrot.slane %v3183_v27, 5  ;;  %v3204_v48 = vshrl.u32 %v8419_v45, 16  ;;  %v10099_v22 = vld [vmem:[#allocation7 + $0x210] sm:$0xff]  }
  0xf9   : > { %v3163_v34 = vrot.slane %v3162_v26, 4  ;;  %v3191_v36 = vrot.slane %v3189_v28, 5  ;;  %v3195_v37 = vrot.slane %v3193_v29, 4  ;;  %v3207_v49 = vshll.u32 %v8419_v45, 16  ;;  %v8425_v26 = vld [vmem:[%s10636_s8 + $0x48] sm:$0xf] }
  0xfa   : > { %v3173_v39 = vrot.slane %v3172_v31, 4  ;;  %v3201_v41 = vrot.slane %v3199_v33, 5  ;;  %v3186_v43 = vor.u32 %v3185_v35, %v3182_v32  ;;  %v3213_v50 = vshll.u32 %v8420_v16, 16  ;;  %v8426_v27 = vld [vmem:[%s10636_s8 + $0x4c] sm:$0xf] }
  0xfb   : > { %9471 = vmatmul.mubr.bf16.gmra.mxu1 %v8364_v7  ;;  %v3168_v42 = vsel %vm10647_vm2, %v3163_v34, %v3167_v21  ;;  %v3196_v44 = vor.u32 %v3195_v37, %v3191_v36  ;;  %v3217_v54 = vshrl.u32 %v8420_v16, 16  ;;  %v3206_v57 = vrot.slane %v3204_v48, 4  ;;  %v10101_v48 = vld [vmem:[%s10636_s8 + $0x78] sm:$0xff]  }
  0xfc   : > { %v3178_v46 = vsel %vm10647_vm2, %v3173_v39, %v3177_v0  ;;  %v3187_v52 = vrot.slane %v3186_v43, 4  ;;  %v3209_v58 = vrot.slane %v3207_v49, 5  ;;  %v3215_v59 = vrot.slane %v3213_v50, 5  ;;  %v8428_v43 = vld [vmem:[%s10636_s8 + $0x54] sm:$0xf] }
  0xfd   : > { %v8443_v51 = vcombine.low %v3168_v42, %v3178_v46  ;;  %v3197_v53 = vrot.slane %v3196_v44, 4  ;;  %v3228_v4 = vshrl.u32 %v8422_v55, 16  ;;  %v3231_v8 = vshll.u32 %v8422_v55, 16  ;;  %v8429_v46 = vld [vmem:[%s10636_s8 + $0x58] sm:$0xf] }
  0xfe   : > { %9491 = vmatmul.mubr.bf16.vlgmr.msra.gmra.mxu0 %v10085_v60  ;;  %v3223_v60 = vshll.u32 %v8421_v47, 16  ;;  %v3192_v63 = vsel %vm10647_vm2, %v3187_v52, %v3191_v36  ;;  %v3210_v6 = vor.u32 %v3209_v58, %v3206_v57  ;;  %v3237_v12 = vshll.u32 %v8423_v62, 16  ;;  %v10100_v36 = vld [vmem:[#allocation7 + $0x208] sm:$0xff]   ;;  %v8430_v47 = vld [vmem:[%s10636_s8 + $0x5c] sm:$0x1] }
  0xff   : > { %9547 = vmatpush3.bf16.msra.mxu0 %v10901_v10  ;;  %9494 = vmatprep.mubr.bf16.mxu0 %v10090_v3  ;;  %v10093_v10 = vld [vmem:[%s10636_s8 + $0x48] sm:$0xff]   ;;  %v3202_v1 = vsel %vm10647_vm2, %v3197_v53, %v3201_v41  ;;  %v8424_v3 = vld [vmem:[%s10636_s8 + $0x44] sm:$0x1]  ;;  %v3230_v11 = vrot.slane %v3228_v4, 4  ;;  %v3241_v13 = vshrl.u32 %v8423_v62, 16  ;;  %v3233_v15 = vrot.slane %v3231_v8, 5 }
 0x100   : > { %9548 = vmatprep.subr.bf16.mxu0 %v10088_v2  ;;  %9526 = vmatprep.mubr.bf16.mxu1 %v8443_v51  ;;  %v8444_v5 = vcombine.low %v3192_v63, %v3202_v1  ;;  %v3225_v7 = vrot.slane %v3223_v60, 5  ;;  %v3211_v14 = vrot.slane %v3210_v6, 4  ;;  %v3247_v17 = vshll.u32 %v8424_v3, 16  ;;  %v10103_v53 = vld [vmem:[#allocation7 + $0x200] sm:$0xff]   ;;  %v8431_v6 = vld [vmem:[%s10636_s8 + $0x60] sm:$0xf] }
 0x101   : > { %v3239_v20 = vrot.slane %v3237_v12, 5  ;;  %v3243_v21 = vrot.slane %v3241_v13, 4  ;;  %v3234_v23 = vor.u32 %v3233_v15, %v3230_v11  ;;  %v3252_v31 = vshrl.u32 %v8425_v26, 16  ;;  %v8434_v13 = vld [vmem:[%s10636_s8 + $0x6c] sm:$0xf] }
 0x102   : > { %v3216_v0 = vsel %vm10647_vm2, %v3211_v14, %v3215_v59  ;;  %v3255_v32 = vshll.u32 %v8425_v26, 16  ;;  %v3261_v34 = vshll.u32 %v8426_v27, 16  ;;  %v3265_v35 = vshrl.u32 %v8426_v27, 16 }
 0x103   : > { %9549 = vmatpush3.bf16.msra.mxu0 %v10088_v2  ;;  %v3219_v2 = vrot.slane %v3217_v54, 4  ;;  %9527 = vmatmul.mubr.bf16.vlgmr.msra.gmra.mxu1 %v8444_v5  ;;  %v3244_v29 = vor.u32 %v3243_v21, %v3239_v20  ;;  %v3254_v39 = vrot.slane %v3252_v31, 4  ;;  %v3276_v52 = vshrl.u32 %v8428_v43, 16 }
 0x104   : > { %9550 = vmatprep.subr.bf16.mxu0 %v10092_v30  ;;  %v3257_v41 = vrot.slane %v3255_v32, 5  ;;  %v3263_v45 = vrot.slane %v3261_v34, 5  ;;  %v3267_v16 = vrot.slane %v3265_v35, 4  ;;  %v3285_v57 = vshll.u32 %v8429_v46, 16  ;;  %v8436_v32 = vld [vmem:[%s10636_s8 + $0x74] sm:$0x1] }
 0x105   : > { %v3220_v9 = vor.u32 %v3219_v2, %v3215_v59  ;;  %v3245_v37 = vrot.slane %v3244_v29, 4  ;;  %v3278_v59 = vrot.slane %v3276_v52, 4  ;;  %v3289_v60 = vshrl.u32 %v8429_v46, 16 }
 0x106   : > { %9495 = vmatmul.mubr.bf16.gmra.mxu0 %v10091_v24  ;;  %v3249_v24 = vrot.slane %v3247_v17, 5  ;;  %v3258_v50 = vor.u32 %v3257_v41, %v3254_v39  ;;  %v3268_v55 = vor.u32 %v3267_v16, %v3263_v45  ;;  %v3295_v62 = vshll.u32 %v8430_v47, 16  ;;  %v10102_v17 = vld [vmem:[%s10636_s8 + $0x84] sm:$0xff]   ;;  %v8463_v39 = vld [vmem:[%s10636_s8 + $0x20] sm:$0x1] }
 0x107   : > { %9551 = vmatpush3.bf16.msra.mxu0 %v10092_v30  ;;  %9498 = vmatprep.mubr.bf16.mxu0 %v10093_v10  ;;  %v3221_v19 = vrot.slane %v3220_v9, 4  ;;  %v8427_v30 = vld [vmem:[%s10636_s8 + $0x50] sm:$0x1]  ;;  %v3235_v10 = vrot.slane %v3234_v23, 4  ;;  %v3287_v2 = vrot.slane %v3285_v57, 5  ;;  %v3291_v4 = vrot.slane %v3289_v60, 4 }
 0x108   : > { %9552 = vmatprep.subr.bf16.mxu0 %v10094_v38  ;;  %v3271_v42 = vshll.u32 %v8427_v30, 16  ;;  %v3250_v49 = vsel %vm10647_vm2, %v3245_v37, %v3249_v24  ;;  %v3259_v58 = vrot.slane %v3258_v50, 4  ;;  %v3269_v63 = vrot.slane %v3268_v55, 4  ;;  %v8433_v9 = vld [vmem:[%s10636_s8 + $0x68] sm:$0x1] }
 0x109   : > { %v3226_v28 = vsel %vm10647_vm2, %v3221_v19, %v3225_v7  ;;  %v3240_v44 = vsel %vm10647_vm2, %v3235_v10, %v3239_v20  ;;  %v3297_v5 = vrot.slane %v3295_v62, 5  ;;  %v8432_v7 = vld [vmem:[%s10636_s8 + $0x64] sm:$0xf]  ;;  %v3300_v11 = vshrl.u32 %v8431_v6, 16  ;;  %v8435_v20 = vld [vmem:[%s10636_s8 + $0x70] sm:$0xf] }
 0x10a   : > { %v8445_v33 = vcombine.low %v3216_v0, %v3226_v28  ;;  %v3273_v51 = vrot.slane %v3271_v42, 5  ;;  %v8446_v54 = vcombine.low %v3240_v44, %v3250_v49  ;;  %v3264_v3 = vsel %vm10647_vm2, %v3259_v58, %v3263_v45  ;;  %v8461_v10 = vld [vmem:[%s10636_s8 + $0x18] sm:$0xe]  ;;  %v8464_v45 = vld [vmem:[%s10636_s8 + $0x24] sm:$0xe] }
 0x10b   : > { %9553 = vmatpush3.bf16.msra.mxu0 %v10094_v38  ;;  %v10098_v38 = vld [vmem:[%s10636_s8 + $0x6c] sm:$0xff]   ;;  %v3303_v12 = vshll.u32 %v8431_v6, 16  ;;  %v3292_v15 = vor.u32 %v3291_v4, %v3287_v2  ;;  %v3313_v19 = vshrl.u32 %v8432_v7, 16  ;;  %v3319_v23 = vshll.u32 %v8433_v9, 16  ;;  %v8465_v49 = vld [vmem:[%s10636_s8 + $0x28] sm:$0xf] }
 0x10c   : > { %9554 = vmatprep.subr.bf16.mxu0 %v10096_v56  ;;  %9530 = vmatprep.mubr.bf16.mxu1 %v8445_v33  ;;  %v3274_v8 = vsel %vm10647_vm2, %v3269_v63, %v3273_v51  ;;  %v3324_v28 = vshrl.u32 %v8434_v13, 16  ;;  %v3327_v33 = vshll.u32 %v8434_v13, 16  ;;  %v3333_v37 = vshll.u32 %v8435_v20, 16  ;;  %v8437_v55 = vld [vmem:[%s10636_s8 + $0x78] sm:$0xf] }
 0x10d   : > { %9531 = vmatmul.mubr.bf16.gmra.mxu1 %v8446_v54  ;;  %v8447_v14 = vcombine.low %v3264_v3, %v3274_v8  ;;  %v3305_v0 = vrot.slane %v3303_v12, 5  ;;  %v3293_v24 = vrot.slane %v3292_v15, 4  ;;  %v3315_v27 = vrot.slane %v3313_v19, 4  ;;  %v8466_v54 = vld [vmem:[%s10636_s8 + $0x2c] sm:$0x1] }
 0x10e   : > { %9499 = vmatmul.mubr.bf16.gmra.mxu0 %v10095_v61  ;;  %v3321_v31 = vrot.slane %v3319_v23, 5  ;;  %v3337_v44 = vshrl.u32 %v8435_v20, 16  ;;  %v3335_v46 = vrot.slane %v3333_v37, 5  ;;  %v3343_v47 = vshll.u32 %v8436_v32, 16  ;;  %v8438_v60 = vld [vmem:[%s10636_s8 + $0x7c] sm:$0xf] }
 0x10f   : > { %9555 = vmatpush3.bf16.msra.mxu0 %v10096_v56  ;;  %9502 = vmatprep.mubr.bf16.mxu0 %v10097_v18  ;;  %v3279_v56 = vshll.u32 %v8428_v43, 16  ;;  %v3309_v18 = vshll.u32 %v8432_v7, 16  ;;  %v3298_v34 = vsel %vm10647_vm2, %v3293_v24, %v3297_v5  ;;  %v3329_v43 = vrot.slane %v3327_v33, 5  ;;  %v8468_v33 = vld [vmem:[%s10636_s8 + $0x34] sm:$0xf] }
 0x110   : > { %9556 = vmatprep.subr.bf16.mxu0 %v10099_v22  ;;  %9534 = vmatprep.mubr.bf16.mxu1 %v8447_v14  ;;  %v3339_v52 = vrot.slane %v3337_v44, 4  ;;  %v3345_v57 = vrot.slane %v3343_v47, 5  ;;  %v3737_v58 = vrot.slane %v8463_v39, 5  ;;  %v3741_v4 = vrot.slane %v8465_v49, 5  ;;  %v8471_v44 = vld [vmem:[%s10636_s8 + $0x40] sm:$0xf] }
 0x111   : > { %v3281_v1 = vrot.slane %v3279_v56, 5  ;;  %v3311_v26 = vrot.slane %v3309_v18, 5  ;;  %v3744_v5 = vrot.slane %v8466_v54, 5  ;;  %v3348_v6 = vshrl.u32 %v8437_v55, 16  ;;  %v8474_v54 = vld [vmem:[%s10636_s8 + $0x4c] sm:$0xf] }
 0x112   : > { %v3351_v9 = vshll.u32 %v8437_v55, 16  ;;  %v3743_v14 = vrot.slane %v3741_v4, 4  ;;  %v3361_v24 = vshrl.u32 %v8438_v60, 16 }
 0x113   : > { %9557 = vmatpush3.bf16.msra.mxu0 %v10099_v22  ;;  %v3282_v61 = vor.u32 %v3281_v1, %v3278_v59  ;;  %v3302_v22 = vrot.slane %v3300_v11, 4  ;;  %v3316_v35 = vor.u32 %v3315_v27, %v3311_v26  ;;  %v8492_v59 = vrot.slane %v8464_v45, 9  ;;  %v8442_v27 = vld [vmem:[%s10636_s8 + $0x8c] sm:$0x1] }
 0x114   : > { %9558 = vmatprep.subr.bf16.mxu0 %v10100_v36  ;;  %v3340_v1 = vor.u32 %v3339_v52, %v3335_v46  ;;  %v3357_v11 = vshll.u32 %v8438_v60, 16  ;;  %v3350_v15 = vrot.slane %v3348_v6, 4  ;;  %v3353_v20 = vrot.slane %v3351_v9, 5 }
 0x115   : > { %v3283_v21 = vrot.slane %v3282_v61, 4  ;;  %v3306_v30 = vor.u32 %v3305_v0, %v3302_v22  ;;  %v3317_v16 = vrot.slane %v3316_v35, 4  ;;  %v8439_v61 = vld [vmem:[%s10636_s8 + $0x80] sm:$0x1]  ;;  %v3742_v13 = vsel %vm10718_vm5, %v8492_v59, %v3741_v4  ;;  %v8441_v22 = vld [vmem:[%s10636_s8 + $0x88] sm:$0xf] }
 0x116   : > { %9503 = vmatmul.mubr.bf16.gmra.mxu0 %v10098_v38  ;;  %v8462_v38 = vld [vmem:[%s10636_s8 + $0x1c] sm:$0xf]  ;;  %v3341_v8 = vrot.slane %v3340_v1, 4  ;;  %v3745_v23 = vsel %vm10718_vm5, %v3743_v14, %v3744_v5  ;;  %v3385_v37 = vshrl.u32 %v8441_v22, 16  ;;  %v3748_v52 = vrot.slane %v8468_v33, 5 }
 0x117   : > { %9506 = vmatprep.mubr.bf16.mxu0 %v10101_v48  ;;  %9559 = vmatpush3.bf16.msra.mxu0 %v10100_v36  ;;  %v3288_v29 = vsel %vm10647_vm2, %v3283_v21, %v3287_v2  ;;  %v3326_v36 = vrot.slane %v3324_v28, 4  ;;  %v3307_v42 = vrot.slane %v3306_v30, 4  ;;  %v8491_v48 = vrot.slane %v8461_v10, 9  ;;  %v8467_v28 = vld [vmem:[%s10636_s8 + $0x30] sm:$0xe] }
 0x118   : > { %9560 = vmatprep.subr.bf16.mxu0 %v10103_v53  ;;  %v8448_v41 = vcombine.low %v3288_v29, %v3298_v34  ;;  %v3322_v56 = vsel %vm10647_vm2, %v3317_v16, %v3321_v31  ;;  %v3346_v18 = vsel %vm10647_vm2, %v3341_v8, %v3345_v57  ;;  %v3359_v21 = vrot.slane %v3357_v11, 5  ;;  %v8469_v10 = vld [vmem:[%s10636_s8 + $0x38] sm:$0x1]  ;;  %v8475_v59 = vld [vmem:[%s10636_s8 + $0x50] sm:$0x1] }
 0x119   : > { %v3312_v50 = vsel %vm10647_vm2, %v3307_v42, %v3311_v26  ;;  %v3330_v51 = vor.u32 %v3329_v43, %v3326_v36  ;;  %v3367_v26 = vshll.u32 %v8439_v61, 16  ;;  %v8502_v29 = vcombine.low %v3742_v13, %v3745_v23  ;;  %v8478_v13 = vld [vmem:[%s10636_s8 + $0x5c] sm:$0x1] }
 0x11a   : > { %9535 = vmatmul.mubr.bf16.gmra.mxu1 %v8448_v41  ;;  %v8449_v62 = vcombine.low %v3312_v50, %v3322_v56  ;;  %v3354_v30 = vor.u32 %v3353_v20, %v3350_v15  ;;  %v3363_v34 = vrot.slane %v3361_v24, 4  ;;  %v3381_v36 = vshll.u32 %v8441_v22, 16  ;;  %v8480_v20 = vld [vmem:[%s10636_s8 + $0x64] sm:$0xf] }
 0x11b   : > { %9561 = vmatpush3.bf16.msra.mxu0 %v10103_v53  ;;  %v3734_v53 = vrot.slane %v8462_v38, 5  ;;  %v3331_v63 = vrot.slane %v3330_v51, 4  ;;  %v3369_v35 = vrot.slane %v3367_v26, 5  ;;  %v8470_v38 = vld [vmem:[%s10636_s8 + $0x3c] sm:$0xe]  ;;  %v3391_v43 = vshll.u32 %v8442_v27, 16 }
 0x11c   : > { %9538 = vmatprep.mubr.bf16.mxu1 %v8449_v62  ;;  %v3355_v39 = vrot.slane %v3354_v30, 4  ;;  %v3364_v45 = vor.u32 %v3363_v34, %v3359_v21  ;;  %v3383_v16 = vrot.slane %v3381_v36, 5  ;;  %v8493_v47 = vrot.slane %v8467_v28, 9  ;;  %v8481_v26 = vld [vmem:[%s10636_s8 + $0x68] sm:$0x1] }
 0x11d   : > { %v3735_v2 = vsel %vm10718_vm5, %v8491_v48, %v3734_v53  ;;  %v3736_v3 = vrot.slane %v3734_v53, 4  ;;  %v3336_v7 = vsel %vm10647_vm2, %v3331_v63, %v3335_v46  ;;  %v3387_v46 = vrot.slane %v3385_v37, 4  ;;  %v8472_v48 = vld [vmem:[%s10636_s8 + $0x44] sm:$0x1]  ;;  %v8473_v53 = vld [vmem:[%s10636_s8 + $0x48] sm:$0xe] }
 0x11e   : > { %9507 = vmatmul.mubr.bf16.gmra.mxu0 %v10102_v17  ;;  %v8440_v17 = vld [vmem:[%s10636_s8 + $0x84] sm:$0xf]  ;;  %v8450_v0 = vcombine.low %v3336_v7, %v3346_v18  ;;  %v3360_v49 = vsel %vm10647_vm2, %v3355_v39, %v3359_v21  ;;  %v3393_v51 = vrot.slane %v3391_v43, 5  ;;  %v3365_v55 = vrot.slane %v3364_v45, 4  ;;  %v8477_v7 = vld [vmem:[%s10636_s8 + $0x58] sm:$0xf] }
 0x11f   : > { %v3738_v12 = vsel %vm10718_vm5, %v3736_v3, %v3737_v58  ;;  %v3372_v31 = vshrl.u32 %v8440_v17, 16  ;;  %v3375_v32 = vshll.u32 %v8440_v17, 16  ;;  %v3388_v56 = vor.u32 %v3387_v46, %v3383_v16 }
 0x120   : > { %v8501_v19 = vcombine.low %v3735_v2, %v3738_v12  ;;  %v3751_v57 = vrot.slane %v8469_v10, 5  ;;  %v8494_v58 = vrot.slane %v8470_v38, 9  ;;  %v3749_v62 = vsel %vm10718_vm5, %v8493_v47, %v3748_v52  ;;  %v8476_v2 = vld [vmem:[%s10636_s8 + $0x54] sm:$0xe] }
 0x121   : > { %v3374_v41 = vrot.slane %v3372_v31, 4  ;;  %v3377_v42 = vrot.slane %v3375_v32, 5  ;;  %v3750_v63 = vrot.slane %v3748_v52, 4  ;;  %v3755_v1 = vrot.slane %v8471_v44, 5  ;;  %v8482_v44 = vld [vmem:[%s10636_s8 + $0x6c] sm:$0xe] }
 0x122   : > { %9562 = vmatprep.mubr.bf16.mxu0 %v8501_v19  ;;  %9539 = vmatmul.mubr.bf16.gmra.mxu1 %v8450_v0  ;;  %v3370_v3 = vsel %vm10647_vm2, %v3365_v55, %v3369_v35  ;;  %v3389_v4 = vrot.slane %v3388_v56, 4  ;;  %v3758_v5 = vrot.slane %v8472_v48, 5  ;;  %v8495_v6 = vrot.slane %v8473_v53, 9  ;;  %v8479_v19 = vld [vmem:[%s10636_s8 + $0x60] sm:$0xe] }
 0x123   : > { %v3378_v50 = vor.u32 %v3377_v42, %v3374_v41  ;;  %v8451_v61 = vcombine.low %v3360_v49, %v3370_v3  ;;  %v3752_v11 = vsel %vm10718_vm5, %v3750_v63, %v3751_v57  ;;  %v3756_v12 = vsel %vm10718_vm5, %v8494_v58, %v3755_v1  ;;  %v8483_v35 = vld [vmem:[%s10636_s8 + $0x70] sm:$0xf]  ;;  %v8486_v41 = vld [vmem:[%s10636_s8 + $0x7c] sm:$0xf]  ;;  %v8484_v48 = vld [vmem:[%s10636_s8 + $0x74] sm:$0x1] }
 0x124   : > { %v3394_v14 = vsel %vm10647_vm2, %v3389_v4, %v3393_v51  ;;  %v8503_v15 = vcombine.low %v3749_v62, %v3752_v11  ;;  %v3757_v17 = vrot.slane %v3755_v1, 4  ;;  %v3762_v18 = vrot.slane %v8474_v54, 5  ;;  %v8487_v53 = vld [vmem:[%s10636_s8 + $0x80] sm:$0x1] }
 0x125   : > { %v3379_v60 = vrot.slane %v3378_v50, 4  ;;  %9542 = vmatprep.mubr.bf16.mxu1 %v8451_v61  ;;  %v3765_v0 = vrot.slane %v8475_v59, 5  ;;  %v8496_v23 = vrot.slane %v8476_v2, 9  ;;  %v3769_v24 = vrot.slane %v8477_v7, 5  ;;  %v8485_v50 = vld [vmem:[%s10636_s8 + $0x78] sm:$0xe] }
 0x126   : > { %9563 = vmatmul.mubr.bf16.vlgmr.msra.gmra.mxu0 %v8502_v29  ;;  %v3759_v28 = vsel %vm10718_vm5, %v3757_v17, %v3758_v5  ;;  %v3763_v29 = vsel %vm10718_vm5, %v8495_v6, %v3762_v18  ;;  %v3764_v30 = vrot.slane %v3762_v18, 4  ;;  %v3772_v31 = vrot.slane %v8478_v13, 5  ;;  %v8489_v6 = vld [vmem:[%s10636_s8 + $0x88] sm:$0xf]  ;;  %v8488_v17 = vld [vmem:[%s10636_s8 + $0x84] sm:$0xe] }
 0x127   : > { %v3384_v9 = vsel %vm10647_vm2, %v3379_v60, %v3383_v16  ;;  %9566 = vmatprep.mubr.bf16.mxu0 %v8503_v15  ;;  %v8504_v33 = vcombine.low %v3756_v12, %v3759_v28  ;;  %v3771_v10 = vrot.slane %v3769_v24, 4  ;;  %v8497_v34 = vrot.slane %v8479_v19, 9 }
 0x128   : > { %v8452_v22 = vcombine.low %v3384_v9, %v3394_v14  ;;  %v3766_v37 = vsel %vm10718_vm5, %v3764_v30, %v3765_v0  ;;  %v3776_v38 = vrot.slane %v8480_v20, 5  ;;  %v3779_v39 = vrot.slane %v8481_v26, 5  ;;  %v8490_v0 = vld [vmem:[%s10636_s8 + $0x8c] sm:$0x1] }
 0x129   : > { %v8505_v43 = vcombine.low %v3763_v29, %v3766_v37  ;;  %v3770_v16 = vsel %vm10718_vm5, %v8496_v23, %v3769_v24  ;;  %v3773_v46 = vsel %vm10718_vm5, %v3771_v10, %v3772_v31  ;;  %v3783_v49 = vrot.slane %v8483_v35, 5 }
 0x12a   : > { %9543 = vmatmul.mubr.bf16.gmra.mxu1 %v8452_v22  ;;  %v3778_v47 = vrot.slane %v3776_v38, 4  ;;  %v3777_v52 = vsel %vm10718_vm5, %v8497_v34, %v3776_v38  ;;  %v3790_v54 = vrot.slane %v8486_v41, 5  ;;  %v8506_v58 = vcombine.low %v3770_v16, %v3773_v46 }
 0x12b   : > { %v8498_v59 = vrot.slane %v8482_v44, 9  ;;  %v3786_v60 = vrot.slane %v8484_v48, 5  ;;  %v8499_v62 = vrot.slane %v8485_v50, 9  ;;  %v3785_v1 = vrot.slane %v3783_v49, 4 }
 0x12c   : > { %v3780_v56 = vsel %vm10718_vm5, %v3778_v47, %v3779_v39  ;;  %v3793_v2 = vrot.slane %v8487_v53, 5  ;;  %v3792_v5 = vrot.slane %v3790_v54, 4  ;;  %v3797_v18 = vrot.slane %v8489_v6, 5 }
 0x12d   : > { %v8507_v63 = vcombine.low %v3777_v52, %v3780_v56  ;;  %v3787_v15 = vsel %vm10718_vm5, %v3785_v1, %v3786_v60  ;;  %v8500_v28 = vrot.slane %v8488_v17, 9 }
 0x12e   : > { %9567 = vmatmul.mubr.bf16.gmra.mxu0 %v8504_v33  ;;  %v3794_v22 = vsel %vm10718_vm5, %v3792_v5, %v3793_v2  ;;  %v3799_v31 = vrot.slane %v3797_v18, 4 }
 0x12f   : > { %9570 = vmatprep.mubr.bf16.mxu0 %v8505_v43  ;;  %v3798_v35 = vsel %vm10718_vm5, %v8500_v28, %v3797_v18 }
 0x136   : > { %9571 = vmatmul.mubr.bf16.gmra.mxu0 %v8506_v58 }
 0x137   : > { %9574 = vmatprep.mubr.bf16.mxu0 %v8507_v63 }
 0x13d   : > { %v9276_v8 = vpop.f32.mrf.mxu0 }
 0x13f   : > { %v470_v21 = vpop.f32.mrf.mxu0  ;;  %v9312_v27 = vpop.f32.mrf.mxu1 }
 0x140   : > { %v11101_v3 = vadd.f32 %v9312_v27, %v9276_v8  ;;  %v3784_v8 = vsel %vm10718_vm5, %v8498_v59, %v3783_v49 }
 0x141   : > { %v9277_v32 = vpop.f32.mrf.mxu0  ;;  %v980_v36 = vpop.f32.mrf.mxu1  ;;  %v8508_v27 = vcombine.low %v3784_v8, %v3787_v15 }
 0x142   : > { %v11104_v7 = vadd.f32 %v980_v36, %v470_v21  ;;  %v3791_v21 = vsel %vm10718_vm5, %v8499_v62, %v3790_v54 }
 0x143   : > { %v473_v42 = vpop.f32.mrf.mxu0  ;;  %v9313_v45 = vpop.f32.mrf.mxu1  ;;  %v8509_v30 = vcombine.low %v3791_v21, %v3794_v22  ;;  %9575 = vmatmul.mubr.bf16.gmra.mxu0 %v8508_v27 }
 0x144   : > { %v11106_v61 = vadd.f32 %v9313_v45, %v9277_v32  ;;  %v3800_v32 = vrot.slane %v8490_v0, 5 }
 0x145   : > { %v9280_v51 = vpop.f32.mrf.mxu0  ;;  %v983_v55 = vpop.f32.mrf.mxu1  ;;  %9578 = vmatprep.mubr.bf16.mxu0 %v8509_v30 }
 0x146   : > { %v11108_v9 = vadd.f32 %v983_v55, %v473_v42  ;;  %v3801_v36 = vsel %vm10718_vm5, %v3799_v31, %v3800_v32 }
 0x147   : > { %v486_v57 = vpop.f32.mrf.mxu0  ;;  %v9316_v11 = vpop.f32.mrf.mxu1  ;;  %v8510_v43 = vcombine.low %v3798_v35, %v3801_v36 }
 0x148   : > { %v11110_v13 = vadd.f32 %v9316_v11, %v9280_v51 }
 0x149   : > { %v9281_v4 = vpop.f32.mrf.mxu0  ;;  %v996_v14 = vpop.f32.mrf.mxu1 }
 0x14a   : > { %v11117_v20 = vadd.f32 %v996_v14, %v486_v57 }
 0x14b   : > { %v489_v12 = vpop.f32.mrf.mxu0  ;;  %v9317_v23 = vpop.f32.mrf.mxu1  ;;  %9579 = vmatmul.mubr.bf16.gmra.mxu0 %v8510_v43 }
 0x14c   : > { %v11124_v26 = vadd.f32 %v9317_v23, %v9281_v4 }
 0x14d   : > { %v9284_v19 = vpop.f32.mrf.mxu0  ;;  %v999_v29 = vpop.f32.mrf.mxu1 }
 0x14e   : > { %v1084_v10 = vadd.f32 %v999_v29, %v489_v12 }
 0x14f   : > { %v502_v24 = vpop.f32.mrf.mxu0  ;;  %v9320_v38 = vpop.f32.mrf.mxu1 }
 0x150   : > { %v1089_v39 = vadd.f32 %v9320_v38, %v9284_v19 }
 0x151   : > { %v9285_v33 = vpop.f32.mrf.mxu0  ;;  %v1012_v42 = vpop.f32.mrf.mxu1 }
 0x152   : > { %v1087_v44 = vadd.f32 %v1012_v42, %v502_v24 }
 0x153   : > { %v505_v34 = vpop.f32.mrf.mxu0  ;;  %v9321_v16 = vpop.f32.mrf.mxu1 }
 0x154   : > { %v1090_v46 = vadd.f32 %v9321_v16, %v9285_v33 }
 0x155   : > { %v9288_v37 = vpop.f32.mrf.mxu0  ;;  %v1015_v48 = vpop.f32.mrf.mxu1 }
 0x156   : > { %v1088_v49 = vadd.f32 %v1015_v48, %v505_v34 }
 0x157   : > { %v518_v41 = vpop.f32.mrf.mxu0 }
 0x159   : > { %v9289_v45 = vpop.f32.mrf.mxu0  ;;  %v9324_v52 = vpop.f32.mrf.mxu1 }
 0x15a   : > { %v1093_v53 = vadd.f32 %v9324_v52, %v9288_v37 }
 0x15b   : > { %v521_v47 = vpop.f32.mrf.mxu0  ;;  %v1028_v54 = vpop.f32.mrf.mxu1 }
 0x15c   : > { %v1091_v55 = vadd.f32 %v1028_v54, %v518_v41 }
 0x15d   : > { %v9292_v50 = vpop.f32.mrf.mxu0  ;;  %v9325_v57 = vpop.f32.mrf.mxu1 }
 0x15e   : > { %v1094_v58 = vadd.f32 %v9325_v57, %v9289_v45 }
 0x15f   : > { %v534_v51 = vpop.f32.mrf.mxu0  ;;  %v1031_v59 = vpop.f32.mrf.mxu1 }
 0x160   : > { %v11130_v62 = vadd.f32 %v1031_v59, %v521_v47 }
 0x161   : > { %v9293_v56 = vpop.f32.mrf.mxu0  ;;  %v9328_v63 = vpop.f32.mrf.mxu1 }
 0x162   : > { %v11132_v2 = vadd.f32 %v9328_v63, %v9292_v50 }
 0x163   : > { %v537_v60 = vpop.f32.mrf.mxu0  ;;  %v1044_v5 = vpop.f32.mrf.mxu1 }
 0x164   : > { %v11135_v11 = vadd.f32 %v1044_v5, %v534_v51 }
 0x165   : > { %v9348_v1 = vpop.f32.mrf.mxu0  ;;  %v9329_v14 = vpop.f32.mrf.mxu1 }
 0x166   : > { %v1491_v4 = vadd.f32 %v9348_v1, %v11101_v3  ;;  %v11138_v15 = vadd.f32 %v9329_v14, %v9293_v56 }
 0x167   : > { %v1390_v6 = vpop.f32.mrf.mxu0  ;;  %v1047_v18 = vpop.f32.mrf.mxu1 }
 0x168   : > { %v1489_v12 = vadd.f32 %v1390_v6, %v11104_v7  ;;  %v11141_v21 = vadd.f32 %v1047_v18, %v537_v60 }
 0x169   : > { %v9349_v8 = vpop.f32.mrf.mxu0  ;;  %v9384_v3 = vpop.f32.mrf.mxu1 }
 0x16a   : > { %v1492_v17 = vadd.f32 %v9349_v8, %v11106_v61  ;;  %v11145_v24 = vadd.f32 %v9384_v3, %v1491_v4 }
 0x16b   : > { %v1393_v19 = vpop.f32.mrf.mxu0  ;;  %v1711_v7 = vpop.f32.mrf.mxu1 }
 0x16c   : > { %v1490_v22 = vadd.f32 %v1393_v19, %v11108_v9  ;;  %v11148_v29 = vadd.f32 %v1711_v7, %v1489_v12 }
 0x16d   : > { %v9352_v0 = vpop.f32.mrf.mxu0  ;;  %v9385_v61 = vpop.f32.mrf.mxu1 }
 0x16e   : > { %v1495_v23 = vadd.f32 %v9352_v0, %v11110_v13  ;;  %v11151_v32 = vadd.f32 %v9385_v61, %v1492_v17 }
 0x16f   : > { %v1406_v27 = vpop.f32.mrf.mxu0  ;;  %v1714_v9 = vpop.f32.mrf.mxu1 }
 0x170   : > { %v1493_v28 = vadd.f32 %v1406_v27, %v11117_v20  ;;  %v11153_v35 = vadd.f32 %v1714_v9, %v1490_v22 }
 0x171   : > { %v9353_v30 = vpop.f32.mrf.mxu0  ;;  %v9388_v36 = vpop.f32.mrf.mxu1 }
 0x172   : > { %v1496_v31 = vadd.f32 %v9353_v30, %v11124_v26  ;;  %v1816_v38 = vadd.f32 %v9388_v36, %v1495_v23 }
 0x173   : > { %v1409_v33 = vpop.f32.mrf.mxu0  ;;  %v1727_v42 = vpop.f32.mrf.mxu1 }
 0x174   : > { %v1494_v34 = vadd.f32 %v1409_v33, %v1084_v10  ;;  %v1814_v43 = vadd.f32 %v1727_v42, %v1493_v28 }
 0x175   : > { %v9356_v13 = vpop.f32.mrf.mxu0  ;;  %v9389_v16 = vpop.f32.mrf.mxu1 }
 0x176   : > { %v1499_v37 = vadd.f32 %v9356_v13, %v1089_v39  ;;  %v1817_v48 = vadd.f32 %v9389_v16, %v1496_v31 }
 0x177   : > { %v1422_v41 = vpop.f32.mrf.mxu0  ;;  %v1730_v50 = vpop.f32.mrf.mxu1 }
 0x178   : > { %v1497_v20 = vadd.f32 %v1422_v41, %v1087_v44  ;;  %v1815_v52 = vadd.f32 %v1730_v50, %v1494_v34 }
 0x179   : > { %v9357_v45 = vpop.f32.mrf.mxu0  ;;  %v9392_v10 = vpop.f32.mrf.mxu1 }
 0x17a   : > { %v1500_v47 = vadd.f32 %v9357_v45, %v1090_v46  ;;  %v1820_v57 = vadd.f32 %v9392_v10, %v1499_v37 }
 0x17b   : > { %v1425_v26 = vpop.f32.mrf.mxu0  ;;  %v1743_v60 = vpop.f32.mrf.mxu1 }
 0x17c   : > { %v1498_v51 = vadd.f32 %v1425_v26, %v1088_v49  ;;  %v1818_v63 = vadd.f32 %v1743_v60, %v1497_v20 }
 0x17d   : > { %v9360_v54 = vpop.f32.mrf.mxu0  ;;  %v9393_v4 = vpop.f32.mrf.mxu1 }
 0x17e   : > { %v1503_v56 = vadd.f32 %v9360_v54, %v1093_v53  ;;  %v1821_v5 = vadd.f32 %v9393_v4, %v1500_v47 }
 0x17f   : > { %v1438_v59 = vpop.f32.mrf.mxu0  ;;  %v1746_v12 = vpop.f32.mrf.mxu1 }
 0x180   : > { %v1501_v39 = vadd.f32 %v1438_v59, %v1091_v55  ;;  %v1819_v14 = vadd.f32 %v1746_v12, %v1498_v51 }
 0x181   : > { %v9361_v1 = vpop.f32.mrf.mxu0  ;;  %v9396_v49 = vpop.f32.mrf.mxu1 }
 0x182   : > { %v1504_v44 = vadd.f32 %v9361_v1, %v1094_v58  ;;  %v1824_v18 = vadd.f32 %v9396_v49, %v1503_v56 }
 0x183   : > { %v1441_v6 = vpop.f32.mrf.mxu0  ;;  %v1759_v19 = vpop.f32.mrf.mxu1 }
 0x184   : > { %v1502_v46 = vadd.f32 %v1441_v6, %v11130_v62  ;;  %v1822_v55 = vadd.f32 %v1759_v19, %v1501_v39 }
 0x185   : > { %v9364_v8 = vpop.f32.mrf.mxu0  ;;  %v9397_v3 = vpop.f32.mrf.mxu1 }
 0x186   : > { %v1507_v17 = vadd.f32 %v9364_v8, %v11132_v2  ;;  %v1825_v23 = vadd.f32 %v9397_v3, %v1504_v44 }
 0x187   : > { %v1454_v53 = vpop.f32.mrf.mxu0  ;;  %v1762_v7 = vpop.f32.mrf.mxu1 }
 0x188   : > { %v1505_v22 = vadd.f32 %v1454_v53, %v11135_v11  ;;  %v1823_v28 = vadd.f32 %v1762_v7, %v1502_v46 }
 0x189   : > { %v9365_v0 = vpop.f32.mrf.mxu0  ;;  %v9400_v30 = vpop.f32.mrf.mxu1 }
 0x18a   : > { %v1508_v58 = vadd.f32 %v9365_v0, %v11138_v15  ;;  %v1828_v31 = vadd.f32 %v9400_v30, %v1507_v17 }
 0x18b   : > { %v1457_v27 = vpop.f32.mrf.mxu0  ;;  %v1775_v33 = vpop.f32.mrf.mxu1 }
 0x18c   : > { %v1506_v62 = vadd.f32 %v1457_v27, %v11141_v21  ;;  %v1826_v11 = vadd.f32 %v1775_v33, %v1505_v22 }
 0x18d   : > { %v9420_v61 = vpop.f32.mrf.mxu0  ;;  %v9401_v13 = vpop.f32.mrf.mxu1 }
 0x18e   : > { %v11161_v2 = vadd.f32 %v9420_v61, %v11145_v24  ;;  %v1829_v36 = vadd.f32 %v9401_v13, %v1508_v58 }
 0x18f   : > { %v2258_v9 = vpop.f32.mrf.mxu0  ;;  %v1778_v21 = vpop.f32.mrf.mxu1 }
 0x190   : > { %v11164_v34 = vadd.f32 %v2258_v9, %v11148_v29  ;;  %v1827_v42 = vadd.f32 %v1778_v21, %v1506_v62 }
 0x191   : > { %v9421_v15 = vpop.f32.mrf.mxu0  ;;  %v11174_v16 = vpop.f32.mrf.mxu1 }
 0x192   : > { %v11167_v37 = vadd.f32 %v9421_v15, %v11151_v32 }
 0x193   : > { %v2261_v41 = vpop.f32.mrf.mxu0  ;;  %v11178_v26 = vpop.f32.mrf.mxu1 }
 0x194   : > { %v11170_v20 = vadd.f32 %v2261_v41, %v11153_v35 }
 0x195   : > { %v11182_v32 = vpop.f32.mrf.mxu1 }
 0x197   : > { %v9424_v24 = vpop.f32.mrf.mxu0  ;;  %v11186_v35 = vpop.f32.mrf.mxu1 }
 0x198   : > { %v11172_v45 = vadd.f32 %v9424_v24, %v1816_v38 }
 0x199   : > { %v2274_v47 = vpop.f32.mrf.mxu0 }
 0x19a   : > { %v11176_v29 = vadd.f32 %v2274_v47, %v1814_v43 }
 0x19b   : > { %v9425_v50 = vpop.f32.mrf.mxu0 }
 0x19c   : > { %v11180_v51 = vadd.f32 %v9425_v50, %v1817_v48 }
 0x19d   : > { %v2277_v54 = vpop.f32.mrf.mxu0 }
 0x19e   : > { %v11184_v10 = vadd.f32 %v2277_v54, %v1815_v52 }
 0x19f   : > { %v9428_v56 = vpop.f32.mrf.mxu0 }
 0x1a0   : > { %v11188_v38 = vadd.f32 %v9428_v56, %v1820_v57 }
 0x1a1   : > { %v2290_v60 = vpop.f32.mrf.mxu0 }
 0x1a2   : > { %v11192_v43 = vadd.f32 %v2290_v60, %v1818_v63 }
 0x1a3   : > { %v11190_v59 = vpop.f32.mrf.mxu1  ;;  %v9429_v1 = vpop.f32.mrf.mxu0 }
 0x1a4   : > { %v11196_v48 = vadd.f32 %v9429_v1, %v1821_v5 }
 0x1a5   : > { %v11194_v39 = vpop.f32.mrf.mxu1  ;;  %v2293_v4 = vpop.f32.mrf.mxu0 }
 0x1a6   : > { %v11200_v52 = vadd.f32 %v2293_v4, %v1819_v14 }
 0x1a7   : > { %v11198_v44 = vpop.f32.mrf.mxu1 }
 0x1a9   : > { %v11202_v6 = vpop.f32.mrf.mxu1 }
 0x1ab   : > { %v11206_v8 = vpop.f32.mrf.mxu1 }
 0x1ad   : > { %v9432_v12 = vpop.f32.mrf.mxu0  ;;  %v11210_v17 = vpop.f32.mrf.mxu1 }
 0x1ae   : > { %v11204_v57 = vadd.f32 %v9432_v12, %v1824_v18 }
 0x1af   : > { %v2306_v46 = vpop.f32.mrf.mxu0  ;;  %v11214_v19 = vpop.f32.mrf.mxu1 }
 0x1b0   : > { %v11208_v63 = vadd.f32 %v2306_v46, %v1822_v55 }
 0x1b1   : > { %v9433_v49 = vpop.f32.mrf.mxu0  ;;  %v11218_v22 = vpop.f32.mrf.mxu1 }
 0x1b2   : > { %v11212_v5 = vadd.f32 %v9433_v49, %v1825_v23 }
 0x1b3   : > { %v2309_v53 = vpop.f32.mrf.mxu0  ;;  %v11222_v3 = vpop.f32.mrf.mxu1 }
 0x1b4   : > { %v11216_v14 = vadd.f32 %v2309_v53, %v1823_v28 }
 0x1b5   : > { %v11226_v27 = vpop.f32.mrf.mxu1 }
 0x1b6   : > { %v9436_v0 = vpop.f32.mrf.mxu0 }
 0x1b7   : > { %v11220_v18 = vadd.f32 %v9436_v0, %v1828_v31  ;;  %v11230_v62 = vpop.f32.mrf.mxu1 }
 0x1b8   : > { %v2322_v58 = vpop.f32.mrf.mxu0 }
 0x1b9   : > { %v11224_v55 = vadd.f32 %v2322_v58, %v1826_v11  ;;  %v11234_v61 = vpop.f32.mrf.mxu1 }
 0x1ba   : > { %v9437_v7 = vpop.f32.mrf.mxu0 }
 0x1bb   : > { %v11228_v23 = vadd.f32 %v9437_v7, %v1829_v36  ;;  %v11236_v31 = vpop.f32.mrf.mxu1 }
 0x1bc   : > { %v2325_v30 = vpop.f32.mrf.mxu0 }
 0x1bd   : > { %12140 = vst [vmem:[#allocation22_spill] sm:$0xff] %v11228_v23  ;;  %v11232_v28 = vadd.f32 %v2325_v30, %v1827_v42  ;;  %v11238_v13 = vpop.f32.mrf.mxu1 }
 0x1be   : > { %v9492_v33 = vpop.f32.mrf.mxu0  ;;  %12142 = vst [vmem:[#allocation24_spill] sm:$0xff] %v11238_v13 }
 0x1bf   : > { %12141 = vst [vmem:[#allocation23_spill] sm:$0xff] %v11232_v28  ;;  %v11240_v15 = vpop.f32.mrf.mxu1 }
 0x1c0   : > { %v2986_v9 = vpop.f32.mrf.mxu0  ;;  %12143 = vst [vmem:[#allocation25_spill] sm:$0xff] %v11240_v15  ;;  %v2766_v15 = vadd.f32 %v11174_v16, %v11161_v2 }
 0x1c1   : > { %v11242_v36 = vpop.f32.mrf.mxu1 }
 0x1c2   : > { %v9493_v11 = vpop.f32.mrf.mxu0  ;;  %12144 = vst [vmem:[#allocation26_spill] sm:$0xff] %v11242_v36 }
 0x1c3   : > { %v9528_v42 = vpop.f32.mrf.mxu1 }
 0x1c4   : > { %v2989_v21 = vpop.f32.mrf.mxu0 }
 0x1c5   : > { %v3533_v54 = vpop.f32.mrf.mxu1 }
 0x1c6   : > { %v9496_v41 = vpop.f32.mrf.mxu0 }
 0x1c7   : > { %v9529_v60 = vpop.f32.mrf.mxu1 }
 0x1c8   : > { %v3002_v24 = vpop.f32.mrf.mxu0 }
 0x1c9   : > { %v3536_v4 = vpop.f32.mrf.mxu1 }
 0x1ca   : > { %v11244_v47 = vpop.f32.mrf.mxu0 }
 0x1cc   : > { %v11246_v50 = vpop.f32.mrf.mxu0 }
 0x1cd   : > { %v11256_v49 = vpop.f32.mrf.mxu1 }
 0x1ce   : > { %v11248_v56 = vpop.f32.mrf.mxu0 }
 0x1cf   : > { %v11260_v0 = vpop.f32.mrf.mxu1 }
 0x1d0   : > { %v11250_v1 = vpop.f32.mrf.mxu0 }
 0x1d1   : > { %v11266_v30 = vpop.f32.mrf.mxu1 }
 0x1d2   : > { %v11252_v12 = vpop.f32.mrf.mxu0 }
 0x1d3   : > { %12145 = vst [vmem:[#allocation27_spill] sm:$0xff] %v11252_v12  ;;  %v11272_v36 = vpop.f32.mrf.mxu1 }
 0x1d4   : > { %v11254_v46 = vpop.f32.mrf.mxu0 }
 0x1d5   : > { %12146 = vst [vmem:[#allocation28_spill] sm:$0xff] %v11254_v46 }
 0x1d6   : > { %v11258_v53 = vpop.f32.mrf.mxu0 }
 0x1d7   : > { %12147 = vst [vmem:[#allocation29_spill] sm:$0xff] %v11258_v53  ;;  %v3087_v53 = vadd.f32 %v9492_v33, %v2766_v15 }
 0x1d8   : > { %v11262_v58 = vpop.f32.mrf.mxu0 }
 0x1d9   : > { %12148 = vst [vmem:[#allocation30_spill] sm:$0xff] %v11262_v58  ;;  %v2764_v58 = vadd.f32 %v11178_v26, %v11164_v34  ;;  %v3634_v13 = vadd.f32 %v9528_v42, %v3087_v53  ;;  %v11295_v34 = vld [vmem:[%s12096_s3] ss:$0 sm:$0xff]  ;;  %v2770_v42 = vadd.f32 %v11190_v59, %v11172_v45  ;;  %v2774_v45 = vadd.f32 %v11206_v8, %v11188_v38 }
 0x1da   : > { %v11264_v7 = vpop.f32.mrf.mxu0 }
 0x1db   : > { %12149 = vst [vmem:[#allocation31_spill] sm:$0xff] %v11264_v7  ;;  %v11282_v7 = vpop.f32.mrf.mxu1 }
 0x1dc   : > { %v11268_v40 = vpop.f32.mrf.mxu0 }
 0x1dd   : > { %12150 = vst [vmem:[#allocation32_spill] sm:$0xff] %v11268_v40  ;;  %v3085_v40 = vadd.f32 %v2986_v9, %v2764_v58  ;;  %v11290_v2 = vpop.f32.mrf.mxu1 }
 0x1de   : > { %v11270_v25 = vpop.f32.mrf.mxu0 }
 0x1df   : > { %12151 = vst [vmem:[#allocation33_spill] sm:$0xff] %v11270_v25  ;;  %v2767_v25 = vadd.f32 %v11182_v32, %v11167_v37  ;;  %v3632_v33 = vadd.f32 %v3533_v54, %v3085_v40  ;;  %v11297_v37 = vpop.f32.mrf.mxu1  ;;  %v2768_v40 = vadd.f32 %v11194_v39, %v11176_v29  ;;  %v2772_v39 = vadd.f32 %v11210_v17, %v11192_v43 }
 0x1e0   : > { %v11274_v28 = vpop.f32.mrf.mxu0  ;;  %v3095_v43 = vadd.f32 %v11248_v56, %v2774_v45  ;;  %v12157_v45 = vld [vmem:[#allocation28_spill] sm:$0xff] }
 0x1e1   : > { %12152 = vst [vmem:[#allocation34_spill] sm:$0xff] %v11274_v28  ;;  %v2765_v28 = vadd.f32 %v11186_v35, %v11170_v20  ;;  %v3088_v12 = vadd.f32 %v9493_v11, %v2767_v25  ;;  %v3089_v59 = vadd.f32 %v3002_v24, %v2768_v40  ;;  %v2778_v24 = vadd.f32 %v11222_v3, %v11204_v57 }
 0x1e2   : > { %v11278_v23 = vpop.f32.mrf.mxu0  ;;  %v2777_v40 = vadd.f32 %v11234_v61, %v11216_v14  ;;  %v12156_v14 = vld [vmem:[#allocation27_spill] sm:$0xff] }
 0x1e3   : > { %12153 = vst [vmem:[#allocation35_spill] sm:$0xff] %v11278_v23  ;;  %v3086_v26 = vadd.f32 %v2989_v21, %v2765_v28  ;;  %v3635_v23 = vadd.f32 %v9529_v60, %v3088_v12  ;;  %v11305_v28 = vpop.f32.mrf.mxu1  ;;  %v2771_v60 = vadd.f32 %v11198_v44, %v11180_v51 }
 0x1e4   : > { %v11284_v46 = vpop.f32.mrf.mxu0 }
 0x1e5   : > { %12154 = vst [vmem:[#allocation36_spill] sm:$0xff] %v11284_v46  ;;  %v3633_v35 = vadd.f32 %v3536_v4, %v3086_v26  ;;  %v3091_v4 = vadd.f32 %v9496_v41, %v2770_v42  ;;  %v3092_v51 = vadd.f32 %v11244_v47, %v2771_v60 }
 0x1e6   : > { %v9564_v16 = vpop.f32.mrf.mxu0 }
 0x1e7   : > { %v4041_v15 = vadd.f32 %v9564_v16, %v3634_v13  ;;  %v3639_v26 = vadd.f32 %v11266_v30, %v3092_v51  ;;  %v12159_v51 = vld [vmem:[#allocation22_spill] sm:$0xff] }
 0x1e8   : > { %v3940_v46 = vpop.f32.mrf.mxu0 }
 0x1e9   : > { %v4108_v32 = vadd.f32 %v11295_v34, %v4041_v15  ;;  %v4039_v20 = vadd.f32 %v3940_v46, %v3632_v33  ;;  %v2775_v46 = vadd.f32 %v11214_v19, %v11196_v48  ;;  %v3638_v48 = vadd.f32 %v11256_v49, %v3091_v4 }
 0x1ea   : > { %v9565_v25 = vpop.f32.mrf.mxu0  ;;  %v3636_v19 = vadd.f32 %v11260_v0, %v3089_v59 }
 0x1eb   : > { %v4106_v9 = vadd.f32 %v11295_v34, %v4039_v20  ;;  %v4042_v11 = vadd.f32 %v9565_v25, %v3635_v23  ;;  %v4128_v53 = vmax.f32 %v4108_v32, 0.0  ;;  %v2769_v23 = vadd.f32 %v11202_v6, %v11184_v10  ;;  %v11322_v6 = vpop.f32.mrf.mxu1 }
 0x1ec   : > { %v3943_v58 = vpop.f32.mrf.mxu0  ;;  %v2773_v10 = vadd.f32 %v11218_v22, %v11200_v52  ;;  %v2776_v20 = vadd.f32 %v11226_v27, %v11208_v63  ;;  %v2782_v63 = vadd.f32 %v11236_v31, %v11220_v18  ;;  %v3093_v27 = vadd.f32 %v11250_v1, %v2772_v39  ;;  %v12158_v31 = vld [vmem:[#allocation29_spill] sm:$0xff] }
 0x1ed   : > { %v4126_v13 = vmax.f32 %v4106_v9, 0.0  ;;  %v4109_v21 = vadd.f32 %v11295_v34, %v4042_v11  ;;  %v4040_v54 = vadd.f32 %v3943_v58, %v3633_v35  ;;  %v4170_v44 = vrot.slane %v4128_v53, 7 }
 0x1ee   : > { %v3090_v16 = vadd.f32 %v11246_v50, %v2769_v23  ;;  %v9568_v17 = vpop.f32.mrf.mxu0  ;;  %v11334_v50 = vpop.f32.mrf.mxu1  ;;  %v2779_v11 = vadd.f32 %v11230_v62, %v11212_v5  ;;  %v12155_v23 = vld [vmem:[#allocation24_spill] sm:$0xff]  ;;  %v3096_v61 = vadd.f32 %v12156_v14, %v2775_v46  ;;  %v3094_v18 = vadd.f32 %v12157_v45, %v2773_v10 }
 0x1ef   : > { %v4129_v12 = vmax.f32 %v4109_v21, 0.0  ;;  %v4107_v29 = vadd.f32 %v11295_v34, %v4040_v54  ;;  %v4167_v41 = vrot.slane %v4126_v13, 7  ;;  %v4228_v33 = vsel %vm4166_vm6, 0.0, %v4170_v44 }
 0x1f0   : > { %v4045_v57 = vadd.f32 %v9568_v17, %v3638_v48  ;;  %v3956_v3 = vpop.f32.mrf.mxu0  ;;  %v3637_v42 = vadd.f32 %v11272_v36, %v3090_v16  ;;  %v3642_v54 = vadd.f32 %v11282_v7, %v3095_v43  ;;  %v9541_v5 = vpop.f32.mrf.mxu1  ;;  %v2780_v4 = vadd.f32 %v12155_v23, %v11224_v55  ;;  %v12162_v16 = vld [vmem:[#allocation31_spill] sm:$0xff]  ;;  %v12166_v23 = vld [vmem:[#allocation33_spill] sm:$0xff] }
 0x1f1   : > { %v4171_v38 = vrot.slane %v4129_v12, 7  ;;  %v4127_v8 = vmax.f32 %v4107_v29, 0.0  ;;  %v4227_v56 = vsel %vm4166_vm6, 0.0, %v4167_v41  ;;  %v4043_v32 = vadd.f32 %v3956_v3, %v3636_v19 }
 0x1f2   : > { %v4112_v35 = vadd.f32 %v11295_v34, %v4045_v57  ;;  %v9569_v9 = vpop.f32.mrf.mxu0  ;;  %v3099_v1 = vadd.f32 %v12158_v31, %v2778_v24  ;;  %v3100_v43 = vadd.f32 %v12162_v16, %v2779_v11  ;;  %v3640_v55 = vadd.f32 %v11290_v2, %v3093_v27  ;;  %v3584_v48 = vpop.f32.mrf.mxu1 }
 0x1f3   : > { %v4172_v47 = vsel %vm4166_vm6, %v4170_v44, %v4171_v38  ;;  %v4238_v52 = vsel %vm4166_vm6, %v4171_v38, 0.0  ;;  %v4168_v22 = vrot.slane %v4127_v8, 7  ;;  %v4110_v53 = vadd.f32 %v11295_v34, %v4043_v32  ;;  %v12160_v44 = vld [vmem:[#allocation25_spill] sm:$0xff]  ;;  %v12161_v38 = vld [vmem:[#allocation30_spill] sm:$0xff] }
 0x1f4   : > { %v8829_v15 = vpack.c.bf16 %v4238_v52, %v4172_v47  ;;  %v4046_v58 = vadd.f32 %v9569_v9, %v3639_v26  ;;  %v4132_v13 = vmax.f32 %v4112_v35, 0.0  ;;  %v3959_v21 = vpop.f32.mrf.mxu0  ;;  %v3097_v8 = vadd.f32 %v12161_v38, %v2776_v20 }
 0x1f5   : > { %v4169_v49 = vsel %vm4166_vm6, %v4167_v41, %v4168_v22  ;;  %v4237_v0 = vsel %vm4166_vm6, %v4168_v22, 0.0  ;;  %v4130_v62 = vmax.f32 %v4110_v53, 0.0  ;;  %v4044_v60 = vadd.f32 %v3959_v21, %v3637_v42 }
 0x1f6   : > { %8932 = vst [vmem:[#allocation2 + $0x10] sm:$0xff] %v8829_v15   ;;  %v8819_v25 = vpack.c.bf16 %v4169_v49, %v4227_v56  ;;  %v8824_v30 = vpack.c.bf16 %v4228_v33, %v4237_v0  ;;  %v4113_v36 = vadd.f32 %v11295_v34, %v4046_v58  ;;  %v9572_v59 = vpop.f32.mrf.mxu0  ;;  %v4176_v12 = vrot.slane %v4132_v13, 7  ;;  %v12163_v58 = vld [vmem:[#allocation32_spill] sm:$0xff] }
 0x1f7   : > { %v4111_v39 = vadd.f32 %v11295_v34, %v4044_v60  ;;  %v4049_v7 = vadd.f32 %v9572_v59, %v3642_v54  ;;  %v2783_v41 = vadd.f32 %v12160_v44, %v12159_v51  ;;  %v4173_v10 = vrot.slane %v4130_v62, 7  ;;  %v12164_v62 = vld [vmem:[#allocation23_spill] sm:$0xff] }
 0x1f8   : > { %8820 = vst [vmem:[#allocation2] sm:$0xff] %v8819_v25   ;;  %8931 = vst [vmem:[#allocation2 + $0x8] sm:$0xff] %v8824_v30   ;;  %v4133_v29 = vmax.f32 %v4113_v36, 0.0  ;;  %v3972_v46 = vpop.f32.mrf.mxu0  ;;  %v3643_v47 = vadd.f32 %v11297_v37, %v3096_v61  ;;  %v3641_v52 = vadd.f32 %v11305_v28, %v3094_v18  ;;  %v3646_v22 = vadd.f32 %v11322_v6, %v3099_v1  ;;  %v9544_v37 = vpop.f32.mrf.mxu1  ;;  %v12165_v36 = vld [vmem:[#allocation26_spill] sm:$0xff] }
 0x1f9   : > { %v4131_v24 = vmax.f32 %v4111_v39, 0.0  ;;  %v4116_v19 = vadd.f32 %v11295_v34, %v4049_v7  ;;  %v4047_v26 = vadd.f32 %v3972_v46, %v3640_v55  ;;  %v4230_v15 = vsel %vm4166_vm6, 0.0, %v4176_v12  ;;  %v12168_v39 = vld [vmem:[#allocation35_spill] sm:$0xff] }
 0x1fa   : > { %v4177_v17 = vrot.slane %v4133_v29, 7  ;;  %v9573_v33 = vpop.f32.mrf.mxu0  ;;  %v4229_v28 = vsel %vm4166_vm6, 0.0, %v4173_v10  ;;  %v3098_v27 = vadd.f32 %v12163_v58, %v2777_v40  ;;  %v3644_v13 = vadd.f32 %v11334_v50, %v3097_v8  ;;  %v3597_v1 = vpop.f32.mrf.mxu1  ;;  %v12167_v29 = vld [vmem:[#allocation34_spill] sm:$0xff] }
 0x1fb   : > { %v4174_v3 = vrot.slane %v4131_v24, 7  ;;  %v4136_v49 = vmax.f32 %v4116_v19, 0.0  ;;  %v4114_v0 = vadd.f32 %v11295_v34, %v4047_v26  ;;  %v4050_v32 = vadd.f32 %v9573_v33, %v3643_v47 }
 0x1fc   : > { %v4178_v57 = vsel %vm4166_vm6, %v4176_v12, %v4177_v17  ;;  %v4240_v2 = vsel %vm4166_vm6, %v4177_v17, 0.0  ;;  %v3975_v20 = vpop.f32.mrf.mxu0  ;;  %v2781_v60 = vadd.f32 %v12165_v36, %v12164_v62  ;;  %v3103_v14 = vadd.f32 %v12166_v23, %v2782_v63 }
 0x1fd   : > { %v8844_v56 = vpack.c.bf16 %v4240_v2, %v4178_v57  ;;  %v4175_v6 = vsel %vm4166_vm6, %v4173_v10, %v4174_v3  ;;  %v4239_v25 = vsel %vm4166_vm6, %v4174_v3, 0.0  ;;  %v4048_v30 = vadd.f32 %v3975_v20, %v3641_v52 }
 0x1fe   : > { %v8834_v35 = vpack.c.bf16 %v4175_v6, %v4229_v28  ;;  %v8839_v9 = vpack.c.bf16 %v4230_v15, %v4239_v25  ;;  %v4134_v11 = vmax.f32 %v4114_v0, 0.0  ;;  %v4117_v42 = vadd.f32 %v11295_v34, %v4050_v32 }
 0x1ff   : > { %8935 = vst [vmem:[#allocation2 + $0x28] sm:$0xff] %v8844_v56   ;;  %v4115_v21 = vadd.f32 %v11295_v34, %v4048_v30  ;;  %v4182_v61 = vrot.slane %v4136_v49, 7  ;;  %v3647_v31 = vadd.f32 %v9541_v5, %v3100_v43  ;;  %v3101_v50 = vadd.f32 %v12167_v29, %v2780_v4  ;;  %v9545_v4 = vpop.f32.mrf.mxu1  ;;  %v12169_v56 = vld [vmem:[#allocation36_spill] sm:$0xff] }
 0x200   : > { %8933 = vst [vmem:[#allocation2 + $0x18] sm:$0xff] %v8834_v35   ;;  %8934 = vst [vmem:[#allocation2 + $0x20] sm:$0xff] %v8839_v9   ;;  %v4137_v45 = vmax.f32 %v4117_v42, 0.0  ;;  %v4179_v59 = vrot.slane %v4134_v11, 7  ;;  %v3104_v7 = vadd.f32 %v12168_v39, %v2783_v41  ;;  %v3645_v8 = vadd.f32 %v3584_v48, %v3098_v27 }
 0x201   : > { %v4135_v12 = vmax.f32 %v4115_v21, 0.0  ;;  %v3650_v46 = vadd.f32 %v9544_v37, %v3103_v14  ;;  %v4232_v5 = vsel %vm4166_vm6, 0.0, %v4182_v61  ;;  %v3648_v15 = vadd.f32 %v3597_v1, %v3101_v50  ;;  %v3600_v37 = vpop.f32.mrf.mxu1 }
 0x202   : > { %v4183_v51 = vrot.slane %v4137_v45, 7  ;;  %v4231_v41 = vsel %vm4166_vm6, 0.0, %v4179_v59  ;;  %v3102_v49 = vadd.f32 %v12169_v56, %v2781_v60  ;;  %v3651_v20 = vadd.f32 %v9545_v4, %v3104_v7 }
 0x203   : > { %v9576_v53 = vpop.f32.mrf.mxu0  ;;  %v4180_v63 = vrot.slane %v4135_v12, 7 }
 0x204   : > { %v4053_v54 = vadd.f32 %v9576_v53, %v3646_v22  ;;  %v4184_v43 = vsel %vm4166_vm6, %v4182_v61, %v4183_v51  ;;  %v4242_v10 = vsel %vm4166_vm6, %v4183_v51, 0.0  ;;  %v3649_v27 = vadd.f32 %v3600_v37, %v3102_v49 }
 0x205   : > { %v3988_v18 = vpop.f32.mrf.mxu0  ;;  %v8859_v24 = vpack.c.bf16 %v4242_v10, %v4184_v43  ;;  %v4181_v19 = vsel %vm4166_vm6, %v4179_v59, %v4180_v63  ;;  %v4241_v48 = vsel %vm4166_vm6, %v4180_v63, 0.0 }
 0x206   : > { %v4051_v40 = vadd.f32 %v3988_v18, %v3644_v13  ;;  %v4120_v44 = vadd.f32 %v11295_v34, %v4053_v54  ;;  %v8849_v47 = vpack.c.bf16 %v4181_v19, %v4231_v41  ;;  %v8854_v52 = vpack.c.bf16 %v4232_v5, %v4241_v48 }
 0x207   : > { %v9577_v38 = vpop.f32.mrf.mxu0  ;;  %8938 = vst [vmem:[#allocation2 + $0x40] sm:$0xff] %v8859_v24  }
 0x208   : > { %v4118_v16 = vadd.f32 %v11295_v34, %v4051_v40  ;;  %v4054_v55 = vadd.f32 %v9577_v38, %v3647_v31  ;;  %v4140_v22 = vmax.f32 %v4120_v44, 0.0  ;;  %8936 = vst [vmem:[#allocation2 + $0x30] sm:$0xff] %v8849_v47   ;;  %8937 = vst [vmem:[#allocation2 + $0x38] sm:$0xff] %v8854_v52  }
 0x209   : > { %v3991_v17 = vpop.f32.mrf.mxu0 }
 0x20a   : > { %v4121_v26 = vadd.f32 %v11295_v34, %v4054_v55  ;;  %v4138_v57 = vmax.f32 %v4118_v16, 0.0  ;;  %v4052_v2 = vadd.f32 %v3991_v17, %v3645_v8  ;;  %v4188_v25 = vrot.slane %v4140_v22, 7 }
 0x20b   : > { %v9580_v33 = vpop.f32.mrf.mxu0 }
 0x20c   : > { %v4057_v3 = vadd.f32 %v9580_v33, %v3650_v46  ;;  %v4141_v0 = vmax.f32 %v4121_v26, 0.0  ;;  %v4119_v28 = vadd.f32 %v11295_v34, %v4052_v2  ;;  %v4185_v11 = vrot.slane %v4138_v57, 7 }
 0x20d   : > { %v4004_v32 = vpop.f32.mrf.mxu0  ;;  %v4234_v45 = vsel %vm4166_vm6, 0.0, %v4188_v25 }
 0x20e   : > { %v4055_v6 = vadd.f32 %v4004_v32, %v3648_v15  ;;  %v4189_v30 = vrot.slane %v4141_v0, 7  ;;  %v4124_v35 = vadd.f32 %v11295_v34, %v4057_v3  ;;  %v4139_v42 = vmax.f32 %v4119_v28, 0.0 }
 0x20f   : > { %v9581_v9 = vpop.f32.mrf.mxu0  ;;  %v4233_v18 = vsel %vm4166_vm6, 0.0, %v4185_v11 }
 0x210   : > { %v4122_v53 = vadd.f32 %v11295_v34, %v4055_v6  ;;  %v4058_v58 = vadd.f32 %v9581_v9, %v3651_v20  ;;  %v4190_v13 = vsel %vm4166_vm6, %v4188_v25, %v4189_v30  ;;  %v4244_v21 = vsel %vm4166_vm6, %v4189_v30, 0.0 }
 0x211   : > { %v4007_v54 = vpop.f32.mrf.mxu0  ;;  %v8874_v62 = vpack.c.bf16 %v4244_v21, %v4190_v13  ;;  %v4186_v36 = vrot.slane %v4139_v42, 7  ;;  %v4144_v60 = vmax.f32 %v4124_v35, 0.0 }
 0x212   : > { %v4142_v23 = vmax.f32 %v4122_v53, 0.0  ;;  %v4125_v14 = vadd.f32 %v11295_v34, %v4058_v58  ;;  %v4056_v61 = vadd.f32 %v4007_v54, %v3649_v27 }
 0x213   : > { %8941 = vst [vmem:[#allocation2 + $0x58] sm:$0xff] %v8874_v62   ;;  %v4187_v31 = vsel %vm4166_vm6, %v4185_v11, %v4186_v36  ;;  %v4243_v1 = vsel %vm4166_vm6, %v4186_v36, 0.0  ;;  %v4194_v50 = vrot.slane %v4144_v60, 7 }
 0x214   : > { %v8864_v59 = vpack.c.bf16 %v4187_v31, %v4233_v18  ;;  %v8869_v12 = vpack.c.bf16 %v4234_v45, %v4243_v1  ;;  %v4145_v40 = vmax.f32 %v4125_v14, 0.0  ;;  %v4123_v29 = vadd.f32 %v11295_v34, %v4056_v61 }
 0x215   : > { %v4191_v39 = vrot.slane %v4142_v23, 7  ;;  %v4236_v16 = vsel %vm4166_vm6, 0.0, %v4194_v50 }
 0x216   : > { %8939 = vst [vmem:[#allocation2 + $0x48] sm:$0xff] %v8864_v59   ;;  %8940 = vst [vmem:[#allocation2 + $0x50] sm:$0xff] %v8869_v12   ;;  %v4195_v7 = vrot.slane %v4145_v40, 7  ;;  %v4143_v51 = vmax.f32 %v4123_v29, 0.0 }
 0x217   : > { %v4235_v55 = vsel %vm4166_vm6, 0.0, %v4191_v39 }
 0x218   : > { %v4196_v44 = vsel %vm4166_vm6, %v4194_v50, %v4195_v7  ;;  %v4246_v38 = vsel %vm4166_vm6, %v4195_v7, 0.0  ;;  %v4192_v8 = vrot.slane %v4143_v51, 7 }
 0x219   : > { %v8889_v63 = vpack.c.bf16 %v4246_v38, %v4196_v44  ;;  %4410 = sbr.rel (%p8550_p1) target bundleno = 545 (0x221), region = 56 }
 0x21a   : > { %v4193_v46 = vsel %vm4166_vm6, %v4191_v39, %v4192_v8  ;;  %v4245_v34 = vsel %vm4166_vm6, %v4192_v8, 0.0 }
 0x21b   : > { %8944 = vst [vmem:[#allocation2 + $0x70] sm:$0xff] %v8889_v63   ;;  %v8879_v5 = vpack.c.bf16 %v4193_v46, %v4235_v55  ;;  %v8884_v43 = vpack.c.bf16 %v4236_v16, %v4245_v34 }
 0x21d   : > { %8942 = vst [vmem:[#allocation2 + $0x60] sm:$0xff] %v8879_v5   ;;  %8943 = vst [vmem:[#allocation2 + $0x68] sm:$0xff] %v8884_v43  }
 0x21e   : > { %v10411_v10 = vmov 0  }
 0x21f   : > { %4411 = vst [vmem:[#allocation2] sm:$0xf] %v10411_v10  ;;  %4412 = vst [vmem:[#allocation2 + $0x4] sm:$0xf] %v10411_v10 }
 0x220   : > { %4413 = vst [vmem:[#allocation2 + $0x8] sm:$0xf] %v10411_v10 }
 0x221 PF: > { %p8551_p3 = scmp.ne.s32.totalorder %s10388_s24, 1 }
 0x223   : > { %4417 = sbr.rel (%p8551_p3) target bundleno = 555 (0x22b), region = 60 }
 0x228   : > { %v10412_v17 = vmov 0  }
 0x229   : > { %4419 = vst [vmem:[#allocation2 + $0x6c] sm:$0xf] %v10412_v17  ;;  %4420 = vst [vmem:[#allocation2 + $0x70] sm:$0xf] %v10412_v17 }
 0x22a   : > { %4421 = vst [vmem:[#allocation2 + $0x74] sm:$0xf] %v10412_v17 }
 0x22b PF: > { %v10104_v4 = vld [vmem:[#allocation9 + $0x38] sm:$0xff]   ;;  %v10105_v41 = vld [vmem:[#allocation9 + $0x30] sm:$0xff]   ;;  %v10106_v24 = vld [vmem:[#allocation9 + $0x28] sm:$0xff]   ;;  %s12222_s10 = sld [smem:[#allocation15_spill]]  ;;  %s8815_s26 = sshll.u32 %s10388_s24, 4 }
 0x22c   : > { %9582 = vmatprep.subr.bf16.mxu1 %v10104_v4  ;;  %v10107_v19 = vld [vmem:[#allocation9 + $0x20] sm:$0xff]   ;;  %v10112_v48 = vld [vmem:[#allocation2] sm:$0xff]   ;;  %v10108_v47 = vld [vmem:[#allocation9 + $0x18] sm:$0xff]   ;;  %s8033_s7 = sshll.u32 %s11412_s17, 4  ;;  %s12224_s15 = sld [smem:[#allocation47_spill]]  ;;  %s12022_s7 = int_to_ptr.vmem [resolvable:$true] %s8033_s7 }
 0x22d   : > { %9583 = vmatpush3.bf16.msra.mxu1 %v10104_v4  ;;  %9598 = vmatprep.mubr.bf16.mxu1 %v10112_v48  ;;  %v10116_v52 = vld [vmem:[#allocation9 + $0xb8] sm:$0xff]   ;;  %v10109_v22 = vld [vmem:[#allocation9 + $0x10] sm:$0xff]   ;;  %v10122_v33 = vld [vmem:[#allocation9 + $0xa8] sm:$0xff]   ;;  %s12033_s6 = scalar_lea.sflag [#allocation6], %s283_s2  ;;  %s10413_s9 = smov [#allocation10]  }
 0x22e   : > { %9584 = vmatprep.subr.bf16.mxu1 %v10105_v41  ;;  %9646 = vmatprep.subr.bf16.mxu0 %v10116_v52  ;;  %v10120_v26 = vld [vmem:[#allocation9 + $0xb0] sm:$0xff]   ;;  %v10110_v15 = vld [vmem:[#allocation9 + $0x8] sm:$0xff]   ;;  %v10126_v57 = vld [vmem:[#allocation9 + $0xa0] sm:$0xff]   ;;  %s10284_s11 = sshll.u32 %s10413_s9, 4  ;;  %s10285_s11 = int_to_ptr.vmem [resolvable:$false] %s10284_s11 }
 0x22f   : > { %9647 = vmatpush3.bf16.msra.mxu0 %v10116_v52  ;;  %v10111_v2 = vld [vmem:[#allocation9] sm:$0xff]   ;;  %v10128_v3 = vld [vmem:[#allocation9 + $0x98] sm:$0xff]   ;;  %v10132_v49 = vld [vmem:[#allocation9 + $0x90] sm:$0xff]   ;;  %s10286_s1 = scalar_lea.vmem %s10285_s11, 2048  ;;  %p10287_p12 = scmp.lt.s32.totalorder %s12022_s7, %s10285_s11 }
 0x230   : > { %9648 = vmatprep.subr.bf16.mxu0 %v10120_v26  ;;  %v10114_v56 = vld [vmem:[#allocation9 + $0x78] sm:$0xff]   ;;  %v10115_v32 = vld [vmem:[#allocation9 + $0x70] sm:$0xff]   ;;  %v10117_v20 = vld [vmem:[#allocation2 + $0x18] sm:$0xff]  }
 0x231   : > { %9585 = vmatpush3.bf16.msra.mxu1 %v10105_v41  ;;  %v10113_v0 = vld [vmem:[#allocation2 + $0xc] sm:$0xff]   ;;  %v4663_v37 = vld [vmem:[#allocation2] sm:$0xf]  ;;  %v4664_v28 = vld [vmem:[#allocation2 + $0x4] sm:$0xf]  ;;  %s8764_s29 = sshll.u32 %s12222_s10, 5 }
 0x232   : > { %9586 = vmatprep.subr.bf16.mxu1 %v10106_v24  ;;  %v4665_v6 = vld [vmem:[#allocation2 + $0x8] sm:$0x1]  ;;  %v4688_v25 = vshrl.u32 %v4663_v37, 16  ;;  %v4691_v30 = vshll.u32 %v4663_v37, 16  ;;  %v4697_v35 = vshll.u32 %v4664_v28, 16  ;;  %v4701_v9 = vshrl.u32 %v4664_v28, 16  ;;  %s8030_s5 = sadd.s32 %s8815_s26, %s8764_s29 }
 0x233   : > { %9649 = vmatpush3.bf16.msra.mxu0 %v10120_v26  ;;  %v4666_v11 = vld [vmem:[#allocation2 + $0xc] sm:$0xf]  ;;  %v10134_v42 = vld [vmem:[#allocation9 + $0x88] sm:$0xff]   ;;  %v4667_v53 = vld [vmem:[#allocation2 + $0x10] sm:$0xf]  ;;  %v4707_v54 = vshll.u32 %v4665_v6, 16 }
 0x234   : > { %9650 = vmatprep.subr.bf16.mxu0 %v10122_v33  ;;  %v4712_v58 = vshrl.u32 %v4666_v11, 16  ;;  %v10119_v27 = vld [vmem:[#allocation9 + $0x68] sm:$0xff]   ;;  %v4690_v13 = vrot.slane %v4688_v25, 4  ;;  %v4693_v21 = vrot.slane %v4691_v30, 5  ;;  %v11416_v62 = vrot.slane %v4697_v35, 5  ;;  %v10136_v59 = vld [vmem:[#allocation9 + $0x80] sm:$0xff]  }
 0x235   : > { %9587 = vmatpush3.bf16.msra.mxu1 %v10106_v24  ;;  %v4703_v36 = vrot.slane %v4701_v9, 4  ;;  %v4715_v60 = vshll.u32 %v4666_v11, 16  ;;  %v4721_v23 = vshll.u32 %v4667_v53, 16  ;;  %v10118_v14 = vld [vmem:[#allocation2 + $0x24] sm:$0xff]   ;;  %v4668_v61 = vld [vmem:[#allocation2 + $0x14] sm:$0x1] }
 0x236   : > { %9588 = vmatprep.subr.bf16.mxu1 %v10107_v19  ;;  %v4714_v45 = vrot.slane %v4712_v58, 4  ;;  %v4725_v18 = vshrl.u32 %v4667_v53, 16  ;;  %v4694_v31 = vor.u32 %v4693_v21, %v4690_v13  ;;  %v5120_v12 = vld [vmem:[#allocation2] sm:$0xe]  ;;  %v10121_v40 = vld [vmem:[#allocation9 + $0x60] sm:$0xff]   ;;  %v10123_v29 = vld [vmem:[#allocation2 + $0x30] sm:$0xff]  }
 0x237   : > { %9651 = vmatpush3.bf16.msra.mxu0 %v10122_v33  ;;  %v4717_v1 = vrot.slane %v4715_v60, 5  ;;  %v11418_v50 = vrot.slane %v4707_v54, 5  ;;  %v11420_v39 = vrot.slane %v4721_v23, 5  ;;  %v5121_v51 = vld [vmem:[#allocation2 + $0x4] sm:$0xf]  ;;  %v4704_v44 = vor.u32 %v4703_v36, %v11416_v62  ;;  %v10125_v24 = vld [vmem:[#allocation9 + $0x58] sm:$0xff]  }
 0x238   : > { %9652 = vmatprep.subr.bf16.mxu0 %v10126_v57  ;;  %v4727_v7 = vrot.slane %v4725_v18, 4  ;;  %v5122_v38 = vld [vmem:[#allocation2 + $0x8] sm:$0x1]  ;;  %v8584_v8 = vrot.slane %v5120_v12, 9  ;;  %v5170_v63 = vrot.slane %v5121_v51, 5  ;;  %v4731_v16 = vshll.u32 %v4668_v61, 16 }
 0x239   : > { %9589 = vmatpush3.bf16.msra.mxu1 %v10107_v19  ;;  %v5173_v55 = vrot.slane %v5122_v38, 5  ;;  %v5123_v46 = vld [vmem:[#allocation2 + $0xc] sm:$0xe]  ;;  %v11423_v34 = vrot.slane %v4694_v31, 4  ;;  %v4718_v5 = vor.u32 %v4717_v1, %v4714_v45  ;;  %v5124_v4 = vld [vmem:[#allocation2 + $0x10] sm:$0xf] }
 0x23a   : > { %9590 = vmatprep.subr.bf16.mxu1 %v10108_v47  ;;  %v5171_v10 = vsel %vm10718_vm5, %v8584_v8, %v5170_v63  ;;  %v5172_v17 = vrot.slane %v5170_v63, 4  ;;  %v5125_v41 = vld [vmem:[#allocation2 + $0x14] sm:$0x1]  ;;  %v4728_v19 = vor.u32 %v4727_v7, %v11420_v39  ;;  %v8585_v48 = vrot.slane %v5123_v46, 9  ;;  %v4672_v25 = vld [vmem:[#allocation2 + $0x24] sm:$0xf] }
 0x23b   : > { %9653 = vmatpush3.bf16.msra.mxu0 %v10126_v57  ;;  %v5180_v52 = vrot.slane %v5125_v41, 5  ;;  %v10138_v33 = vld [vmem:[#allocation9 + $0x138] sm:$0xff]   ;;  %v10124_v57 = vld [vmem:[#allocation2 + $0x3c] sm:$0xff]   ;;  %v10127_v30 = vld [vmem:[#allocation9 + $0x50] sm:$0xff]   ;;  %v4700_v9 = vsel %vm10647_vm2, %v11423_v34, %v11416_v62  ;;  %v4763_v61 = vshll.u32 %v4672_v25, 16  ;;  %s8765_s24 = sshll.u32 %s8030_s5, 6 }
 0x23c   : > { %9654 = vmatprep.subr.bf16.mxu0 %v10128_v3  ;;  %v5174_v26 = vsel %vm10718_vm5, %v5172_v17, %v5173_v55  ;;  %v11440_v11 = vrot.slane %v4728_v19, 4  ;;  %v4673_v58 = vld [vmem:[#allocation2 + $0x28] sm:$0xf]  ;;  %v5127_v38 = vld [vmem:[#allocation2 + $0x1c] sm:$0xf]  ;;  %v10142_v8 = vld [vmem:[#allocation9 + $0x128] sm:$0xff]   ;;  %s12028_s25 = scalar_lea.hbm %s12224_s15, %s8765_s24 }
 0x23d   : > { %9591 = vmatpush3.bf16.msra.mxu1 %v10108_v47  ;;  %v5177_v47 = vrot.slane %v5124_v4, 5  ;;  %v10129_v13 = vld [vmem:[#allocation2 + $0x48] sm:$0xff]   ;;  %v4769_v1 = vshll.u32 %v4673_v58, 16  ;;  %v10131_v63 = vld [vmem:[#allocation9 + $0x48] sm:$0xff]   ;;  %v10133_v19 = vld [vmem:[#allocation9 + $0x40] sm:$0xff]  }
 0x23e   : > { %9592 = vmatprep.subr.bf16.mxu1 %v10109_v22  ;;  %v10140_v45 = vld [vmem:[#allocation9 + $0x130] sm:$0xff]   ;;  %v5128_v46 = vld [vmem:[#allocation2 + $0x20] sm:$0x1] }
 0x23f   : > { %9655 = vmatpush3.bf16.msra.mxu0 %v10128_v3  ;;  %v8592_v3 = vcombine.low %v5171_v10, %v5174_v26  ;;  %v11450_v51 = vrot.slane %v4769_v1, 5  ;;  %v10130_v10 = vld [vmem:[#allocation2 + $0x54] sm:$0xff]   ;;  %v5129_v26 = vld [vmem:[#allocation2 + $0x24] sm:$0xe] }
 0x240   : > { %9656 = vmatprep.subr.bf16.mxu0 %v10132_v49  ;;  %v10146_v1 = vld [vmem:[#allocation9 + $0x118] sm:$0xff]  }
 0x241   : > { %9593 = vmatpush3.bf16.msra.mxu1 %v10109_v22  ;;  %v4705_v22 = vrot.slane %v4704_v44, 4  ;;  %9662 = vmatprep.mubr.bf16.mxu0 %v8592_v3 }
 0x242   : > { %9594 = vmatprep.subr.bf16.mxu1 %v10110_v15 }
 0x243   : > { %9657 = vmatpush3.bf16.msra.mxu0 %v10132_v49  ;;  %v5179_v49 = vrot.slane %v5177_v47, 4  ;;  %v4710_v62 = vsel %vm10647_vm2, %v4705_v22, %v11418_v50 }
 0x244   : > { %9658 = vmatprep.subr.bf16.mxu0 %v10134_v42 }
 0x245   : > { %9595 = vmatpush3.bf16.msra.mxu1 %v10110_v15  ;;  %v4669_v15 = vld [vmem:[#allocation2 + $0x18] sm:$0xf] }
 0x246   : > { %9596 = vmatprep.subr.bf16.mxu1 %v10111_v2  ;;  %v4736_v37 = vshrl.u32 %v4669_v15, 16  ;;  %v4739_v28 = vshll.u32 %v4669_v15, 16 }
 0x247   : > { %9659 = vmatpush3.bf16.msra.mxu0 %v10134_v42  ;;  %v5181_v42 = vsel %vm10718_vm5, %v5179_v49, %v5180_v52 }
 0x248   : > { %9660 = vmatprep.subr.bf16.mxu0 %v10136_v59  ;;  %v4738_v54 = vrot.slane %v4736_v37, 4  ;;  %v4741_v36 = vrot.slane %v4739_v28, 5 }
 0x249   : > { %9597 = vmatpush3.bf16.msra.mxu1 %v10111_v2  ;;  %v11430_v2 = vrot.slane %v4731_v16, 5  ;;  %v8568_v16 = vcombine.low %v4700_v9, %v4710_v62  ;;  %v4676_v9 = vld [vmem:[#allocation2 + $0x34] sm:$0xf]  ;;  %v4678_v62 = vld [vmem:[#allocation2 + $0x3c] sm:$0xf] }
 0x24a   : > { %9614 = vmatprep.subr.bf16.mxu1 %v10114_v56  ;;  %v4742_v18 = vor.u32 %v4741_v36, %v4738_v54  ;;  %v4797_v36 = vshrl.u32 %v4676_v9, 16 }
 0x24b   : > { %9661 = vmatpush3.bf16.msra.mxu0 %v10136_v59  ;;  %v4773_v59 = vshrl.u32 %v4673_v58, 16  ;;  %v4734_v4 = vsel %vm10647_vm2, %v11440_v11, %v11430_v2  ;;  %v8587_v2 = vrot.slane %v5129_v26, 9  ;;  %v10135_v11 = vld [vmem:[#allocation9 + $0xf8] sm:$0xff]   ;;  %v10139_v26 = vld [vmem:[#allocation9 + $0xe8] sm:$0xff]  }
 0x24c   : > { %9599 = vmatmul.mubr.bf16.vlgmr.msra.gmra.mxu1 %v10113_v0  ;;  %v4670_v0 = vld [vmem:[#allocation2 + $0x1c] sm:$0xf]  ;;  %9710 = vmatprep.subr.bf16.mxu0 %v10138_v33  ;;  %v11452_v55 = vrot.slane %v4742_v18, 4 }
 0x24d   : > { %9615 = vmatpush3.bf16.msra.mxu1 %v10114_v56  ;;  %9602 = vmatprep.mubr.bf16.mxu1 %v10117_v20  ;;  %v5178_v56 = vsel %vm10718_vm5, %v8585_v48, %v5177_v47  ;;  %v11434_v20 = vrot.slane %v4718_v5, 4  ;;  %v4745_v6 = vshll.u32 %v4670_v0, 16  ;;  %v4749_v53 = vshrl.u32 %v4670_v0, 16 }
 0x24e   : > { %9616 = vmatprep.subr.bf16.mxu1 %v10115_v32  ;;  %v8593_v21 = vcombine.low %v5178_v56, %v5181_v42  ;;  %v4775_v50 = vrot.slane %v4773_v59, 4  ;;  %v5184_v5 = vrot.slane %v5127_v38, 5  ;;  %v4799_v59 = vrot.slane %v4797_v36, 4 }
 0x24f   : > { %v11444_v60 = vrot.slane %v4745_v6, 5  ;;  %v4751_v23 = vrot.slane %v4749_v53, 4  ;;  %v4724_v17 = vsel %vm10647_vm2, %v11434_v20, %v11420_v39  ;;  %v10144_v20 = vld [vmem:[#allocation9 + $0x120] sm:$0xff]  }
 0x250   : > { %9663 = vmatmul.mubr.bf16.vlgmr.msra.gmra.mxu0 %v8593_v21  ;;  %v4776_v47 = vor.u32 %v4775_v50, %v11450_v51  ;;  %v5186_v22 = vrot.slane %v5184_v5, 4  ;;  %v11469_v56 = vcombine.low %v4724_v17, %v4734_v4  ;;  %v4677_v53 = vld [vmem:[#allocation2 + $0x38] sm:$0x1]  ;;  %v5132_v17 = vld [vmem:[#allocation2 + $0x30] sm:$0xe]  ;;  %v10148_v4 = vld [vmem:[#allocation9 + $0x110] sm:$0xff]  }
 0x251   : > { %9617 = vmatpush3.bf16.msra.mxu1 %v10115_v32  ;;  %v4671_v32 = vld [vmem:[#allocation2 + $0x20] sm:$0x1]  ;;  %9711 = vmatpush3.bf16.msra.mxu0 %v10138_v33  ;;  %v4752_v7 = vor.u32 %v4751_v23, %v11444_v60  ;;  %v5130_v33 = vld [vmem:[#allocation2 + $0x28] sm:$0xf]  ;;  %v4748_v49 = vsel %vm10647_vm2, %v11452_v55, %v11444_v60  ;;  %v4803_v60 = vshll.u32 %v4677_v53, 16 }
 0x252   : > { %9618 = vmatprep.subr.bf16.mxu1 %v10119_v27  ;;  %v4755_v31 = vshll.u32 %v4671_v32, 16  ;;  %9712 = vmatprep.subr.bf16.mxu0 %v10140_v45  ;;  %v5191_v3 = vrot.slane %v5130_v33, 5  ;;  %v11481_v42 = vrot.slane %v4776_v47, 4  ;;  %v4679_v23 = vld [vmem:[#allocation2 + $0x40] sm:$0xf] }
 0x253   : > { %v4753_v39 = vrot.slane %v4752_v7, 4  ;;  %v10137_v7 = vld [vmem:[#allocation9 + $0xf0] sm:$0xff]   ;;  %v4821_v38 = vshrl.u32 %v4679_v23, 16  ;;  %v5134_v47 = vld [vmem:[#allocation2 + $0x38] sm:$0x1] }
 0x254   : > { %9603 = vmatmul.mubr.bf16.gmra.mxu1 %v10118_v14  ;;  %v4760_v14 = vshrl.u32 %v4672_v25, 16  ;;  %v11462_v48 = vrot.slane %v4755_v31, 5  ;;  %v5192_v6 = vsel %vm10718_vm5, %v8587_v2, %v5191_v3  ;;  %v5193_v25 = vrot.slane %v5191_v3, 4  ;;  %v4680_v31 = vld [vmem:[#allocation2 + $0x44] sm:$0x1] }
 0x255   : > { %9619 = vmatpush3.bf16.msra.mxu1 %v10119_v27  ;;  %9606 = vmatprep.mubr.bf16.mxu1 %v10123_v29  ;;  %v4674_v27 = vld [vmem:[#allocation2 + $0x2c] sm:$0x1]  ;;  %v5126_v29 = vld [vmem:[#allocation2 + $0x18] sm:$0xe] }
 0x256   : > { %9620 = vmatprep.subr.bf16.mxu1 %v10121_v40  ;;  %v4762_v12 = vrot.slane %v4760_v14, 4  ;;  %v4779_v44 = vshll.u32 %v4674_v27, 16  ;;  %v8586_v34 = vrot.slane %v5126_v29, 9  ;;  %9713 = vmatpush3.bf16.msra.mxu0 %v10140_v45  ;;  %v4758_v21 = vsel %vm10647_vm2, %v4753_v39, %v11462_v48  ;;  %v5133_v48 = vld [vmem:[#allocation2 + $0x34] sm:$0xf] }
 0x257   : > { %9714 = vmatprep.subr.bf16.mxu0 %v10142_v8  ;;  %v4811_v29 = vshll.u32 %v4678_v62, 16  ;;  %v5198_v39 = vrot.slane %v5133_v48, 5  ;;  %v5139_v48 = vld [vmem:[#allocation2 + $0x4c] sm:$0xf] }
 0x258   : > { %v5185_v52 = vsel %vm10718_vm5, %v8586_v34, %v5184_v5  ;;  %v11467_v15 = vrot.slane %v4779_v44, 5  ;;  %v4817_v44 = vshll.u32 %v4679_v23, 16  ;;  %v4684_v23 = vld [vmem:[#allocation2 + $0x54] sm:$0xf] }
 0x259   : > { %9621 = vmatpush3.bf16.msra.mxu1 %v10121_v40  ;;  %v4765_v40 = vrot.slane %v4763_v61, 5 }
 0x25a   : > { %9622 = vmatprep.subr.bf16.mxu1 %v10125_v24  ;;  %9715 = vmatpush3.bf16.msra.mxu0 %v10142_v8  ;;  %v4827_v8 = vshll.u32 %v4680_v31, 16  ;;  %v11488_v5 = vrot.slane %v4817_v44, 5 }
 0x25b   : > { %v4766_v41 = vor.u32 %v4765_v40, %v4762_v12  ;;  %v4805_v12 = vrot.slane %v4803_v60, 5  ;;  %v4808_v40 = vshrl.u32 %v4678_v62, 16  ;;  %9716 = vmatprep.subr.bf16.mxu0 %v10144_v20 }
 0x25c   : > { %9607 = vmatmul.mubr.bf16.gmra.mxu1 %v10124_v57  ;;  %v5131_v57 = vld [vmem:[#allocation2 + $0x2c] sm:$0x1] }
 0x25d   : > { %9623 = vmatpush3.bf16.msra.mxu1 %v10125_v24  ;;  %9610 = vmatprep.mubr.bf16.mxu1 %v10129_v13  ;;  %v5187_v24 = vrot.slane %v5128_v46, 5  ;;  %v5194_v32 = vrot.slane %v5131_v57, 5  ;;  %v11477_v37 = vrot.slane %v4766_v41, 4  ;;  %v4793_v13 = vshll.u32 %v4676_v9, 16 }
 0x25e   : > { %9624 = vmatprep.subr.bf16.mxu1 %v10127_v30  ;;  %v4810_v55 = vrot.slane %v4808_v40, 4  ;;  %v4813_v46 = vrot.slane %v4811_v29, 5  ;;  %9717 = vmatpush3.bf16.msra.mxu0 %v10144_v20  ;;  %v5201_v57 = vrot.slane %v5134_v47, 5  ;;  %v5200_v20 = vrot.slane %v5198_v39, 4  ;;  %v5140_v47 = vld [vmem:[#allocation2 + $0x50] sm:$0x1] }
 0x25f   : > { %v5188_v0 = vsel %vm10718_vm5, %v5186_v22, %v5187_v24  ;;  %v5195_v54 = vsel %vm10718_vm5, %v5193_v25, %v5194_v32  ;;  %v4795_v18 = vrot.slane %v4793_v13, 5  ;;  %9718 = vmatprep.subr.bf16.mxu0 %v10146_v1  ;;  %v4772_v41 = vsel %vm10647_vm2, %v11477_v37, %v11450_v51  ;;  %v5137_v37 = vld [vmem:[#allocation2 + $0x44] sm:$0x1]  ;;  %v4683_v13 = vld [vmem:[#allocation2 + $0x50] sm:$0x1] }
 0x260   : > { %v8594_v28 = vcombine.low %v5185_v52, %v5188_v0  ;;  %v8595_v14 = vcombine.low %v5192_v6, %v5195_v54  ;;  %v8588_v52 = vrot.slane %v5132_v17, 9  ;;  %v4782_v22 = vsel %vm10647_vm2, %v11481_v42, %v11467_v15  ;;  %v5136_v0 = vld [vmem:[#allocation2 + $0x40] sm:$0xf] }
 0x261   : > { %9625 = vmatpush3.bf16.msra.mxu1 %v10127_v30  ;;  %v4675_v30 = vld [vmem:[#allocation2 + $0x30] sm:$0xf]  ;;  %v5205_v6 = vrot.slane %v5136_v0, 5  ;;  %v5208_v25 = vrot.slane %v5137_v37, 5  ;;  %v8571_v9 = vcombine.low %v4772_v41, %v4782_v22  ;;  %v5202_v53 = vsel %vm10718_vm5, %v5200_v20, %v5201_v57  ;;  %v10145_v22 = vld [vmem:[#allocation9 + $0xd0] sm:$0xff]  }
 0x262   : > { %9626 = vmatprep.subr.bf16.mxu1 %v10131_v63  ;;  %v4784_v58 = vshrl.u32 %v4675_v30, 16  ;;  %v4787_v27 = vshll.u32 %v4675_v30, 16  ;;  %9666 = vmatprep.mubr.bf16.mxu0 %v8594_v28  ;;  %v5199_v32 = vsel %vm10718_vm5, %v8588_v52, %v5198_v39  ;;  %v10150_v30 = vld [vmem:[#allocation9 + $0x108] sm:$0xff]   ;;  %v4856_v40 = vshrl.u32 %v4684_v23, 16  ;;  %v11526_v57 = vld [vmem:[#allocation9 + $0x1b8] sm:$0xff]  }
 0x263   : > { %9667 = vmatmul.mubr.bf16.gmra.mxu0 %v8595_v14  ;;  %v8596_v36 = vcombine.low %v5199_v32, %v5202_v53  ;;  %v5207_v62 = vrot.slane %v5205_v6, 4  ;;  %v4685_v14 = vld [vmem:[#allocation2 + $0x58] sm:$0xf]  ;;  %v4859_v29 = vshll.u32 %v4684_v23, 16  ;;  %v5215_v32 = vrot.slane %v5140_v47, 5 }
 0x264   : > { %9611 = vmatmul.mubr.bf16.gmra.mxu1 %v10130_v10  ;;  %v4786_v61 = vrot.slane %v4784_v58, 4  ;;  %v4789_v45 = vrot.slane %v4787_v27, 5  ;;  %v4823_v10 = vrot.slane %v4821_v38, 4  ;;  %9719 = vmatpush3.bf16.msra.mxu0 %v10146_v1  ;;  %v4681_v58 = vld [vmem:[#allocation2 + $0x48] sm:$0xf]  ;;  %v4869_v17 = vshrl.u32 %v4685_v14, 16 }
 0x265   : > { %9627 = vmatpush3.bf16.msra.mxu1 %v10131_v63  ;;  %9630 = vmatprep.mubr.bf16.mxu1 %v8568_v16  ;;  %v8570_v63 = vcombine.low %v4748_v49, %v4758_v21  ;;  %v4800_v16 = vor.u32 %v4799_v59, %v4795_v18  ;;  %v5135_v49 = vld [vmem:[#allocation2 + $0x3c] sm:$0xe]  ;;  %v4682_v27 = vld [vmem:[#allocation2 + $0x4c] sm:$0xf]  ;;  %v4686_v1 = vld [vmem:[#allocation2 + $0x5c] sm:$0x1]  ;;  %v5209_v59 = vsel %vm10718_vm5, %v5207_v62, %v5208_v25 }
 0x266   : > { %9628 = vmatprep.subr.bf16.mxu1 %v10133_v19  ;;  %v4790_v50 = vor.u32 %v4789_v45, %v4786_v61  ;;  %v4824_v33 = vor.u32 %v4823_v10, %v11488_v5  ;;  %v8589_v28 = vrot.slane %v5135_v49, 9  ;;  %9720 = vmatprep.subr.bf16.mxu0 %v10148_v4  ;;  %v10141_v21 = vld [vmem:[#allocation9 + $0xe0] sm:$0xff]   ;;  %v4832_v61 = vshrl.u32 %v4681_v58, 16  ;;  %v5141_v20 = vld [vmem:[#allocation2 + $0x54] sm:$0xe] }
 0x267   : > { %v4801_v24 = vrot.slane %v4800_v16, 4  ;;  %v4835_v45 = vshll.u32 %v4681_v58, 16  ;;  %v4845_v31 = vshrl.u32 %v4682_v27, 16  ;;  %9670 = vmatprep.mubr.bf16.mxu0 %v8596_v36  ;;  %v4865_v10 = vshll.u32 %v4685_v14, 16  ;;  %v5142_v37 = vld [vmem:[#allocation2 + $0x58] sm:$0xf] }
 0x268   : > { %v4791_v34 = vrot.slane %v4790_v50, 4  ;;  %v11508_v15 = vrot.slane %v4824_v33, 4  ;;  %v5206_v60 = vsel %vm10718_vm5, %v8589_v28, %v5205_v6  ;;  %9721 = vmatpush3.bf16.msra.mxu0 %v10148_v4  ;;  %v4834_v50 = vrot.slane %v4832_v61, 4  ;;  %v10149_v14 = vld [vmem:[#allocation9 + $0xc0] sm:$0xff]  }
 0x269   : > { %9629 = vmatpush3.bf16.msra.mxu1 %v10133_v19  ;;  %v4814_v19 = vor.u32 %v4813_v46, %v4810_v55  ;;  %v4806_v2 = vsel %vm10647_vm2, %v4801_v24, %v4805_v12  ;;  %v4851_v12 = vshll.u32 %v4683_v13, 16  ;;  %9722 = vmatprep.subr.bf16.mxu0 %v10150_v30  ;;  %v4837_v44 = vrot.slane %v4835_v45, 5  ;;  %v5739_v45 = vld [vmem:[#allocation2 + $0xc] sm:$0xf] }
 0x26a   : > { %9678 = vmatprep.subr.bf16.mxu1 %v10135_v11  ;;  %v4796_v51 = vsel %vm10647_vm2, %v4791_v34, %v4795_v18  ;;  %v4841_v18 = vshll.u32 %v4682_v27, 16  ;;  %v4858_v55 = vrot.slane %v4856_v40, 4  ;;  %v4861_v46 = vrot.slane %v4859_v29, 5  ;;  %v10143_v34 = vld [vmem:[#allocation9 + $0xd8] sm:$0xff]  }
 0x26b   : > { %v11504_v3 = vrot.slane %v4814_v19, 4  ;;  %v4853_v16 = vrot.slane %v4851_v12, 5  ;;  %v4875_v4 = vshll.u32 %v4686_v1, 16  ;;  %v5138_v19 = vld [vmem:[#allocation2 + $0x48] sm:$0xe]  ;;  %v4867_v33 = vrot.slane %v4865_v10, 5 }
 0x26c   : > { %9631 = vmatmul.mubr.bf16.vlgmr.msra.gmra.mxu1 %v11469_v56  ;;  %v11506_v56 = vrot.slane %v4827_v8, 5  ;;  %v4843_v38 = vrot.slane %v4841_v18, 5  ;;  %v10154_v8 = vld [vmem:[#allocation9 + $0x100] sm:$0xff]   ;;  %v4862_v24 = vor.u32 %v4861_v46, %v4858_v55  ;;  %9723 = vmatpush3.bf16.msra.mxu0 %v10150_v30  ;;  %v4871_v39 = vrot.slane %v4869_v17, 4  ;;  %v5740_v18 = vld [vmem:[#allocation2 + $0x10] sm:$0xf] }
 0x26d   : > { %9679 = vmatpush3.bf16.msra.mxu1 %v10135_v11  ;;  %9634 = vmatprep.mubr.bf16.mxu1 %v8570_v63  ;;  %v8572_v11 = vcombine.low %v4796_v51, %v4806_v2  ;;  %v4820_v42 = vsel %vm10647_vm2, %v11504_v3, %v11488_v5  ;;  %v4847_v63 = vrot.slane %v4845_v31, 4  ;;  %v4838_v5 = vor.u32 %v4837_v44, %v4834_v50  ;;  %v5143_v30 = vld [vmem:[#allocation2 + $0x5c] sm:$0x1]  ;;  %v10151_v1 = vld [vmem:[#allocation2 + $0xc] sm:$0xff]  }
 0x26e   : > { %9680 = vmatprep.subr.bf16.mxu1 %v10137_v7  ;;  %v4830_v54 = vsel %vm10647_vm2, %v11508_v15, %v11506_v56  ;;  %9724 = vmatprep.subr.bf16.mxu0 %v10154_v8  ;;  %v4863_v2 = vrot.slane %v4862_v24, 4  ;;  %v8590_v3 = vrot.slane %v5138_v19, 9  ;;  %v5212_v56 = vrot.slane %v5139_v48, 5  ;;  %v5743_v46 = vld [vmem:[#allocation2 + $0x1c] sm:$0xf] }
 0x26f   : > { %v4848_v41 = vor.u32 %v4847_v63, %v4843_v38  ;;  %v8573_v52 = vcombine.low %v4820_v42, %v4830_v54  ;;  %v4872_v0 = vor.u32 %v4871_v39, %v4867_v33  ;;  %v4877_v15 = vrot.slane %v4875_v4, 5  ;;  %v10147_v54 = vld [vmem:[#allocation9 + $0xc8] sm:$0xff]   ;;  %v5742_v63 = vld [vmem:[#allocation2 + $0x18] sm:$0xf] }
 0x270   : > { %v5213_v6 = vsel %vm10718_vm5, %v8590_v3, %v5212_v56  ;;  %v5214_v25 = vrot.slane %v5212_v56, 4  ;;  %9725 = vmatpush3.bf16.msra.mxu0 %v10154_v8  ;;  %v8591_v42 = vrot.slane %v5141_v20, 9  ;;  %v5219_v53 = vrot.slane %v5142_v37, 5  ;;  %v10152_v24 = vld [vmem:[#allocation2 + $0x18] sm:$0xff]   ;;  %v10157_v56 = vld [vmem:[#allocation2 + $0x24] sm:$0xff]  }
 0x271   : > { %9681 = vmatpush3.bf16.msra.mxu1 %v10137_v7  ;;  %v8597_v7 = vcombine.low %v5206_v60, %v5209_v59  ;;  %v4849_v51 = vrot.slane %v4848_v41, 4  ;;  %9774 = vmatprep.subr.bf16.mxu0 %v11526_v57  ;;  %v4868_v58 = vsel %vm10647_vm2, %v4863_v2, %v4867_v33  ;;  %v5222_v13 = vrot.slane %v5143_v30, 5  ;;  %v5741_v59 = vld [vmem:[#allocation2 + $0x14] sm:$0x1]  ;;  %v5745_v20 = vld [vmem:[#allocation2 + $0x24] sm:$0xf] }
 0x272   : > { %9682 = vmatprep.subr.bf16.mxu1 %v10139_v26  ;;  %v5216_v27 = vsel %vm10718_vm5, %v5214_v25, %v5215_v32  ;;  %v5220_v60 = vsel %vm10718_vm5, %v8591_v42, %v5219_v53  ;;  %v5221_v62 = vrot.slane %v5219_v53, 4  ;;  %v5764_v12 = vshrl.u32 %v5739_v45, 16  ;;  %v5747_v25 = vld [vmem:[#allocation2 + $0x2c] sm:$0x1] }
 0x273   : > { %9671 = vmatmul.mubr.bf16.gmra.mxu0 %v8597_v7  ;;  %v4854_v28 = vsel %vm10647_vm2, %v4849_v51, %v4853_v16  ;;  %v8598_v36 = vcombine.low %v5213_v6, %v5216_v27  ;;  %v5767_v40 = vshll.u32 %v5739_v45, 16  ;;  %v5773_v29 = vshll.u32 %v5740_v18, 16  ;;  %v10155_v51 = vld [vmem:[#allocation9 + $0x170] sm:$0xff]  }
 0x274   : > { %9635 = vmatmul.mubr.bf16.gmra.mxu1 %v8571_v9  ;;  %v5223_v61 = vsel %vm10718_vm5, %v5221_v62, %v5222_v13  ;;  %v5777_v7 = vshrl.u32 %v5740_v18, 16  ;;  %v5783_v50 = vshll.u32 %v5741_v59, 16  ;;  %v5766_v44 = vrot.slane %v5764_v12, 4  ;;  %v5746_v6 = vld [vmem:[#allocation2 + $0x28] sm:$0xf] }
 0x275   : > { %9683 = vmatpush3.bf16.msra.mxu1 %v10139_v26  ;;  %9638 = vmatprep.mubr.bf16.mxu1 %v8572_v11  ;;  %v4839_v26 = vrot.slane %v4838_v5, 4  ;;  %v4873_v11 = vrot.slane %v4872_v0, 4  ;;  %v8599_v31 = vcombine.low %v5220_v60, %v5223_v61  ;;  %v5775_v8 = vrot.slane %v5773_v29, 5  ;;  %v10153_v5 = vld [vmem:[#allocation9 + $0x178] sm:$0xff]   ;;  %v10159_v60 = vld [vmem:[#allocation9 + $0x168] sm:$0xff]   ;;  %v10160_v18 = vld [vmem:[#allocation9 + $0x1b0] sm:$0xff]  }
 0x276   : > { %9684 = vmatprep.subr.bf16.mxu1 %v10141_v21  ;;  %9674 = vmatprep.mubr.bf16.mxu0 %v8598_v36  ;;  %v5779_v16 = vrot.slane %v5777_v7, 4  ;;  %v5785_v55 = vrot.slane %v5783_v50, 5  ;;  %v5788_v17 = vshrl.u32 %v5742_v63, 16  ;;  %v5791_v4 = vshll.u32 %v5742_v63, 16  ;;  %v10158_v36 = vld [vmem:[#allocation2 + $0x30] sm:$0xff]   ;;  %v10161_v7 = vld [vmem:[#allocation9 + $0x160] sm:$0xff]  }
 0x277   : > { %v4844_v49 = vsel %vm10647_vm2, %v4839_v26, %v4843_v38  ;;  %v5769_v38 = vrot.slane %v5767_v40, 5  ;;  %v5797_v41 = vshll.u32 %v5743_v46, 16  ;;  %v5801_v48 = vshrl.u32 %v5743_v46, 16  ;;  %v5749_v61 = vld [vmem:[#allocation2 + $0x34] sm:$0xf] }
 0x278   : > { %v8574_v9 = vcombine.low %v4844_v49, %v4854_v28  ;;  %v5780_v19 = vor.u32 %v5779_v16, %v5775_v8  ;;  %v5793_v26 = vrot.slane %v5791_v4, 5  ;;  %v5812_v30 = vshrl.u32 %v5745_v20, 16  ;;  %v10163_v16 = vld [vmem:[#allocation2 + $0x3c] sm:$0xff]  }
 0x279   : > { %9685 = vmatpush3.bf16.msra.mxu1 %v10141_v21  ;;  %v4878_v21 = vsel %vm10647_vm2, %v4873_v11, %v4877_v15  ;;  %v5770_v10 = vor.u32 %v5769_v38, %v5766_v44  ;;  %v5799_v33 = vrot.slane %v5797_v41, 5  ;;  %v5803_v2 = vrot.slane %v5801_v48, 4  ;;  %v10162_v4 = vld [vmem:[#allocation9 + $0x1a8] sm:$0xff]  }
 0x27a   : > { %9686 = vmatprep.subr.bf16.mxu1 %v10143_v34  ;;  %v8575_v23 = vcombine.low %v4868_v58, %v4878_v21  ;;  %v5781_v39 = vrot.slane %v5780_v19, 4  ;;  %v5815_v11 = vshll.u32 %v5745_v20, 16  ;;  %v5821_v42 = vshll.u32 %v5746_v6, 16  ;;  %v5748_v21 = vld [vmem:[#allocation2 + $0x30] sm:$0xf] }
 0x27b   : > { %9675 = vmatmul.mubr.bf16.gmra.mxu0 %v8599_v31  ;;  %v5804_v32 = vor.u32 %v5803_v2, %v5799_v33  ;;  %v5825_v53 = vshrl.u32 %v5746_v6, 16  ;;  %v5814_v27 = vrot.slane %v5812_v30, 4  ;;  %v5831_v13 = vshll.u32 %v5747_v25, 16 }
 0x27c   : > { %9639 = vmatmul.mubr.bf16.gmra.mxu1 %v8573_v52  ;;  %v5771_v52 = vrot.slane %v5770_v10, 4  ;;  %v5786_v15 = vsel %vm10647_vm2, %v5781_v39, %v5785_v55  ;;  %v5817_v62 = vrot.slane %v5815_v11, 5  ;;  %v5836_v59 = vshrl.u32 %v5748_v21, 16  ;;  %v5753_v39 = vld [vmem:[#allocation2 + $0x44] sm:$0x1] }
 0x27d   : > { %9687 = vmatpush3.bf16.msra.mxu1 %v10143_v34  ;;  %9642 = vmatprep.mubr.bf16.mxu1 %v8574_v9  ;;  %v5744_v34 = vld [vmem:[#allocation2 + $0x20] sm:$0x1]  ;;  %v5805_v9 = vrot.slane %v5804_v32, 4  ;;  %v5833_v31 = vrot.slane %v5831_v13, 5  ;;  %v5839_v12 = vshll.u32 %v5748_v21, 16  ;;  %v5845_v50 = vshll.u32 %v5749_v61, 16 }
 0x27e   : > { %9688 = vmatprep.subr.bf16.mxu1 %v10145_v22  ;;  %v5807_v47 = vshll.u32 %v5744_v34, 16  ;;  %v5776_v49 = vsel %vm10647_vm2, %v5771_v52, %v5775_v8  ;;  %v5818_v40 = vor.u32 %v5817_v62, %v5814_v27  ;;  %v5849_v44 = vshrl.u32 %v5749_v61, 16  ;;  %v5751_v52 = vld [vmem:[#allocation2 + $0x3c] sm:$0xf]  ;;  %v5755_v11 = vld [vmem:[#allocation2 + $0x4c] sm:$0xf] }
 0x27f   : > { %v8624_v37 = vcombine.low %v5776_v49, %v5786_v15  ;;  %v5838_v38 = vrot.slane %v5836_v59, 4  ;;  %v5841_v8 = vrot.slane %v5839_v12, 5  ;;  %v5847_v34 = vrot.slane %v5845_v50, 5  ;;  %v5756_v27 = vld [vmem:[#allocation2 + $0x50] sm:$0x1]  ;;  %v10171_v12 = vld [vmem:[#allocation9 + $0x148] sm:$0xff]  }
 0x280   : > { %v5809_v3 = vrot.slane %v5807_v47, 5  ;;  %v5819_v55 = vrot.slane %v5818_v40, 4  ;;  %v10165_v47 = vld [vmem:[#allocation9 + $0x158] sm:$0xff]   ;;  %v5879_v20 = vshll.u32 %v5753_v39, 16  ;;  %v5897_v62 = vshrl.u32 %v5755_v11, 16  ;;  %v10172_v40 = vld [vmem:[#allocation9 + $0x190] sm:$0xff]  }
 0x281   : > { %9689 = vmatpush3.bf16.msra.mxu1 %v10145_v22  ;;  %v5790_v22 = vrot.slane %v5788_v17, 4  ;;  %9726 = vmatprep.mubr.bf16.mxu0 %v8624_v37  ;;  %v5842_v10 = vor.u32 %v5841_v8, %v5838_v38  ;;  %v10167_v37 = vld [vmem:[#allocation9 + $0x150] sm:$0xff]  }
 0x282   : > { %9690 = vmatprep.subr.bf16.mxu1 %v10147_v54 }
 0x283   : > { %v5794_v0 = vor.u32 %v5793_v26, %v5790_v22  ;;  %v10164_v26 = vld [vmem:[#allocation2 + $0x48] sm:$0xff]  }
 0x284   : > { %9643 = vmatmul.mubr.bf16.gmra.mxu1 %v8575_v23  ;;  %v5823_v23 = vrot.slane %v5821_v42, 5  ;;  %v10168_v42 = vld [vmem:[#allocation9 + $0x198] sm:$0xff]  }
 0x285   : > { %9691 = vmatpush3.bf16.msra.mxu1 %v10147_v54  ;;  %9694 = vmatprep.mubr.bf16.mxu1 %v10151_v1  ;;  %v5795_v28 = vrot.slane %v5794_v0, 4  ;;  %v5810_v54 = vsel %vm10647_vm2, %v5805_v9, %v5809_v3  ;;  %v5750_v1 = vld [vmem:[#allocation2 + $0x38] sm:$0x1] }
 0x286   : > { %9692 = vmatprep.subr.bf16.mxu1 %v10149_v14  ;;  %v5855_v63 = vshll.u32 %v5750_v1, 16  ;;  %v5824_v41 = vsel %vm10647_vm2, %v5819_v55, %v5823_v23  ;;  %v10166_v3 = vld [vmem:[#allocation9 + $0x1a0] sm:$0xff]   ;;  %v5899_v1 = vrot.slane %v5897_v62, 4 }
 0x287   : > { %v5800_v58 = vsel %vm10647_vm2, %v5795_v28, %v5799_v33  ;;  %v5752_v33 = vld [vmem:[#allocation2 + $0x40] sm:$0xf]  ;;  %v5754_v28 = vld [vmem:[#allocation2 + $0x48] sm:$0xf]  ;;  %v5758_v55 = vld [vmem:[#allocation2 + $0x58] sm:$0xf] }
 0x288   : > { %v8625_v45 = vcombine.low %v5800_v58, %v5810_v54  ;;  %v5857_v17 = vrot.slane %v5855_v63, 5  ;;  %v5869_v49 = vshll.u32 %v5752_v33, 16  ;;  %v5873_v0 = vshrl.u32 %v5752_v33, 16 }
 0x289   : > { %9693 = vmatpush3.bf16.msra.mxu1 %v10149_v14  ;;  %v5827_v14 = vrot.slane %v5825_v53, 4  ;;  %v10169_v53 = vld [vmem:[#allocation2 + $0x54] sm:$0xff]   ;;  %v5881_v58 = vrot.slane %v5879_v20, 5  ;;  %v5884_v13 = vshrl.u32 %v5754_v28, 16  ;;  %v5887_v21 = vshll.u32 %v5754_v28, 16 }
 0x28a   : > { %9742 = vmatprep.subr.bf16.mxu1 %v10153_v5  ;;  %9727 = vmatmul.mubr.bf16.vlgmr.msra.gmra.mxu0 %v8625_v45  ;;  %v5871_v30 = vrot.slane %v5869_v49, 5  ;;  %v5875_v9 = vrot.slane %v5873_v0, 4  ;;  %v5893_v54 = vshll.u32 %v5755_v11, 16 }
 0x28b   : > { %v5828_v29 = vor.u32 %v5827_v14, %v5823_v23  ;;  %9775 = vmatpush3.bf16.msra.mxu0 %v11526_v57  ;;  %v5843_v57 = vrot.slane %v5842_v10, 4  ;;  %v5903_v23 = vshll.u32 %v5756_v27, 16  ;;  %v5886_v14 = vrot.slane %v5884_v13, 4 }
 0x28c   : > { %9695 = vmatmul.mubr.bf16.vlgmr.msra.gmra.mxu1 %v10152_v24  ;;  %9776 = vmatprep.subr.bf16.mxu0 %v10160_v18  ;;  %v5889_v61 = vrot.slane %v5887_v21, 5  ;;  %v5895_v45 = vrot.slane %v5893_v54, 5  ;;  %v6198_v21 = vld [vmem:[#allocation2 + $0x14] sm:$0x1] }
 0x28d   : > { %9743 = vmatpush3.bf16.msra.mxu1 %v10153_v5  ;;  %9698 = vmatprep.mubr.bf16.mxu1 %v10157_v56  ;;  %v5829_v46 = vrot.slane %v5828_v29, 4  ;;  %v5851_v5 = vrot.slane %v5849_v44, 4  ;;  %v5848_v2 = vsel %vm10647_vm2, %v5843_v57, %v5847_v34  ;;  %v5863_v56 = vshll.u32 %v5751_v52, 16 }
 0x28e   : > { %9744 = vmatprep.subr.bf16.mxu1 %v10155_v51  ;;  %v5905_v59 = vrot.slane %v5903_v23, 5  ;;  %v5890_v29 = vor.u32 %v5889_v61, %v5886_v14  ;;  %v5900_v38 = vor.u32 %v5899_v1, %v5895_v45  ;;  %v6249_v23 = vrot.slane %v6198_v21, 5  ;;  %v6199_v14 = vld [vmem:[#allocation2 + $0x18] sm:$0xe]  ;;  %v6200_v61 = vld [vmem:[#allocation2 + $0x1c] sm:$0xf] }
 0x28f   : > { %v5834_v24 = vsel %vm10647_vm2, %v5829_v46, %v5833_v31  ;;  %v5852_v19 = vor.u32 %v5851_v5, %v5847_v34  ;;  %9777 = vmatpush3.bf16.msra.mxu0 %v10160_v18  ;;  %v5865_v25 = vrot.slane %v5863_v56, 5  ;;  %v10173_v46 = vld [vmem:[#allocation9 + $0x140] sm:$0xff]   ;;  %v8641_v1 = vrot.slane %v6199_v14, 9 }
 0x290   : > { %v8626_v48 = vcombine.low %v5824_v41, %v5834_v24  ;;  %9778 = vmatprep.subr.bf16.mxu0 %v10162_v4  ;;  %v5891_v63 = vrot.slane %v5890_v29, 4  ;;  %v5901_v34 = vrot.slane %v5900_v38, 4  ;;  %v5759_v5 = vld [vmem:[#allocation2 + $0x5c] sm:$0x1]  ;;  %v5921_v24 = vshrl.u32 %v5758_v55, 16 }
 0x291   : > { %9745 = vmatpush3.bf16.msra.mxu1 %v10155_v51  ;;  %v5853_v22 = vrot.slane %v5852_v19, 4  ;;  %v5860_v51 = vshrl.u32 %v5751_v52, 16  ;;  %v5927_v19 = vshll.u32 %v5759_v5, 16  ;;  %v10177_v5 = vld [vmem:[#allocation2 + $0x18] sm:$0xff]  }
 0x292   : > { %9746 = vmatprep.subr.bf16.mxu1 %v10159_v60  ;;  %9730 = vmatprep.mubr.bf16.mxu0 %v8626_v48  ;;  %v5896_v41 = vsel %vm10647_vm2, %v5891_v63, %v5895_v45  ;;  %v5906_v48 = vsel %vm10647_vm2, %v5901_v34, %v5905_v59  ;;  %v5923_v39 = vrot.slane %v5921_v24, 4  ;;  %v6253_v59 = vrot.slane %v6200_v61, 5  ;;  %v6202_v24 = vld [vmem:[#allocation2 + $0x24] sm:$0xe]  ;;  %v10185_v21 = vld [vmem:[#allocation2 + $0x3c] sm:$0xff]  }
 0x293   : > { %v5858_v15 = vsel %vm10647_vm2, %v5853_v22, %v5857_v17  ;;  %v5862_v32 = vrot.slane %v5860_v51, 4  ;;  %9779 = vmatpush3.bf16.msra.mxu0 %v10162_v4  ;;  %v5917_v4 = vshll.u32 %v5758_v55, 16  ;;  %v5760_v22 = vld [vmem:[#allocation2 + $0x60] sm:$0xf]  ;;  %v8629_v33 = vcombine.low %v5896_v41, %v5906_v48  ;;  %v10180_v41 = vld [vmem:[#allocation9 + $0x238] sm:$0xff]  }
 0x294   : > { %9699 = vmatmul.mubr.bf16.gmra.mxu1 %v10158_v36  ;;  %v8627_v6 = vcombine.low %v5848_v2, %v5858_v15  ;;  %9780 = vmatprep.subr.bf16.mxu0 %v10166_v3  ;;  %v5929_v51 = vrot.slane %v5927_v19, 5  ;;  %v5761_v2 = vld [vmem:[#allocation2 + $0x64] sm:$0xf]  ;;  %v5932_v49 = vshrl.u32 %v5760_v22, 16  ;;  %v5935_v0 = vshll.u32 %v5760_v22, 16 }
 0x295   : > { %9747 = vmatpush3.bf16.msra.mxu1 %v10159_v60  ;;  %9702 = vmatprep.mubr.bf16.mxu1 %v10163_v16  ;;  %v5866_v36 = vor.u32 %v5865_v25, %v5862_v32  ;;  %v5876_v60 = vor.u32 %v5875_v9, %v5871_v30  ;;  %v5757_v16 = vld [vmem:[#allocation2 + $0x54] sm:$0xf]  ;;  %v5919_v52 = vrot.slane %v5917_v4, 5  ;;  %v5941_v15 = vshll.u32 %v5761_v2, 16  ;;  %v10176_v25 = vld [vmem:[#allocation9 + $0x180] sm:$0xff]   ;;  %v10178_v4 = vld [vmem:[#allocation9 + $0x1f0] sm:$0xff]  }
 0x296   : > { %9748 = vmatprep.subr.bf16.mxu1 %v10161_v7  ;;  %9731 = vmatmul.mubr.bf16.gmra.mxu0 %v8627_v6  ;;  %v5908_v10 = vshrl.u32 %v5757_v16, 16  ;;  %v5911_v17 = vshll.u32 %v5757_v16, 16  ;;  %v10175_v32 = vld [vmem:[#allocation9 + $0x1f8] sm:$0xff]   ;;  %v6196_v6 = vld [vmem:[#allocation2 + $0xc] sm:$0xe]  ;;  %v5934_v9 = vrot.slane %v5932_v49, 4 }
 0x297   : > { %v5867_v18 = vrot.slane %v5866_v36, 4  ;;  %v5877_v31 = vrot.slane %v5876_v60, 4  ;;  %9781 = vmatpush3.bf16.msra.mxu0 %v10166_v3  ;;  %v5762_v3 = vld [vmem:[#allocation2 + $0x68] sm:$0x1]  ;;  %v5924_v20 = vor.u32 %v5923_v39, %v5919_v52  ;;  %v5937_v11 = vrot.slane %v5935_v0, 5 }
 0x298   : > { %9782 = vmatprep.subr.bf16.mxu0 %v10168_v42  ;;  %v5910_v57 = vrot.slane %v5908_v10, 4  ;;  %v5951_v28 = vshll.u32 %v5762_v3, 16  ;;  %v8640_v54 = vrot.slane %v6196_v6, 9  ;;  %v6255_v38 = vrot.slane %v6253_v59, 4  ;;  %v6203_v19 = vld [vmem:[#allocation2 + $0x28] sm:$0xf] }
 0x299   : > { %9749 = vmatpush3.bf16.msra.mxu1 %v10161_v7  ;;  %v10170_v7 = vld [vmem:[#allocation2 + $0x60] sm:$0xff]   ;;  %v5872_v50 = vsel %vm10647_vm2, %v5867_v18, %v5871_v30  ;;  %v5882_v44 = vsel %vm10647_vm2, %v5877_v31, %v5881_v58  ;;  %v5925_v58 = vrot.slane %v5924_v20, 4  ;;  %v5938_v60 = vor.u32 %v5937_v11, %v5934_v9  ;;  %v6204_v48 = vld [vmem:[#allocation2 + $0x2c] sm:$0x1]  ;;  %v6207_v39 = vld [vmem:[#allocation2 + $0x38] sm:$0x1] }
 0x29a   : > { %9750 = vmatprep.subr.bf16.mxu1 %v10165_v47  ;;  %v8628_v8 = vcombine.low %v5872_v50, %v5882_v44  ;;  %v5953_v13 = vrot.slane %v5951_v28, 5  ;;  %v6201_v31 = vld [vmem:[#allocation2 + $0x20] sm:$0x1]  ;;  %v6254_v44 = vsel %vm10718_vm5, %v8641_v1, %v6253_v59  ;;  %v6263_v22 = vrot.slane %v6204_v48, 5  ;;  %v10179_v0 = vld [vmem:[#allocation2 + $0x24] sm:$0xff]   ;;  %v10184_v9 = vld [vmem:[#allocation9 + $0x1e0] sm:$0xff]  }
 0x29b   : > { %9783 = vmatpush3.bf16.msra.mxu0 %v10168_v42  ;;  %v5943_v42 = vrot.slane %v5941_v15, 5  ;;  %v5930_v45 = vsel %vm10647_vm2, %v5925_v58, %v5929_v51  ;;  %v6270_v49 = vrot.slane %v6207_v39, 5  ;;  %v10186_v11 = vld [vmem:[#allocation9 + $0x228] sm:$0xff]  }
 0x29c   : > { %9703 = vmatmul.mubr.bf16.gmra.mxu1 %v10164_v26  ;;  %9734 = vmatprep.mubr.bf16.mxu0 %v8628_v8  ;;  %v10174_v26 = vld [vmem:[#allocation9 + $0x188] sm:$0xff]   ;;  %v6256_v8 = vrot.slane %v6201_v31, 5 }
 0x29d   : > { %9751 = vmatpush3.bf16.msra.mxu1 %v10165_v47  ;;  %9706 = vmatprep.mubr.bf16.mxu1 %v10169_v53  ;;  %v5913_v47 = vrot.slane %v5911_v17, 5  ;;  %v6197_v53 = vld [vmem:[#allocation2 + $0x10] sm:$0xf]  ;;  %v6210_v58 = vld [vmem:[#allocation2 + $0x44] sm:$0x1] }
 0x29e   : > { %9752 = vmatprep.subr.bf16.mxu1 %v10167_v37  ;;  %9784 = vmatprep.subr.bf16.mxu0 %v10172_v40  ;;  %v6246_v62 = vrot.slane %v6197_v53, 5  ;;  %v6257_v34 = vsel %vm10718_vm5, %v6255_v38, %v6256_v8  ;;  %v6209_v53 = vld [vmem:[#allocation2 + $0x40] sm:$0xf]  ;;  %v10190_v38 = vld [vmem:[#allocation9 + $0x1d0] sm:$0xff]   ;;  %v10192_v8 = vld [vmem:[#allocation9 + $0x218] sm:$0xff]  }
 0x29f   : > { %v5914_v56 = vor.u32 %v5913_v47, %v5910_v57  ;;  %9735 = vmatmul.mubr.bf16.gmra.mxu0 %v8629_v33  ;;  %v8649_v17 = vcombine.low %v6254_v44, %v6257_v34  ;;  %v8642_v57 = vrot.slane %v6202_v24, 9  ;;  %v10181_v47 = vld [vmem:[#allocation9 + $0x1e8] sm:$0xff]   ;;  %v6206_v33 = vld [vmem:[#allocation2 + $0x34] sm:$0xf]  ;;  %v6219_v24 = vld [vmem:[#allocation2 + $0x68] sm:$0x1] }
 0x2a0   : > { %9785 = vmatpush3.bf16.msra.mxu0 %v10172_v40  ;;  %v5939_v40 = vrot.slane %v5938_v60, 4  ;;  %v6247_v29 = vsel %vm10718_vm5, %v8640_v54, %v6246_v62  ;;  %v6274_v54 = vrot.slane %v6209_v53, 5  ;;  %v6211_v60 = vld [vmem:[#allocation2 + $0x48] sm:$0xe] }
 0x2a1   : > { %9753 = vmatpush3.bf16.msra.mxu1 %v10167_v37  ;;  %v5945_v37 = vshrl.u32 %v5761_v2, 16  ;;  %v5915_v30 = vrot.slane %v5914_v56, 4  ;;  %9786 = vmatprep.subr.bf16.mxu0 %v10174_v26  ;;  %v6267_v2 = vrot.slane %v6206_v33, 5  ;;  %v8645_v14 = vrot.slane %v6211_v60, 9  ;;  %v10194_v33 = vld [vmem:[#allocation9 + $0x210] sm:$0xff]  }
 0x2a2   : > { %9754 = vmatprep.subr.bf16.mxu1 %v10171_v12  ;;  %v5944_v63 = vsel %vm10647_vm2, %v5939_v40, %v5943_v42  ;;  %v10188_v40 = vld [vmem:[#allocation9 + $0x220] sm:$0xff]  }
 0x2a3   : > { %v5947_v27 = vrot.slane %v5945_v37, 4  ;;  %v5920_v36 = vsel %vm10647_vm2, %v5915_v30, %v5919_v52  ;;  %v6260_v52 = vrot.slane %v6203_v19, 5  ;;  %v10182_v37 = vld [vmem:[#allocation9 + $0x230] sm:$0xff]  }
 0x2a4   : > { %9707 = vmatmul.mubr.bf16.gmra.mxu1 %v10170_v7  ;;  %9787 = vmatpush3.bf16.msra.mxu0 %v10174_v26  ;;  %v6248_v7 = vrot.slane %v6246_v62, 4  ;;  %v6205_v26 = vld [vmem:[#allocation2 + $0x30] sm:$0xe]  ;;  %v6212_v62 = vld [vmem:[#allocation2 + $0x4c] sm:$0xf] }
 0x2a5   : > { %9755 = vmatpush3.bf16.msra.mxu1 %v10171_v12  ;;  %v5948_v18 = vor.u32 %v5947_v27, %v5943_v42  ;;  %v8630_v12 = vcombine.low %v5920_v36, %v5930_v45  ;;  %9788 = vmatprep.subr.bf16.mxu0 %v10176_v25  ;;  %v8643_v51 = vrot.slane %v6205_v26, 9  ;;  %v6261_v3 = vsel %vm10718_vm5, %v8642_v57, %v6260_v52  ;;  %v6208_v42 = vld [vmem:[#allocation2 + $0x3c] sm:$0xe] }
 0x2a6   : > { %9756 = vmatprep.subr.bf16.mxu1 %v10173_v46  ;;  %v6250_v16 = vsel %vm10718_vm5, %v6248_v7, %v6249_v23  ;;  %v6262_v56 = vrot.slane %v6260_v52, 4  ;;  %v8644_v27 = vrot.slane %v6208_v42, 9  ;;  %v6277_v36 = vrot.slane %v6210_v58, 5  ;;  %v6213_v23 = vld [vmem:[#allocation2 + $0x50] sm:$0x1]  ;;  %v10199_v42 = vld [vmem:[#allocation9 + $0x200] sm:$0xff]  }
 0x2a7   : > { %v5949_v50 = vrot.slane %v5948_v18, 4  ;;  %9738 = vmatprep.mubr.bf16.mxu0 %v8630_v12  ;;  %v6268_v15 = vsel %vm10718_vm5, %v8643_v51, %v6267_v2  ;;  %v6281_v61 = vrot.slane %v6212_v62, 5  ;;  %v6276_v18 = vrot.slane %v6274_v54, 4  ;;  %v10195_v51 = vld [vmem:[#allocation2 + $0x60] sm:$0xff]  }
 0x2a8   : > { %9789 = vmatpush3.bf16.msra.mxu0 %v10176_v25  ;;  %v6264_v20 = vsel %vm10718_vm5, %v6262_v56, %v6263_v22  ;;  %v10183_v25 = vld [vmem:[#allocation2 + $0x30] sm:$0xff]   ;;  %v6275_v45 = vsel %vm10718_vm5, %v8644_v27, %v6274_v54  ;;  %v6284_v31 = vrot.slane %v6213_v23, 5  ;;  %v6298_v52 = vrot.slane %v6219_v24, 5  ;;  %v6819_v27 = vld [vmem:[#allocation2 + $0x28] sm:$0xf] }
 0x2a9   : > { %9757 = vmatpush3.bf16.msra.mxu1 %v10173_v46  ;;  %v5954_v55 = vsel %vm10647_vm2, %v5949_v50, %v5953_v13  ;;  %v8648_v46 = vcombine.low %v6247_v29, %v6250_v16  ;;  %9838 = vmatprep.subr.bf16.mxu0 %v10180_v41  ;;  %v8650_v28 = vcombine.low %v6261_v3, %v6264_v20  ;;  %v10187_v13 = vld [vmem:[#allocation9 + $0x1d8] sm:$0xff]   ;;  %v6283_v59 = vrot.slane %v6281_v61, 4  ;;  %v10189_v50 = vld [vmem:[#allocation2 + $0x48] sm:$0xff]   ;;  %v6816_v20 = vld [vmem:[#allocation2 + $0x1c] sm:$0xf] }
 0x2aa   : > { %9806 = vmatprep.subr.bf16.mxu1 %v10175_v32  ;;  %v8631_v10 = vcombine.low %v5944_v63, %v5954_v55  ;;  %v6282_v1 = vsel %vm10718_vm5, %v8645_v14, %v6281_v61  ;;  %v6278_v12 = vsel %vm10718_vm5, %v6276_v18, %v6277_v36  ;;  %v6214_v63 = vld [vmem:[#allocation2 + $0x54] sm:$0xe]  ;;  %v6215_v55 = vld [vmem:[#allocation2 + $0x58] sm:$0xf]  ;;  %v6873_v14 = vshll.u32 %v6819_v27, 16 }
 0x2ab   : > { %9758 = vmatprep.mubr.bf16.mxu1 %v8648_v46  ;;  %v8652_v29 = vcombine.low %v6275_v45, %v6278_v12  ;;  %v6285_v7 = vsel %vm10718_vm5, %v6283_v59, %v6284_v31  ;;  %v10191_v16 = vld [vmem:[#allocation2 + $0x54] sm:$0xff]   ;;  %v6216_v46 = vld [vmem:[#allocation2 + $0x5c] sm:$0x1]  ;;  %v8646_v34 = vrot.slane %v6214_v63, 9  ;;  %v6877_v61 = vshrl.u32 %v6819_v27, 16 }
 0x2ac   : > { %9739 = vmatmul.mubr.bf16.gmra.mxu0 %v8631_v10  ;;  %9759 = vmatmul.mubr.bf16.vlgmr.msra.gmra.mxu1 %v8649_v17  ;;  %v8653_v44 = vcombine.low %v6282_v1, %v6285_v7  ;;  %v6288_v10 = vrot.slane %v6215_v55, 5  ;;  %v6291_v17 = vrot.slane %v6216_v46, 5  ;;  %v7272_v1 = vld [vmem:[#allocation2 + $0x18] sm:$0xe]  ;;  %v7273_v59 = vld [vmem:[#allocation2 + $0x1c] sm:$0xf] }
 0x2ad   : > { %9807 = vmatpush3.bf16.msra.mxu1 %v10175_v32  ;;  %9790 = vmatprep.mubr.bf16.mxu0 %v10177_v5  ;;  %v6269_v32 = vrot.slane %v6267_v2, 4  ;;  %v10193_v5 = vld [vmem:[#allocation9 + $0x1c8] sm:$0xff]   ;;  %v6879_v7 = vrot.slane %v6877_v61, 4  ;;  %v7322_v63 = vrot.slane %v7273_v59, 5  ;;  %v7280_v61 = vld [vmem:[#allocation2 + $0x38] sm:$0x1] }
 0x2ae   : > { %9808 = vmatprep.subr.bf16.mxu1 %v10178_v4  ;;  %9762 = vmatprep.mubr.bf16.mxu1 %v8650_v28  ;;  %v6289_v57 = vsel %vm10718_vm5, %v8646_v34, %v6288_v10  ;;  %v7281_v59 = vld [vmem:[#allocation2 + $0x3c] sm:$0xe] }
 0x2af   : > { %v6271_v6 = vsel %vm10718_vm5, %v6269_v32, %v6270_v49  ;;  %v10196_v49 = vld [vmem:[#allocation9 + $0x1c0] sm:$0xff]   ;;  %v7324_v24 = vrot.slane %v7322_v63, 4 }
 0x2b0   : > { %v8651_v30 = vcombine.low %v6268_v15, %v6271_v6  ;;  %v10198_v15 = vld [vmem:[#allocation9 + $0x208] sm:$0xff]   ;;  %v6815_v32 = vld [vmem:[#allocation2 + $0x18] sm:$0xf] }
 0x2b1   : > { %9809 = vmatpush3.bf16.msra.mxu1 %v10178_v4  ;;  %v6217_v4 = vld [vmem:[#allocation2 + $0x60] sm:$0xe]  ;;  %v6840_v28 = vshrl.u32 %v6815_v32, 16  ;;  %v6843_v6 = vshll.u32 %v6815_v32, 16 }
 0x2b2   : > { %9810 = vmatprep.subr.bf16.mxu1 %v10181_v47  ;;  %v8647_v19 = vrot.slane %v6217_v4, 9 }
 0x2b3   : > { %v6842_v53 = vrot.slane %v6840_v28, 4  ;;  %v6845_v58 = vrot.slane %v6843_v6, 5 }
 0x2b4   : > { %9791 = vmatmul.mubr.bf16.vlgmr.msra.gmra.mxu0 %v10179_v0  ;;  %9763 = vmatmul.mubr.bf16.gmra.mxu1 %v8651_v30  ;;  %v10197_v0 = vld [vmem:[#allocation2 + $0x6c] sm:$0xff]   ;;  %v6853_v30 = vshrl.u32 %v6816_v20, 16 }
 0x2b5   : > { %9839 = vmatpush3.bf16.msra.mxu0 %v10180_v41  ;;  %9811 = vmatpush3.bf16.msra.mxu1 %v10181_v47  ;;  %v6218_v41 = vld [vmem:[#allocation2 + $0x64] sm:$0xf]  ;;  %v6290_v47 = vrot.slane %v6288_v10, 4  ;;  %v6846_v62 = vor.u32 %v6845_v58, %v6842_v53  ;;  %v7276_v10 = vld [vmem:[#allocation2 + $0x28] sm:$0xf] }
 0x2b6   : > { %9840 = vmatprep.subr.bf16.mxu0 %v10182_v37  ;;  %9794 = vmatprep.mubr.bf16.mxu0 %v10183_v25  ;;  %v6295_v48 = vrot.slane %v6218_v41, 5  ;;  %v6849_v25 = vshll.u32 %v6816_v20, 16  ;;  %v6855_v54 = vrot.slane %v6853_v30, 4  ;;  %v6825_v20 = vld [vmem:[#allocation2 + $0x40] sm:$0xf] }
 0x2b7   : > { %9812 = vmatprep.subr.bf16.mxu1 %v10184_v9  ;;  %9766 = vmatprep.mubr.bf16.mxu1 %v8652_v29  ;;  %v6292_v39 = vsel %vm10718_vm5, %v6290_v47, %v6291_v17  ;;  %v6847_v12 = vrot.slane %v6846_v62, 4  ;;  %v6875_v29 = vrot.slane %v6873_v14, 5  ;;  %v7277_v17 = vld [vmem:[#allocation2 + $0x2c] sm:$0x1] }
 0x2b8   : > { %v6296_v22 = vsel %vm10718_vm5, %v8647_v19, %v6295_v48  ;;  %v6297_v26 = vrot.slane %v6295_v48, 4  ;;  %v8654_v2 = vcombine.low %v6289_v57, %v6292_v39  ;;  %v6821_v48 = vld [vmem:[#allocation2 + $0x30] sm:$0xf]  ;;  %v6822_v57 = vld [vmem:[#allocation2 + $0x34] sm:$0xf] }
 0x2b9   : > { %9841 = vmatpush3.bf16.msra.mxu0 %v10182_v37  ;;  %9813 = vmatpush3.bf16.msra.mxu1 %v10184_v9  ;;  %v6817_v37 = vld [vmem:[#allocation2 + $0x20] sm:$0x1]  ;;  %v6880_v34 = vor.u32 %v6879_v7, %v6875_v29  ;;  %v6897_v30 = vshll.u32 %v6822_v57, 16 }
 0x2ba   : > { %9842 = vmatprep.subr.bf16.mxu0 %v10186_v11  ;;  %9814 = vmatprep.subr.bf16.mxu1 %v10187_v13  ;;  %v6299_v3 = vsel %vm10718_vm5, %v6297_v26, %v6298_v52  ;;  %v6859_v9 = vshll.u32 %v6817_v37, 16  ;;  %v7329_v26 = vrot.slane %v7276_v10, 5  ;;  %v8699_v10 = vrot.slane %v7281_v59, 9 }
 0x2bb   : > { %v8655_v56 = vcombine.low %v6296_v22, %v6299_v3  ;;  %v6881_v22 = vrot.slane %v6880_v34, 4  ;;  %v6891_v3 = vshll.u32 %v6821_v48, 16  ;;  %v6899_v62 = vrot.slane %v6897_v30, 5  ;;  %v6832_v30 = vld [vmem:[#allocation2 + $0x5c] sm:$0x1] }
 0x2bc   : > { %9795 = vmatmul.mubr.bf16.gmra.mxu0 %v10185_v21  ;;  %9767 = vmatmul.mubr.bf16.gmra.mxu1 %v8653_v44  ;;  %v6851_v21 = vrot.slane %v6849_v25, 5  ;;  %v6861_v36 = vrot.slane %v6859_v9, 5  ;;  %v7331_v28 = vrot.slane %v7329_v26, 4  ;;  %v6901_v9 = vshrl.u32 %v6822_v57, 16 }
 0x2bd   : > { %9843 = vmatpush3.bf16.msra.mxu0 %v10186_v11  ;;  %9815 = vmatpush3.bf16.msra.mxu1 %v10187_v13  ;;  %v6818_v11 = vld [vmem:[#allocation2 + $0x24] sm:$0xf]  ;;  %v6820_v13 = vld [vmem:[#allocation2 + $0x2c] sm:$0x1]  ;;  %v6893_v25 = vrot.slane %v6891_v3, 5 }
 0x2be   : > { %9844 = vmatprep.subr.bf16.mxu0 %v10188_v40  ;;  %9798 = vmatprep.mubr.bf16.mxu0 %v10189_v50  ;;  %v6864_v60 = vshrl.u32 %v6818_v11, 16  ;;  %v6867_v23 = vshll.u32 %v6818_v11, 16  ;;  %v6856_v45 = vor.u32 %v6855_v54, %v6851_v21  ;;  %v6883_v31 = vshll.u32 %v6820_v13, 16  ;;  %v7274_v50 = vld [vmem:[#allocation2 + $0x20] sm:$0x1] }
 0x2bf   : > { %9816 = vmatprep.subr.bf16.mxu1 %v10190_v38  ;;  %9770 = vmatprep.mubr.bf16.mxu1 %v8654_v2  ;;  %v6852_v55 = vsel %vm10647_vm2, %v6847_v12, %v6851_v21  ;;  %v6888_v2 = vshrl.u32 %v6821_v48, 16  ;;  %v6921_v21 = vshll.u32 %v6825_v20, 16  ;;  %v7278_v54 = vld [vmem:[#allocation2 + $0x30] sm:$0xe] }
 0x2c0   : > { %v6866_v18 = vrot.slane %v6864_v60, 4  ;;  %v6857_v44 = vrot.slane %v6856_v45, 4  ;;  %v8698_v7 = vrot.slane %v7278_v54, 9 }
 0x2c1   : > { %9845 = vmatpush3.bf16.msra.mxu0 %v10188_v40  ;;  %9817 = vmatpush3.bf16.msra.mxu1 %v10190_v38  ;;  %v6869_v40 = vrot.slane %v6867_v23, 5  ;;  %v6885_v38 = vrot.slane %v6883_v31, 5  ;;  %v6890_v6 = vrot.slane %v6888_v2, 4  ;;  %v6903_v23 = vrot.slane %v6901_v9, 4  ;;  %v6830_v2 = vld [vmem:[#allocation2 + $0x54] sm:$0xf] }
 0x2c2   : > { %9846 = vmatprep.subr.bf16.mxu0 %v10192_v8  ;;  %9818 = vmatprep.subr.bf16.mxu1 %v10193_v5  ;;  %v6862_v4 = vsel %vm10647_vm2, %v6857_v44, %v6861_v36  ;;  %v7279_v36 = vld [vmem:[#allocation2 + $0x34] sm:$0xf]  ;;  %v6960_v9 = vshrl.u32 %v6830_v2, 16 }
 0x2c3   : > { %v6870_v46 = vor.u32 %v6869_v40, %v6866_v18  ;;  %v8680_v47 = vcombine.low %v6852_v55, %v6862_v4  ;;  %v6894_v27 = vor.u32 %v6893_v25, %v6890_v6  ;;  %v6904_v12 = vor.u32 %v6903_v23, %v6899_v62  ;;  %v6827_v55 = vld [vmem:[#allocation2 + $0x48] sm:$0xf]  ;;  %v6831_v25 = vld [vmem:[#allocation2 + $0x58] sm:$0xf] }
 0x2c4   : > { %9799 = vmatmul.mubr.bf16.gmra.mxu0 %v10191_v16  ;;  %9771 = vmatmul.mubr.bf16.gmra.mxu1 %v8655_v56  ;;  %v7275_v16 = vld [vmem:[#allocation2 + $0x24] sm:$0xe]  ;;  %v6824_v56 = vld [vmem:[#allocation2 + $0x3c] sm:$0xf]  ;;  %v6925_v40 = vshrl.u32 %v6825_v20, 16 }
 0x2c5   : > { %9847 = vmatpush3.bf16.msra.mxu0 %v10192_v8  ;;  %9802 = vmatprep.mubr.bf16.mxu0 %v10195_v51  ;;  %v8696_v8 = vrot.slane %v7272_v1, 9  ;;  %v8697_v19 = vrot.slane %v7275_v16, 9  ;;  %v6871_v52 = vrot.slane %v6870_v46, 4  ;;  %v7332_v51 = vrot.slane %v7277_v17, 5  ;;  %v7283_v16 = vld [vmem:[#allocation2 + $0x44] sm:$0x1] }
 0x2c6   : > { %9848 = vmatprep.subr.bf16.mxu0 %v10194_v33  ;;  %9819 = vmatpush3.bf16.msra.mxu1 %v10193_v5  ;;  %v7325_v5 = vrot.slane %v7274_v50, 5  ;;  %v6912_v53 = vshrl.u32 %v6824_v56, 16  ;;  %v6915_v13 = vshll.u32 %v6824_v56, 16  ;;  %v6895_v45 = vrot.slane %v6894_v27, 4  ;;  %v7282_v50 = vld [vmem:[#allocation2 + $0x40] sm:$0xf] }
 0x2c7   : > { %9820 = vmatprep.subr.bf16.mxu1 %v10196_v49  ;;  %v7323_v41 = vsel %vm10718_vm5, %v8696_v8, %v7322_v63  ;;  %9822 = vmatprep.mubr.bf16.mxu1 %v8680_v47  ;;  %v7330_v32 = vsel %vm10718_vm5, %v8697_v19, %v7329_v26  ;;  %v7333_v58 = vsel %vm10718_vm5, %v7331_v28, %v7332_v51  ;;  %v6923_v1 = vrot.slane %v6921_v21, 5  ;;  %v6828_v47 = vld [vmem:[#allocation2 + $0x4c] sm:$0xf] }
 0x2c8   : > { %v7326_v39 = vsel %vm10718_vm5, %v7324_v24, %v7325_v5  ;;  %v8705_v60 = vcombine.low %v7330_v32, %v7333_v58  ;;  %v6914_v18 = vrot.slane %v6912_v53, 4  ;;  %v6917_v31 = vrot.slane %v6915_v13, 5  ;;  %v7284_v13 = vld [vmem:[#allocation2 + $0x48] sm:$0xe]  ;;  %v7285_v21 = vld [vmem:[#allocation2 + $0x4c] sm:$0xf] }
 0x2c9   : > { %9849 = vmatpush3.bf16.msra.mxu0 %v10194_v33  ;;  %v6823_v33 = vld [vmem:[#allocation2 + $0x38] sm:$0x1]  ;;  %v6900_v44 = vsel %vm10647_vm2, %v6895_v45, %v6899_v62  ;;  %v7336_v8 = vrot.slane %v7279_v36, 5  ;;  %v7339_v63 = vrot.slane %v7280_v61, 5  ;;  %v6905_v46 = vrot.slane %v6904_v12, 4 }
 0x2ca   : > { %9850 = vmatprep.subr.bf16.mxu0 %v10198_v15  ;;  %9821 = vmatpush3.bf16.msra.mxu1 %v10196_v49  ;;  %v6876_v49 = vsel %vm10647_vm2, %v6871_v52, %v6875_v29  ;;  %v6907_v11 = vshll.u32 %v6823_v33, 16  ;;  %v6927_v34 = vrot.slane %v6925_v40, 4  ;;  %v7343_v24 = vrot.slane %v7282_v50, 5  ;;  %v6829_v52 = vld [vmem:[#allocation2 + $0x50] sm:$0x1] }
 0x2cb   : > { %v7337_v4 = vsel %vm10718_vm5, %v8698_v7, %v7336_v8  ;;  %v7346_v57 = vrot.slane %v7283_v16, 5  ;;  %v6945_v32 = vshll.u32 %v6828_v47, 16  ;;  %v6949_v20 = vshrl.u32 %v6828_v47, 16  ;;  %v7287_v40 = vld [vmem:[#allocation2 + $0x54] sm:$0xe] }
 0x2cc   : > { %9803 = vmatmul.mubr.bf16.gmra.mxu0 %v10197_v0  ;;  %v6886_v0 = vsel %vm10647_vm2, %v6881_v22, %v6885_v38  ;;  %v6909_v14 = vrot.slane %v6907_v11, 5  ;;  %v6918_v38 = vor.u32 %v6917_v31, %v6914_v18  ;;  %v6928_v48 = vor.u32 %v6927_v34, %v6923_v1  ;;  %v7286_v18 = vld [vmem:[#allocation2 + $0x50] sm:$0x1]  ;;  %v6833_v34 = vld [vmem:[#allocation2 + $0x60] sm:$0xf] }
 0x2cd   : > { %9851 = vmatpush3.bf16.msra.mxu0 %v10198_v15  ;;  %v8704_v15 = vcombine.low %v7323_v41, %v7326_v39  ;;  %v8681_v37 = vcombine.low %v6876_v49, %v6886_v0  ;;  %v7338_v41 = vrot.slane %v7336_v8, 4  ;;  %v6936_v22 = vshrl.u32 %v6827_v55, 16  ;;  %v7289_v8 = vld [vmem:[#allocation2 + $0x5c] sm:$0x1] }
 0x2ce   : > { %9852 = vmatprep.subr.bf16.mxu0 %v10199_v42  ;;  %v6919_v17 = vrot.slane %v6918_v38, 4  ;;  %v6910_v19 = vsel %vm10647_vm2, %v6905_v46, %v6909_v14  ;;  %v7344_v51 = vsel %vm10718_vm5, %v8699_v10, %v7343_v24  ;;  %v6929_v3 = vrot.slane %v6928_v48, 4 }
 0x2cf   : > { %9854 = vmatprep.mubr.bf16.mxu0 %v8704_v15  ;;  %9823 = vmatmul.mubr.bf16.vlgmr.msra.gmra.mxu1 %v8681_v37  ;;  %v8682_v26 = vcombine.low %v6900_v44, %v6910_v19  ;;  %v7340_v39 = vsel %vm10718_vm5, %v7338_v41, %v7339_v63  ;;  %v7345_v49 = vrot.slane %v7343_v24, 4  ;;  %v6938_v0 = vrot.slane %v6936_v22, 4 }
 0x2d0   : > { %v6924_v33 = vsel %vm10647_vm2, %v6919_v17, %v6923_v1  ;;  %v8706_v56 = vcombine.low %v7337_v4, %v7340_v39  ;;  %v6939_v15 = vshll.u32 %v6827_v55, 16  ;;  %v6955_v37 = vshll.u32 %v6829_v52, 16 }
 0x2d1   : > { %9853 = vmatpush3.bf16.msra.mxu0 %v10199_v42  ;;  %v6826_v42 = vld [vmem:[#allocation2 + $0x44] sm:$0x1]  ;;  %9826 = vmatprep.mubr.bf16.mxu1 %v8682_v26  ;;  %v7347_v6 = vsel %vm10718_vm5, %v7345_v49, %v7346_v57  ;;  %v6963_v11 = vshll.u32 %v6830_v2, 16  ;;  %v6947_v27 = vrot.slane %v6945_v32, 5  ;;  %v6951_v54 = vrot.slane %v6949_v20, 4 }
 0x2d2   : > { %v6931_v29 = vshll.u32 %v6826_v42, 16  ;;  %v8707_v53 = vcombine.low %v7344_v51, %v7347_v6  ;;  %v6941_v58 = vrot.slane %v6939_v15, 5  ;;  %v6957_v36 = vrot.slane %v6955_v37, 5  ;;  %v6834_v57 = vld [vmem:[#allocation2 + $0x64] sm:$0xf] }
 0x2d3   : > { %v6965_v62 = vrot.slane %v6963_v11, 5  ;;  %v6969_v14 = vshll.u32 %v6831_v25, 16  ;;  %v6973_v61 = vshrl.u32 %v6831_v25, 16  ;;  %v6979_v45 = vshll.u32 %v6832_v30, 16  ;;  %v6835_v26 = vld [vmem:[#allocation2 + $0x68] sm:$0x1] }
 0x2d4   : > { %9855 = vmatmul.mubr.bf16.vlgmr.msra.gmra.mxu0 %v8705_v60  ;;  %v6933_v5 = vrot.slane %v6931_v29, 5  ;;  %v6962_v60 = vrot.slane %v6960_v9, 4  ;;  %v6942_v23 = vor.u32 %v6941_v58, %v6938_v0  ;;  %v6952_v31 = vor.u32 %v6951_v54, %v6947_v27  ;;  %v7288_v29 = vld [vmem:[#allocation2 + $0x58] sm:$0xf]  ;;  %v6837_v20 = vld [vmem:[#allocation2 + $0x70] sm:$0xf] }
 0x2d5   : > { %9858 = vmatprep.mubr.bf16.mxu0 %v8706_v56  ;;  %v8700_v59 = vrot.slane %v7284_v13, 9  ;;  %v7350_v12 = vrot.slane %v7285_v21, 5  ;;  %v6971_v50 = vrot.slane %v6969_v14, 5  ;;  %v6975_v44 = vrot.slane %v6973_v61, 4  ;;  %v6836_v56 = vld [vmem:[#allocation2 + $0x6c] sm:$0xf] }
 0x2d6   : > { %v6934_v28 = vsel %vm10647_vm2, %v6929_v3, %v6933_v5  ;;  %v6966_v1 = vor.u32 %v6965_v62, %v6962_v60  ;;  %v6943_v7 = vrot.slane %v6942_v23, 4  ;;  %v6981_v38 = vrot.slane %v6979_v45, 5  ;;  %v6838_v30 = vld [vmem:[#allocation2 + $0x74] sm:$0x1]  ;;  %v7290_v9 = vld [vmem:[#allocation2 + $0x60] sm:$0xe] }
 0x2d7   : > { %v8683_v42 = vcombine.low %v6924_v33, %v6934_v28  ;;  %v6953_v63 = vrot.slane %v6952_v31, 4  ;;  %v7351_v55 = vsel %vm10718_vm5, %v8700_v59, %v7350_v12  ;;  %v7352_v46 = vrot.slane %v7350_v12, 4  ;;  %v7292_v60 = vld [vmem:[#allocation2 + $0x68] sm:$0x1]  ;;  %v7293_v45 = vld [vmem:[#allocation2 + $0x6c] sm:$0xe] }
 0x2d8   : > { %v6967_v16 = vrot.slane %v6966_v1, 4  ;;  %v6948_v5 = vsel %vm10647_vm2, %v6943_v7, %v6947_v27  ;;  %v6976_v10 = vor.u32 %v6975_v44, %v6971_v50  ;;  %v7353_v17 = vrot.slane %v7286_v18, 5  ;;  %v7291_v27 = vld [vmem:[#allocation2 + $0x64] sm:$0xf]  ;;  %v7294_v12 = vld [vmem:[#allocation2 + $0x70] sm:$0xf] }
 0x2d9   : > { %9827 = vmatmul.mubr.bf16.gmra.mxu1 %v8683_v42  ;;  %v8701_v4 = vrot.slane %v7287_v40, 9  ;;  %v6958_v41 = vsel %vm10647_vm2, %v6953_v63, %v6957_v36  ;;  %v7357_v19 = vrot.slane %v7288_v29, 5  ;;  %v7360_v48 = vrot.slane %v7289_v8, 5  ;;  %v7295_v44 = vld [vmem:[#allocation2 + $0x74] sm:$0x1] }
 0x2da   : > { %v6972_v24 = vsel %vm10647_vm2, %v6967_v16, %v6971_v50  ;;  %v8684_v47 = vcombine.low %v6948_v5, %v6958_v41  ;;  %v6977_v52 = vrot.slane %v6976_v10, 4  ;;  %v7354_v22 = vsel %vm10718_vm5, %v7352_v46, %v7353_v17 }
 0x2db   : > { %v6984_v33 = vshrl.u32 %v6833_v34, 16  ;;  %v8708_v39 = vcombine.low %v7351_v55, %v7354_v22  ;;  %v7358_v51 = vsel %vm10718_vm5, %v8701_v4, %v7357_v19  ;;  %v7359_v2 = vrot.slane %v7357_v19, 4 }
 0x2dc   : > { %9859 = vmatmul.mubr.bf16.gmra.mxu0 %v8707_v53  ;;  %v6987_v3 = vshll.u32 %v6833_v34, 16  ;;  %9830 = vmatprep.mubr.bf16.mxu1 %v8684_v47  ;;  %v6982_v49 = vsel %vm10647_vm2, %v6977_v52, %v6981_v38  ;;  %v6993_v15 = vshll.u32 %v6834_v57, 16  ;;  %v6997_v32 = vshrl.u32 %v6834_v57, 16 }
 0x2dd   : > { %v6986_v0 = vrot.slane %v6984_v33, 4  ;;  %v8685_v37 = vcombine.low %v6972_v24, %v6982_v49  ;;  %9862 = vmatprep.mubr.bf16.mxu0 %v8708_v39  ;;  %v7361_v28 = vsel %vm10718_vm5, %v7359_v2, %v7360_v48  ;;  %v7003_v25 = vshll.u32 %v6835_v26, 16 }
 0x2de   : > { %v6989_v6 = vrot.slane %v6987_v3, 5  ;;  %v8709_v11 = vcombine.low %v7358_v51, %v7361_v28  ;;  %v6995_v42 = vrot.slane %v6993_v15, 5  ;;  %v6999_v53 = vrot.slane %v6997_v32, 4 }
 0x2df   : > { %v7008_v58 = vshrl.u32 %v6836_v56, 16  ;;  %v7005_v21 = vrot.slane %v7003_v25, 5  ;;  %v7011_v54 = vshll.u32 %v6836_v56, 16  ;;  %v7017_v36 = vshll.u32 %v6837_v20, 16 }
 0x2e0   : > { %v6990_v13 = vor.u32 %v6989_v6, %v6986_v0  ;;  %v7000_v62 = vor.u32 %v6999_v53, %v6995_v42  ;;  %v7021_v14 = vshrl.u32 %v6837_v20, 16  ;;  %v7027_v61 = vshll.u32 %v6838_v30, 16 }
 0x2e1   : > { %9831 = vmatmul.mubr.bf16.gmra.mxu1 %v8685_v37  ;;  %v7010_v23 = vrot.slane %v7008_v58, 4  ;;  %v7013_v31 = vrot.slane %v7011_v54, 5  ;;  %v7019_v1 = vrot.slane %v7017_v36, 5  ;;  %v8702_v59 = vrot.slane %v7290_v9, 9 }
 0x2e2   : > { %v6991_v18 = vrot.slane %v6990_v13, 4  ;;  %v7001_v40 = vrot.slane %v7000_v62, 4  ;;  %v7023_v29 = vrot.slane %v7021_v14, 4  ;;  %v7029_v7 = vrot.slane %v7027_v61, 5 }
 0x2e3   : > { %v7364_v50 = vrot.slane %v7291_v27, 5  ;;  %v7014_v8 = vor.u32 %v7013_v31, %v7010_v23  ;;  %v7367_v63 = vrot.slane %v7292_v60, 5  ;;  %v8703_v16 = vrot.slane %v7293_v45, 9 }
 0x2e4   : > { %9863 = vmatmul.mubr.bf16.gmra.mxu0 %v8709_v11  ;;  %v6996_v38 = vsel %vm10647_vm2, %v6991_v18, %v6995_v42  ;;  %v7006_v55 = vsel %vm10647_vm2, %v7001_v40, %v7005_v21  ;;  %v7024_v46 = vor.u32 %v7023_v29, %v7019_v1  ;;  %v7371_v4 = vrot.slane %v7294_v12, 5 }
 0x2e5   : > { %v7365_v34 = vsel %vm10718_vm5, %v8702_v59, %v7364_v50  ;;  %v7366_v5 = vrot.slane %v7364_v50, 4  ;;  %v8686_v10 = vcombine.low %v6996_v38, %v7006_v55  ;;  %v7015_v17 = vrot.slane %v7014_v8, 4 }
 0x2e6   : > { %v7374_v41 = vrot.slane %v7295_v44, 5  ;;  %v7025_v24 = vrot.slane %v7024_v46, 4  ;;  %v7372_v47 = vsel %vm10718_vm5, %v8703_v16, %v7371_v4  ;;  %v7373_v52 = vrot.slane %v7371_v4, 4 }
 0x2e7   : > { %v7368_v19 = vsel %vm10718_vm5, %v7366_v5, %v7367_v63  ;;  %9834 = vmatprep.mubr.bf16.mxu1 %v8686_v10  ;;  %v7020_v48 = vsel %vm10647_vm2, %v7015_v17, %v7019_v1 }
 0x2e8   : > { %v8710_v57 = vcombine.low %v7365_v34, %v7368_v19  ;;  %v7030_v22 = vsel %vm10647_vm2, %v7025_v24, %v7029_v7  ;;  %v7375_v33 = vsel %vm10718_vm5, %v7373_v52, %v7374_v41 }
 0x2e9   : > { %v8687_v26 = vcombine.low %v7020_v48, %v7030_v22  ;;  %v8711_v39 = vcombine.low %v7372_v47, %v7375_v33 }
 0x2ea   : > { %9866 = vmatprep.mubr.bf16.mxu0 %v8710_v57 }
 0x2eb   : > { %9835 = vmatmul.mubr.bf16.gmra.mxu1 %v8687_v26 }
 0x2ec   : > { %9867 = vmatmul.mubr.bf16.gmra.mxu0 %v8711_v39 }
 0x30c   : > { %v9600_v51 = vpop.f32.mrf.mxu1 }
 0x30e   : > { %v4584_v2 = vpop.f32.mrf.mxu1 }
 0x310   : > { %v9601_v3 = vpop.f32.mrf.mxu1  ;;  %v9664_v20 = vpop.f32.mrf.mxu0 }
 0x312   : > { %v4587_v56 = vpop.f32.mrf.mxu1  ;;  %v5354_v28 = vpop.f32.mrf.mxu0 }
 0x314   : > { %v9604_v49 = vpop.f32.mrf.mxu1  ;;  %v9665_v30 = vpop.f32.mrf.mxu0 }
 0x316   : > { %v4600_v0 = vpop.f32.mrf.mxu1  ;;  %v5357_v11 = vpop.f32.mrf.mxu0 }
 0x318   : > { %v9605_v15 = vpop.f32.mrf.mxu1 }
 0x31a   : > { %v4603_v32 = vpop.f32.mrf.mxu1 }
 0x31c   : > { %v9608_v37 = vpop.f32.mrf.mxu1 }
 0x31e   : > { %v4616_v6 = vpop.f32.mrf.mxu1 }
 0x320   : > { %v9609_v25 = vpop.f32.mrf.mxu1 }
 0x322   : > { %v4619_v9 = vpop.f32.mrf.mxu1 }
 0x323   : > { %v9668_v58 = vpop.f32.mrf.mxu0 }
 0x324   : > { %v9612_v43 = vpop.f32.mrf.mxu1 }
 0x325   : > { %v5370_v13 = vpop.f32.mrf.mxu0 }
 0x326   : > { %v4632_v42 = vpop.f32.mrf.mxu1 }
 0x327   : > { %v9669_v60 = vpop.f32.mrf.mxu0 }
 0x328   : > { %v9613_v53 = vpop.f32.mrf.mxu1 }
 0x329   : > { %v5373_v31 = vpop.f32.mrf.mxu0 }
 0x32a   : > { %v4635_v27 = vpop.f32.mrf.mxu1 }
 0x32c   : > { %v9632_v21 = vpop.f32.mrf.mxu1 }
 0x32d   : > { %v5090_v54 = vadd.f32 %v9632_v21, %v9600_v51 }
 0x32e   : > { %v5009_v36 = vpop.f32.mrf.mxu1 }
 0x32f   : > { %v5088_v62 = vadd.f32 %v5009_v36, %v4584_v2  ;;  %v11674_v23 = vadd.f32 %v9664_v20, %v5090_v54 }
 0x330   : > { %v9633_v14 = vpop.f32.mrf.mxu1 }
 0x331   : > { %v5091_v61 = vadd.f32 %v9633_v14, %v9601_v3  ;;  %v11676_v45 = vadd.f32 %v5354_v28, %v5088_v62 }
 0x332   : > { %v5012_v18 = vpop.f32.mrf.mxu1 }
 0x333   : > { %v5089_v1 = vadd.f32 %v5012_v18, %v4587_v56  ;;  %v11678_v59 = vadd.f32 %v9665_v30, %v5091_v61  ;;  %v9672_v50 = vpop.f32.mrf.mxu0 }
 0x334   : > { %v9636_v12 = vpop.f32.mrf.mxu1 }
 0x335   : > { %v5094_v40 = vadd.f32 %v9636_v12, %v9604_v49  ;;  %v11680_v29 = vadd.f32 %v5357_v11, %v5089_v1  ;;  %v5386_v63 = vpop.f32.mrf.mxu0 }
 0x336   : > { %v5025_v7 = vpop.f32.mrf.mxu1 }
 0x337   : > { %v5092_v44 = vadd.f32 %v5025_v7, %v4600_v0  ;;  %v11682_v38 = vadd.f32 %v9668_v58, %v5094_v40  ;;  %v9673_v10 = vpop.f32.mrf.mxu0 }
 0x338   : > { %v9637_v8 = vpop.f32.mrf.mxu1 }
 0x339   : > { %v5095_v16 = vadd.f32 %v9637_v8, %v9605_v15  ;;  %v11684_v55 = vadd.f32 %v5370_v13, %v5092_v44  ;;  %v5389_v57 = vpop.f32.mrf.mxu0 }
 0x33a   : > { %v5028_v46 = vpop.f32.mrf.mxu1 }
 0x33b   : > { %v5093_v34 = vadd.f32 %v5028_v46, %v4603_v32  ;;  %v11686_v5 = vadd.f32 %v9669_v60, %v5095_v16  ;;  %v9676_v51 = vpop.f32.mrf.mxu0 }
 0x33c   : > { %v9640_v17 = vpop.f32.mrf.mxu1 }
 0x33d   : > { %v5098_v4 = vadd.f32 %v9640_v17, %v9608_v37  ;;  %v11688_v41 = vadd.f32 %v5373_v31, %v5093_v34  ;;  %v5402_v49 = vpop.f32.mrf.mxu0 }
 0x33e   : > { %v5041_v24 = vpop.f32.mrf.mxu1 }
 0x33f   : > { %v5096_v19 = vadd.f32 %v5041_v24, %v4616_v6  ;;  %v5443_v48 = vadd.f32 %v9672_v50, %v5098_v4  ;;  %v9677_v37 = vpop.f32.mrf.mxu0 }
 0x340   : > { %v9641_v47 = vpop.f32.mrf.mxu1 }
 0x341   : > { %v5099_v52 = vadd.f32 %v9641_v47, %v9609_v25  ;;  %v5441_v22 = vadd.f32 %v5386_v63, %v5096_v19  ;;  %v5405_v13 = vpop.f32.mrf.mxu0 }
 0x342   : > { %v5044_v26 = vpop.f32.mrf.mxu1 }
 0x343   : > { %v5097_v33 = vadd.f32 %v5044_v26, %v4619_v9  ;;  %v5444_v39 = vadd.f32 %v9673_v10, %v5099_v52 }
 0x344   : > { %v9644_v2 = vpop.f32.mrf.mxu1 }
 0x345   : > { %v5102_v3 = vadd.f32 %v9644_v2, %v9612_v43  ;;  %v5442_v56 = vadd.f32 %v5389_v57, %v5097_v33 }
 0x346   : > { %v5057_v0 = vpop.f32.mrf.mxu1 }
 0x347   : > { %v5100_v15 = vadd.f32 %v5057_v0, %v4632_v42  ;;  %v5447_v32 = vadd.f32 %v9676_v51, %v5102_v3 }
 0x348   : > { %v9645_v20 = vpop.f32.mrf.mxu1 }
 0x349   : > { %v5103_v28 = vadd.f32 %v9645_v20, %v9613_v53  ;;  %v5445_v6 = vadd.f32 %v5402_v49, %v5100_v15 }
 0x34a   : > { %v5060_v30 = vpop.f32.mrf.mxu1  ;;  %v11696_v43 = vpop.f32.mrf.mxu0 }
 0x34b   : > { %v5101_v11 = vadd.f32 %v5060_v30, %v4635_v27  ;;  %v5448_v58 = vadd.f32 %v9677_v37, %v5103_v28 }
 0x34c   : > { %v11690_v25 = vpop.f32.mrf.mxu1  ;;  %v11700_v42 = vpop.f32.mrf.mxu0 }
 0x34d   : > { %v5446_v9 = vadd.f32 %v5405_v13, %v5101_v11 }
 0x34e   : > { %v11692_v21 = vpop.f32.mrf.mxu1  ;;  %v11704_v53 = vpop.f32.mrf.mxu0 }
 0x350   : > { %v11694_v54 = vpop.f32.mrf.mxu1  ;;  %v11708_v62 = vpop.f32.mrf.mxu0 }
 0x352   : > { %v11698_v36 = vpop.f32.mrf.mxu1 }
 0x354   : > { %v11702_v60 = vpop.f32.mrf.mxu1 }
 0x356   : > { %v11706_v27 = vpop.f32.mrf.mxu1  ;;  %v11714_v18 = vpop.f32.mrf.mxu0 }
 0x358   : > { %v11710_v14 = vpop.f32.mrf.mxu1  ;;  %v11716_v1 = vpop.f32.mrf.mxu0 }
 0x35a   : > { %v11712_v61 = vpop.f32.mrf.mxu1  ;;  %v11718_v7 = vpop.f32.mrf.mxu0 }
 0x35c   : > { %v9704_v31 = vpop.f32.mrf.mxu1  ;;  %v11720_v63 = vpop.f32.mrf.mxu0 }
 0x35d   : > { %v5717_v12 = vadd.f32 %v9704_v31, %v5443_v48  ;;  %12172 = vst [vmem:[#allocation24_spill] sm:$0xff] %v11720_v63  ;;  %v8723_v31 = vld [vmem:[%s10636_s8 + $0x24] sm:$0xf] }
 0x35e   : > { %v5660_v40 = vpop.f32.mrf.mxu1 }
 0x35f   : > { %v5715_v50 = vadd.f32 %v5660_v40, %v5441_v22  ;;  %v9736_v17 = vpop.f32.mrf.mxu0  ;;  %v8720_v40 = vld [vmem:[%s10636_s8 + $0x18] sm:$0xf] }
 0x360   : > { %v9705_v44 = vpop.f32.mrf.mxu1  ;;  %v11722_v24 = vadd.f32 %v9736_v17, %v5717_v12  ;;  %v7645_v17 = vshll.u32 %v8720_v40, 16 }
 0x361   : > { %v5718_v8 = vadd.f32 %v9705_v44, %v5444_v39  ;;  %v6117_v57 = vpop.f32.mrf.mxu0 }
 0x362   : > { %v5663_v16 = vpop.f32.mrf.mxu1  ;;  %12173 = vst [vmem:[#allocation27_spill] sm:$0xff] %v11722_v24  ;;  %v11724_v48 = vadd.f32 %v6117_v57, %v5715_v50 }
 0x363   : > { %v5716_v46 = vadd.f32 %v5663_v16, %v5442_v56  ;;  %v9737_v26 = vpop.f32.mrf.mxu0  ;;  %v7669_v16 = vshll.u32 %v8723_v31, 16 }
 0x364   : > { %v9708_v34 = vpop.f32.mrf.mxu1  ;;  %12174 = vst [vmem:[#allocation28_spill] sm:$0xff] %v11724_v48  ;;  %v11726_v33 = vadd.f32 %v9737_v26, %v5718_v8  ;;  %v7666_v8 = vshrl.u32 %v8723_v31, 16 }
 0x365   : > { %v5721_v10 = vadd.f32 %v9708_v34, %v5447_v32  ;;  %v6120_v51 = vpop.f32.mrf.mxu0  ;;  %v8724_v34 = vld [vmem:[%s10636_s8 + $0x28] sm:$0xf] }
 0x366   : > { %v5676_v4 = vpop.f32.mrf.mxu1  ;;  %12175 = vst [vmem:[#allocation29_spill] sm:$0xff] %v11726_v33  ;;  %v11728_v2 = vadd.f32 %v6120_v51, %v5716_v46  ;;  %v7675_v26 = vshll.u32 %v8724_v34, 16 }
 0x367   : > { %v5719_v19 = vadd.f32 %v5676_v4, %v5445_v6 }
 0x368   : > { %v9709_v47 = vpop.f32.mrf.mxu1  ;;  %12176 = vst [vmem:[#allocation22_spill] sm:$0xff] %v11728_v2 }
 0x369   : > { %v5722_v52 = vadd.f32 %v9709_v47, %v5448_v58  ;;  %v7668_v47 = vrot.slane %v7666_v8, 4  ;;  %v8730_v8 = vld [vmem:[%s10636_s8 + $0x40] sm:$0xf] }
 0x36a   : > { %v5679_v22 = vpop.f32.mrf.mxu1 }
 0x36b   : > { %v5720_v39 = vadd.f32 %v5679_v22, %v5446_v9  ;;  %v7679_v22 = vshrl.u32 %v8724_v34, 16  ;;  %v8727_v34 = vld [vmem:[%s10636_s8 + $0x34] sm:$0xf] }
 0x36c   : > { %v9740_v3 = vpop.f32.mrf.mxu0  ;;  %v11730_v56 = vpop.f32.mrf.mxu1 }
 0x36d   : > { %v11732_v49 = vadd.f32 %v9740_v3, %v5721_v10  ;;  %v7642_v10 = vshrl.u32 %v8720_v40, 16  ;;  %v7681_v48 = vrot.slane %v7679_v22, 4 }
 0x36e   : > { %v6133_v0 = vpop.f32.mrf.mxu0  ;;  %v11734_v15 = vpop.f32.mrf.mxu1 }
 0x36f   : > { %12177 = vst [vmem:[#allocation25_spill] sm:$0xff] %v11732_v49  ;;  %v11736_v32 = vadd.f32 %v6133_v0, %v5719_v19  ;;  %v8721_v19 = vld [vmem:[%s10636_s8 + $0x1c] sm:$0xf]  ;;  %v7644_v3 = vrot.slane %v7642_v10, 4  ;;  %v7647_v0 = vrot.slane %v7645_v17, 5 }
 0x370   : > { %v9741_v20 = vpop.f32.mrf.mxu0  ;;  %v11738_v37 = vpop.f32.mrf.mxu1  ;;  %v8725_v17 = vld [vmem:[%s10636_s8 + $0x2c] sm:$0x1] }
 0x371   : > { %12178 = vst [vmem:[#allocation30_spill] sm:$0xff] %v11736_v32  ;;  %v11740_v28 = vadd.f32 %v9741_v20, %v5722_v52  ;;  %v7671_v52 = vrot.slane %v7669_v16, 5  ;;  %v7651_v20 = vshll.u32 %v8721_v19, 16  ;;  %v8726_v16 = vld [vmem:[%s10636_s8 + $0x30] sm:$0xf]  ;;  %v7677_v32 = vrot.slane %v7675_v26, 5 }
 0x372   : > { %v6136_v6 = vpop.f32.mrf.mxu0  ;;  %v11742_v30 = vpop.f32.mrf.mxu1  ;;  %v7648_v10 = vor.u32 %v7647_v0, %v7644_v3  ;;  %v7699_v26 = vshll.u32 %v8727_v34, 16  ;;  %v7685_v3 = vshll.u32 %v8725_v17, 16 }
 0x373   : > { %12179 = vst [vmem:[#allocation31_spill] sm:$0xff] %v11740_v28  ;;  %v11744_v11 = vadd.f32 %v6136_v6, %v5720_v39  ;;  %v7655_v6 = vshrl.u32 %v8721_v19, 16  ;;  %v7672_v28 = vor.u32 %v7671_v52, %v7668_v47  ;;  %v7653_v33 = vrot.slane %v7651_v20, 5 }
 0x374   : > { %v11746_v58 = vpop.f32.mrf.mxu0  ;;  %v11748_v13 = vpop.f32.mrf.mxu1  ;;  %v7727_v47 = vshrl.u32 %v8730_v8, 16  ;;  %v7693_v52 = vshll.u32 %v8726_v16, 16  ;;  %v7649_v22 = vrot.slane %v7648_v10, 4  ;;  %v7682_v20 = vor.u32 %v7681_v48, %v7677_v32 }
 0x375   : > { %12180 = vst [vmem:[#allocation32_spill] sm:$0xff] %v11744_v11  ;;  %v8729_v11 = vld [vmem:[%s10636_s8 + $0x3c] sm:$0xf]  ;;  %v7657_v19 = vrot.slane %v7655_v6, 4 }
 0x376   : > { %v11750_v9 = vpop.f32.mrf.mxu0  ;;  %v11753_v12 = vpop.f32.mrf.mxu1  ;;  %v7714_v24 = vshrl.u32 %v8729_v11, 16  ;;  %v7729_v17 = vrot.slane %v7727_v47, 4  ;;  %v5709_v47 = vadd.f32 %v11690_v25, %v11674_v23 }
 0x377   : > { %12181 = vst [vmem:[#allocation23_spill] sm:$0xff] %v11753_v12  ;;  %v7658_v6 = vor.u32 %v7657_v19, %v7653_v33  ;;  %v8731_v19 = vld [vmem:[%s10636_s8 + $0x44] sm:$0x1] }
 0x378   : > { %v11756_v50 = vpop.f32.mrf.mxu0  ;;  %v11758_v44 = vpop.f32.mrf.mxu1  ;;  %v7716_v63 = vrot.slane %v7714_v24, 4 }
 0x379   : > { %12182 = vst [vmem:[#allocation26_spill] sm:$0xff] %v11758_v44 }
 0x37a   : > { %v11760_v46 = vpop.f32.mrf.mxu0  ;;  %v11763_v4 = vpop.f32.mrf.mxu1 }
 0x37b   : > { %12183 = vst [vmem:[#allocation33_spill] sm:$0xff] %v11763_v4 }
 0x37c   : > { %v11766_v57 = vpop.f32.mrf.mxu0  ;;  %v11770_v51 = vpop.f32.mrf.mxu1 }
 0x37d   : > { %12184 = vst [vmem:[#allocation34_spill] sm:$0xff] %v11766_v57  ;;  %12186 = vst [vmem:[#allocation36_spill] sm:$0xff] %v11770_v51  ;;  %v8722_v51 = vld [vmem:[%s10636_s8 + $0x20] sm:$0x1] }
 0x37e   : > { %v11768_v39 = vpop.f32.mrf.mxu0  ;;  %v11774_v40 = vpop.f32.mrf.mxu1 }
 0x37f   : > { %12185 = vst [vmem:[#allocation35_spill] sm:$0xff] %v11768_v39  ;;  %12188 = vst [vmem:[#allocation20_spill] sm:$0xff] %v11774_v40  ;;  %v7723_v39 = vshll.u32 %v8730_v8, 16  ;;  %v7690_v40 = vshrl.u32 %v8726_v16, 16  ;;  %v8735_v16 = vld [vmem:[%s10636_s8 + $0x54] sm:$0xf] }
 0x380   : > { %v11772_v31 = vpop.f32.mrf.mxu0  ;;  %v11782_v2 = vpop.f32.mrf.mxu1 }
 0x381   : > { %12187 = vst [vmem:[#allocation21_spill] sm:$0xff] %v11772_v31  ;;  %12190 = vst [vmem:[#allocation38_spill] sm:$0xff] %v11782_v2  ;;  %v7717_v31 = vshll.u32 %v8729_v11, 16  ;;  %v7673_v2 = vrot.slane %v7672_v28, 4  ;;  %v7661_v11 = vshll.u32 %v8722_v51, 16  ;;  %v7692_v8 = vrot.slane %v7690_v40, 4 }
 0x382   : > { %v11780_v49 = vpop.f32.mrf.mxu0  ;;  %v11788_v57 = vpop.f32.mrf.mxu1  ;;  %v7695_v28 = vrot.slane %v7693_v52, 5  ;;  %v7687_v51 = vrot.slane %v7685_v3, 5  ;;  %v8728_v40 = vld [vmem:[%s10636_s8 + $0x38] sm:$0x1]  ;;  %v7765_v52 = vshll.u32 %v8735_v16, 16 }
 0x383   : > { %12189 = vst [vmem:[#allocation37_spill] sm:$0xff] %v11780_v49  ;;  %12192 = vst [vmem:[#allocation40_spill] sm:$0xff] %v11788_v57  ;;  %v7703_v49 = vshrl.u32 %v8727_v34, 16  ;;  %v11794_v57 = vrot.slane %v7723_v39, 5  ;;  %v11799_v34 = vrot.slane %v7699_v26, 5  ;;  %v7678_v48 = vsel %vm10647_vm2, %v7673_v2, %v7677_v32 }
 0x384   : > { %v11786_v4 = vpop.f32.mrf.mxu0  ;;  %v11792_v44 = vpop.f32.mrf.mxu1  ;;  %v7654_v39 = vsel %vm10647_vm2, %v7649_v22, %v7653_v33  ;;  %v7663_v26 = vrot.slane %v7661_v11, 5  ;;  %v7696_v32 = vor.u32 %v7695_v28, %v7692_v8  ;;  %v5707_v22 = vadd.f32 %v11692_v21, %v11676_v45 }
 0x385   : > { %12191 = vst [vmem:[#allocation39_spill] sm:$0xff] %v11786_v4  ;;  %12194 = vst [vmem:[#allocation42_spill] sm:$0xff] %v11792_v44  ;;  %v7719_v4 = vrot.slane %v7717_v31, 5  ;;  %v7705_v10 = vrot.slane %v7703_v49, 4  ;;  %v7683_v31 = vrot.slane %v7682_v20, 4  ;;  %v7659_v49 = vrot.slane %v7658_v6, 4 }
 0x386   : > { %v11790_v0 = vpop.f32.mrf.mxu0  ;;  %v11804_v44 = vpop.f32.mrf.mxu1  ;;  %v7730_v3 = vor.u32 %v7729_v17, %v11794_v57  ;;  %v11819_v20 = vunpack.c.l.bf16 %v7678_v48  ;;  %v7767_v11 = vrot.slane %v7765_v52, 5  ;;  %v5710_v8 = vadd.f32 %v11694_v54, %v11678_v59  ;;  %v8736_v17 = vld [vmem:[%s10636_s8 + $0x58] sm:$0xf] }
 0x387   : > { %12193 = vst [vmem:[#allocation41_spill] sm:$0xff] %v11790_v0  ;;  %12196 = vst [vmem:[#allocation44_spill] sm:$0xff] %v11804_v44  ;;  %v7720_v0 = vor.u32 %v7719_v4, %v7716_v63  ;;  %v7733_v44 = vshll.u32 %v8731_v19, 16  ;;  %v7706_v33 = vor.u32 %v7705_v10, %v11799_v34  ;;  %v11825_v63 = vunpack.c.l.bf16 %v7654_v39  ;;  %v8732_v10 = vld [vmem:[%s10636_s8 + $0x48] sm:$0xf] }
 0x388   : > { %v11797_v12 = vpop.f32.mrf.mxu0  ;;  %v11821_v23 = vpop.f32.mrf.mxu1  ;;  %v7688_v4 = vsel %vm10647_vm2, %v7683_v31, %v7687_v51  ;;  %v6166_v28 = vadd.f32 %v11696_v43, %v5709_v47  ;;  %v7664_v45 = vsel %vm10647_vm2, %v7659_v49, %v7663_v26  ;;  %v7697_v48 = vrot.slane %v7696_v32, 4 }
 0x389   : > { %12195 = vst [vmem:[#allocation43_spill] sm:$0xff] %v11797_v12  ;;  %v7762_v12 = vshrl.u32 %v8735_v16, 16  ;;  %v7709_v16 = vshll.u32 %v8728_v40, 16  ;;  %v7721_v21 = vrot.slane %v7720_v0, 4  ;;  %v7731_v19 = vrot.slane %v7730_v3, 4 }
 0x38a   : > { %v11806_v24 = vpop.f32.mrf.mxu0  ;;  %v7735_v39 = vrot.slane %v7733_v44, 5  ;;  %v7707_v40 = vrot.slane %v7706_v33, 4  ;;  %v5708_v51 = vadd.f32 %v11698_v36, %v11680_v29  ;;  %v6511_v31 = vadd.f32 %v11730_v56, %v6166_v28  ;;  %v11842_v43 = vpop.f32.mrf.mxu1 }
 0x38b   : > { %v7764_v6 = vrot.slane %v7762_v12, 4  ;;  %v6164_v12 = vadd.f32 %v11700_v42, %v5707_v22  ;;  %v7711_v54 = vrot.slane %v7709_v16, 5  ;;  %v7771_v0 = vshll.u32 %v8736_v17, 16 }
 0x38c   : > { %v11813_v2 = vpop.f32.mrf.mxu0  ;;  %v7738_v47 = vshrl.u32 %v8732_v10, 16  ;;  %v7741_v49 = vshll.u32 %v8732_v10, 16  ;;  %v6167_v44 = vadd.f32 %v11704_v53, %v5710_v8  ;;  %v11846_v32 = vunpack.c.l.bf16 %v7688_v4 }
 0x38d   : > { %v7768_v52 = vor.u32 %v7767_v11, %v7764_v6  ;;  %v6509_v26 = vadd.f32 %v11734_v15, %v6164_v12  ;;  %v11848_v29 = vunpack.c.l.bf16 %v7664_v45  ;;  %v7726_v36 = vsel %vm10647_vm2, %v7721_v21, %v11794_v57  ;;  %v8733_v57 = vld [vmem:[%s10636_s8 + $0x4c] sm:$0xf] }
 0x38e   : > { %v11823_v25 = vpop.f32.mrf.mxu0  ;;  %v7702_v42 = vsel %vm10647_vm2, %v7697_v48, %v11799_v34  ;;  %v7736_v56 = vsel %vm10647_vm2, %v7731_v19, %v7735_v39  ;;  %v7775_v3 = vshrl.u32 %v8736_v17, 16  ;;  %v6165_v53 = vadd.f32 %v11708_v62, %v5708_v51  ;;  %v8737_v19 = vld [vmem:[%s10636_s8 + $0x5c] sm:$0x1] }
 0x38f   : > { %v6512_v15 = vadd.f32 %v11738_v37, %v6167_v44  ;;  %v6785_v33 = vadd.f32 %v11746_v58, %v6511_v31  ;;  %v7712_v16 = vsel %vm10647_vm2, %v7707_v40, %v7711_v54  ;;  %v9824_v4 = vpop.f32.mrf.mxu1  ;;  %v7769_v6 = vrot.slane %v7768_v52, 4 }
 0x390   : > { %v11840_v59 = vpop.f32.mrf.mxu0  ;;  %v11866_v34 = vrot.slane %v7771_v0, 5  ;;  %v7740_v11 = vrot.slane %v7738_v47, 4  ;;  %v7743_v8 = vrot.slane %v7741_v49, 5  ;;  %v6510_v28 = vadd.f32 %v11742_v30, %v6165_v53 }
 0x391   : > { %v6783_v62 = vadd.f32 %v11750_v9, %v6509_v26  ;;  %v7242_v37 = vadd.f32 %v9824_v4, %v6785_v33  ;;  %v11870_v45 = vunpack.c.l.bf16 %v7726_v36  ;;  %v7161_v58 = vpop.f32.mrf.mxu1  ;;  %v11872_v21 = vunpack.c.l.bf16 %v7702_v42  ;;  %v11883_v9 = vld [vmem:[%s12097_s4] ss:$0 sm:$0xff] }
 0x392   : > { %v11861_v22 = vpop.f32.mrf.mxu0  ;;  %v11874_v17 = vunpack.c.l.bf16 %v7736_v56  ;;  %v7747_v10 = vshll.u32 %v8733_v57, 16  ;;  %v7751_v48 = vshrl.u32 %v8733_v57, 16  ;;  %v5713_v39 = vadd.f32 %v11702_v60, %v11682_v38 }
 0x393   : > { %v6786_v40 = vadd.f32 %v11756_v50, %v6512_v15  ;;  %v7240_v51 = vadd.f32 %v7161_v58, %v6783_v62  ;;  %v11885_v12 = vunpack.c.l.bf16 %v7712_v16  ;;  %v9825_v31 = vpop.f32.mrf.mxu1  ;;  %v7774_v52 = vsel %vm10647_vm2, %v7769_v6, %v11866_v34  ;;  %v8734_v6 = vld [vmem:[%s10636_s8 + $0x50] sm:$0x1] }
 0x394   : > { %v9856_v30 = vpop.f32.mrf.mxu0  ;;  %v7744_v0 = vor.u32 %v7743_v8, %v7740_v11  ;;  %v7777_v47 = vrot.slane %v7775_v3, 4  ;;  %v5711_v38 = vadd.f32 %v11706_v27, %v11684_v55  ;;  %v6784_v60 = vadd.f32 %v11760_v46, %v6510_v28  ;;  %v8741_v11 = vld [vmem:[%s10636_s8 + $0x6c] sm:$0xf] }
 0x395   : > { %v7587_v54 = vadd.f32 %v9856_v30, %v7242_v37  ;;  %v7243_v50 = vadd.f32 %v9825_v31, %v6786_v40  ;;  %v7781_v44 = vshll.u32 %v8737_v19, 16  ;;  %v7164_v36 = vpop.f32.mrf.mxu1  ;;  %v11894_v56 = vrot.slane %v7747_v10, 5  ;;  %v12199_v30 = vld [vmem:[#allocation26_spill] sm:$0xff] }
 0x396   : > { %v7506_v49 = vpop.f32.mrf.mxu0  ;;  %v7753_v53 = vrot.slane %v7751_v48, 4  ;;  %v5714_v3 = vadd.f32 %v11710_v14, %v11686_v5  ;;  %v6170_v15 = vadd.f32 %v11714_v18, %v5713_v39  ;;  %v7241_v55 = vadd.f32 %v7164_v36, %v6784_v60  ;;  %v12197_v48 = vld [vmem:[#allocation23_spill] sm:$0xff] }
 0x397   : > { %v7890_v26 = vadd.f32 %v11883_v9, %v7587_v54  ;;  %v7585_v42 = vadd.f32 %v7506_v49, %v7240_v51  ;;  %v11899_v46 = vunpack.c.l.bf16 %v7774_v52  ;;  %v7745_v57 = vrot.slane %v7744_v0, 4  ;;  %v12200_v54 = vld [vmem:[#allocation34_spill] sm:$0xff] }
 0x398   : > { %v9857_v27 = vpop.f32.mrf.mxu0  ;;  %v7778_v4 = vor.u32 %v7777_v47, %v11866_v34  ;;  %v5712_v8 = vadd.f32 %v11712_v61, %v11688_v41  ;;  %v6168_v28 = vadd.f32 %v11716_v1, %v5711_v38  ;;  %v6515_v5 = vadd.f32 %v11748_v13, %v6170_v15 }
 0x399   : > { %v7888_v33 = vadd.f32 %v11883_v9, %v7585_v42  ;;  %v7588_v16 = vadd.f32 %v9857_v27, %v7243_v50  ;;  %v7783_v18 = vrot.slane %v7781_v44, 5  ;;  %v7906_v62 = vadd.f32 %v7890_v26, %v11819_v20  ;;  %v12198_v20 = vld [vmem:[#allocation24_spill] sm:$0xff]  ;;  %v9828_v47 = vpop.f32.mrf.mxu1  ;;  %v12202_v44 = vld [vmem:[#allocation35_spill] sm:$0xff] }
 0x39a   : > { %v7509_v14 = vpop.f32.mrf.mxu0  ;;  %v7754_v10 = vor.u32 %v7753_v53, %v11894_v56  ;;  %v6171_v34 = vadd.f32 %v11718_v7, %v5714_v3  ;;  %v6513_v19 = vadd.f32 %v12197_v48, %v6168_v28  ;;  %v7757_v39 = vshll.u32 %v8734_v6, 16  ;;  %v11927_v42 = vld [vmem:[%s10636_s8 + $0x70] sm:$0xf] }
 0x39b   : > { %v7891_v37 = vadd.f32 %v11883_v9, %v7588_v16  ;;  %v7586_v58 = vadd.f32 %v7509_v14, %v7241_v55  ;;  %v7810_v40 = vshrl.u32 %v8741_v11, 16  ;;  %v7904_v41 = vadd.f32 %v7888_v33, %v11825_v63  ;;  %v7177_v55 = vpop.f32.mrf.mxu1  ;;  %v12203_v16 = vld [vmem:[#allocation21_spill] sm:$0xff] }
 0x39c   : > { %v7813_v13 = vshll.u32 %v8741_v11, 16  ;;  %v6169_v51 = vadd.f32 %v12198_v20, %v5712_v8  ;;  %v6516_v31 = vadd.f32 %v12199_v30, %v6171_v34  ;;  %v6789_v52 = vadd.f32 %v12200_v54, %v6515_v5  ;;  %v9860_v50 = vpop.f32.mrf.mxu0 }
 0x39d   : > { %v7907_v61 = vadd.f32 %v7891_v37, %v11846_v32  ;;  %v7889_v1 = vadd.f32 %v11883_v9, %v7586_v58  ;;  %v7779_v0 = vrot.slane %v7778_v4, 4  ;;  %v7922_v7 = vmax.f32 %v7906_v62, 0.0  ;;  %v12201_v32 = vld [vmem:[#allocation33_spill] sm:$0xff]  ;;  %v9829_v8 = vpop.f32.mrf.mxu1 }
 0x39e   : > { %v7750_v63 = vsel %vm10647_vm2, %v7745_v57, %v11894_v56  ;;  %v6514_v49 = vadd.f32 %v12201_v32, %v6169_v51  ;;  %v6787_v26 = vadd.f32 %v12202_v44, %v6513_v19  ;;  %v7246_v36 = vadd.f32 %v9828_v47, %v6789_v52  ;;  %v8738_v37 = vld [vmem:[%s10636_s8 + $0x60] sm:$0xf]  ;;  %v12207_v52 = vld [vmem:[#allocation28_spill] sm:$0xff] }
 0x39f   : > { %v7923_v38 = vmax.f32 %v7907_v61, 0.0  ;;  %v7905_v60 = vadd.f32 %v7889_v1, %v11848_v29  ;;  %v7812_v53 = vrot.slane %v7810_v40, 4  ;;  %v7920_v3 = vmax.f32 %v7904_v41, 0.0  ;;  %v7522_v29 = vpop.f32.mrf.mxu0  ;;  %v12204_v58 = vld [vmem:[#allocation37_spill] sm:$0xff]  ;;  %v12205_v41 = vld [vmem:[#allocation27_spill] sm:$0xff]  ;;  %v7180_v1 = vpop.f32.mrf.mxu1 }
 0x3a0   : > { %v7815_v33 = vrot.slane %v7813_v13, 5  ;;  %v6790_v4 = vadd.f32 %v12203_v16, %v6516_v31  ;;  %v7244_v6 = vadd.f32 %v7177_v55, %v6787_v26  ;;  %v7591_v56 = vadd.f32 %v9860_v50, %v7246_v36  ;;  %v8739_v31 = vld [vmem:[%s10636_s8 + $0x64] sm:$0xf]  ;;  %v12210_v36 = vld [vmem:[#allocation38_spill] sm:$0xff] }
 0x3a1   : > { %v8899_v15 = vpack.c.bf16 %v7923_v38, %v7922_v7  ;;  %v7921_v27 = vmax.f32 %v7905_v60, 0.0  ;;  %v7784_v57 = vsel %vm10647_vm2, %v7779_v0, %v7783_v18  ;;  %v9861_v28 = vpop.f32.mrf.mxu0  ;;  %v11933_v5 = vrot.slane %v7754_v10, 4  ;;  %v12206_v18 = vld [vmem:[#allocation36_spill] sm:$0xff]  ;;  %v12209_v26 = vld [vmem:[#allocation29_spill] sm:$0xff] }
 0x3a2   : > { %v11935_v14 = vrot.slane %v7757_v39, 5  ;;  %v7819_v62 = vshll.u32 %v11927_v42, 16  ;;  %v6788_v34 = vadd.f32 %v12204_v58, %v6514_v49  ;;  %v7247_v48 = vadd.f32 %v9829_v8, %v6790_v4  ;;  %v12208_v0 = vld [vmem:[#allocation20_spill] sm:$0xff]  ;;  %v12212_v4 = vld [vmem:[#allocation22_spill] sm:$0xff] }
 0x3a3   : > { %8945 = vst [vmem:[%s11412_s17 + $0x8] sm:$0xff] %v8899_v15   ;;  %v8894_v11 = vpack.c.bf16 %v7921_v27, %v7920_v3  ;;  %v7894_v19 = vadd.f32 %v11883_v9, %v7591_v56  ;;  %v7589_v40 = vadd.f32 %v7522_v29, %v7244_v6  ;;  %v6519_v61 = vadd.f32 %v12206_v18, %v12205_v41  ;;  %v7525_v47 = vpop.f32.mrf.mxu0  ;;  %v12211_v3 = vld [vmem:[#allocation39_spill] sm:$0xff]  ;;  %v12213_v6 = vld [vmem:[#allocation40_spill] sm:$0xff] }
 0x3a4   : > { %v11944_v13 = vunpack.c.l.bf16 %v7750_v63  ;;  %v11946_v10 = vunpack.c.l.bf16 %v7784_v57  ;;  %v7816_v39 = vor.u32 %v7815_v33, %v7812_v53  ;;  %v7245_v20 = vadd.f32 %v7180_v1, %v6788_v34  ;;  %v9832_v33 = vpop.f32.mrf.mxu1  ;;  %v12214_v57 = vld [vmem:[#allocation41_spill] sm:$0xff]  ;;  %v12215_v34 = vld [vmem:[#allocation43_spill] sm:$0xff] }
 0x3a5   : > { %8895 = vst [vmem:[%s11412_s17] sm:$0xff] %v8894_v11   ;;  %v7892_v51 = vadd.f32 %v11883_v9, %v7589_v40  ;;  %v7592_v30 = vadd.f32 %v9861_v28, %v7247_v48  ;;  %v7786_v54 = vshrl.u32 %v8738_v37, 16  ;;  %v6517_v7 = vadd.f32 %v12208_v0, %v12207_v52  ;;  %v9864_v28 = vpop.f32.mrf.mxu0  ;;  %v8743_v18 = vld [vmem:[%s10636_s8 + $0x74] sm:$0x1]  ;;  %v8740_v0 = vld [vmem:[%s10636_s8 + $0x68] sm:$0x1]  ;;  %s10280_s8 = scalar_lea.vmem %s12022_s7, 1024 }
 0x3a6   : > { %v7760_v38 = vsel %vm10647_vm2, %v11933_v5, %v11935_v14  ;;  %v7823_v60 = vshrl.u32 %v11927_v42, 16  ;;  %v7789_v50 = vshll.u32 %v8738_v37, 16  ;;  %v7910_v63 = vadd.f32 %v7894_v19, %v11870_v45  ;;  %v7193_v37 = vpop.f32.mrf.mxu1  ;;  %p10281_p9 = scmp.ne.s32.totalorder %s12022_s7, %s10280_s8  ;;  %p10288_p0 = scmp.lt.s32.totalorder %s10286_s1, %s10280_s8 }
 0x3a7   : > { %v7895_v32 = vadd.f32 %v11883_v9, %v7592_v30  ;;  %v7590_v49 = vadd.f32 %v7525_v47, %v7245_v20  ;;  %v11959_v44 = vrot.slane %v7819_v62, 5  ;;  %v6520_v53 = vadd.f32 %v12210_v36, %v12209_v26  ;;  %v7538_v40 = vpop.f32.mrf.mxu0  ;;  %v12217_v26 = vld [vmem:[#allocation42_spill] sm:$0xff] }
 0x3a8   : > { %v6793_v15 = vadd.f32 %v12211_v3, %v6519_v61  ;;  %v11964_v55 = vrot.slane %v7816_v39, 4  ;;  %v7795_v27 = vshll.u32 %v8739_v31, 16  ;;  %v7908_v29 = vadd.f32 %v7892_v51, %v11872_v21  ;;  %v9833_v20 = vpop.f32.mrf.mxu1  ;;  %v12218_v3 = vld [vmem:[#allocation30_spill] sm:$0xff]  ;;  %p10282_p11 = pnand %p10281_p9, %p10517_p7  ;;  %p10289_p2 = por %p10288_p0, %p10287_p12 }
 0x3a9   : > { %v7911_v42 = vadd.f32 %v7895_v32, %v11874_v17  ;;  %v7893_v45 = vadd.f32 %v11883_v9, %v7590_v49  ;;  %v7788_v16 = vrot.slane %v7786_v54, 4  ;;  %v6518_v56 = vadd.f32 %v12213_v6, %v12212_v4  ;;  %v9865_v52 = vpop.f32.mrf.mxu0  ;;  %v12216_v49 = vld [vmem:[#allocation25_spill] sm:$0xff] }
 0x3aa   : > { %v6791_v11 = vadd.f32 %v12214_v57, %v6517_v7  ;;  %v7250_v8 = vadd.f32 %v9832_v33, %v6793_v15  ;;  %v7791_v5 = vrot.slane %v7789_v50, 5  ;;  %v7926_v14 = vmax.f32 %v7910_v63, 0.0  ;;  %v7196_v47 = vpop.f32.mrf.mxu1  ;;  %v12219_v15 = vld [vmem:[#allocation44_spill] sm:$0xff]  ;;  %v12220_v57 = vld [vmem:[#allocation31_spill] sm:$0xff]  ;;  %p10283_p5 = pneg %p10282_p11 }
 0x3ab   : > { %v7927_v62 = vmax.f32 %v7911_v42, 0.0  ;;  %v7909_v21 = vadd.f32 %v7893_v45, %v11885_v12  ;;  %v7799_v58 = vshrl.u32 %v8739_v31, 16  ;;  %v6794_v17 = vadd.f32 %v12215_v34, %v6520_v53 }
 0x3ac   : > { %v7248_v48 = vadd.f32 %v7193_v37, %v6791_v11  ;;  %v7595_v19 = vadd.f32 %v9864_v28, %v7250_v8  ;;  %v11974_v41 = vrot.slane %v7795_v27, 5  ;;  %v7924_v61 = vmax.f32 %v7908_v29, 0.0  ;;  %v7541_v29 = vpop.f32.mrf.mxu0  ;;  %v12221_v37 = vld [vmem:[#allocation32_spill] sm:$0xff]  ;;  %p10290_p4 = pnand %p10289_p2, %p10283_p5 }
 0x3ad   : > { %v8909_v1 = vpack.c.bf16 %v7927_v62, %v7926_v14  ;;  %v7925_v39 = vmax.f32 %v7909_v21, 0.0  ;;  %v7825_v51 = vrot.slane %v7823_v60, 4  ;;  %v6792_v30 = vadd.f32 %v11806_v24, %v6518_v56 }
 0x3ae   : > { %v7251_v54 = vadd.f32 %v9833_v20, %v6794_v17  ;;  %v7898_v12 = vadd.f32 %v11883_v9, %v7595_v19  ;;  %v7593_v31 = vadd.f32 %v7538_v40, %v7248_v48  ;;  %v7792_v50 = vor.u32 %v7791_v5, %v7788_v16  ;;  %v9868_v19 = vpop.f32.mrf.mxu0 }
 0x3af   : > { %8947 = vst [vmem:[%s11412_s17 + $0x18] sm:$0xff] %v8909_v1   ;;  %v8904_v7 = vpack.c.bf16 %v7925_v39, %v7924_v61  ;;  %v7829_v63 = vshll.u32 %v8743_v18, 16  ;;  %v7801_v32 = vrot.slane %v7799_v58, 4  ;;  %v6523_v36 = vadd.f32 %v12217_v26, %v12216_v49 }
 0x3b0   : > { %v7249_v53 = vadd.f32 %v7196_v47, %v6792_v30  ;;  %v7896_v60 = vadd.f32 %v11883_v9, %v7593_v31  ;;  %v7596_v24 = vadd.f32 %v9865_v52, %v7251_v54  ;;  %v6521_v27 = vadd.f32 %v12219_v15, %v12218_v3  ;;  %v7554_v20 = vpop.f32.mrf.mxu0 }
 0x3b1   : > { %8946 = vst [vmem:[%s11412_s17 + $0x10] sm:$0xff] %v8904_v7   ;;  %v7858_v33 = vunpack.c.l.bf16 %v7760_v38  ;;  %v7826_v42 = vor.u32 %v7825_v51, %v11959_v44  ;;  %v7805_v45 = vshll.u32 %v8740_v0, 16  ;;  %v7914_v16 = vadd.f32 %v7898_v12, %v11899_v46 }
 0x3b2   : > { %v7899_v4 = vadd.f32 %v11883_v9, %v7596_v24  ;;  %v7594_v6 = vadd.f32 %v7541_v29, %v7249_v53  ;;  %v7822_v56 = vsel %vm10647_vm2, %v11964_v55, %v11959_v44  ;;  %v6524_v11 = vadd.f32 %v11821_v23, %v12220_v57  ;;  %v9836_v55 = vpop.f32.mrf.mxu1  ;;  %v9869_v0 = vpop.f32.mrf.mxu0 }
 0x3b3   : > { %v7912_v8 = vadd.f32 %v7896_v60, %v11944_v13  ;;  %v7793_v28 = vrot.slane %v7792_v50, 4  ;;  %v7802_v38 = vor.u32 %v7801_v32, %v11974_v41  ;;  %v6797_v5 = vadd.f32 %v11813_v2, %v6523_v36 }
 0x3b4   : > { %v7915_v46 = vadd.f32 %v7899_v4, %v11946_v10  ;;  %v7897_v14 = vadd.f32 %v11883_v9, %v7594_v6  ;;  %v7831_v62 = vrot.slane %v7829_v63, 5  ;;  %v6522_v21 = vadd.f32 %v11842_v43, %v12221_v37  ;;  %v7209_v40 = vpop.f32.mrf.mxu1  ;;  %v7557_v26 = vpop.f32.mrf.mxu0 }
 0x3b5   : > { %v6795_v44 = vadd.f32 %v11823_v25, %v6521_v27  ;;  %v7827_v58 = vrot.slane %v7826_v42, 4  ;;  %v7807_v23 = vrot.slane %v7805_v45, 5  ;;  %v7930_v34 = vmax.f32 %v7914_v16, 0.0 }
 0x3b6   : > { %v7254_v13 = vadd.f32 %v9836_v55, %v6797_v5  ;;  %v7931_v17 = vmax.f32 %v7915_v46, 0.0  ;;  %v7913_v48 = vadd.f32 %v7897_v14, %v7858_v33  ;;  %v6798_v2 = vadd.f32 %v11840_v59, %v6524_v11  ;;  %v9837_v30 = vpop.f32.mrf.mxu1 }
 0x3b7   : > { %v7928_v10 = vmax.f32 %v7912_v8, 0.0  ;;  %v7798_v18 = vsel %vm10647_vm2, %v7793_v28, %v11974_v41  ;;  %v7803_v43 = vrot.slane %v7802_v38, 4  ;;  %v7252_v25 = vadd.f32 %v7209_v40, %v6795_v44 }
 0x3b8   : > { %v8919_v61 = vpack.c.bf16 %v7931_v17, %v7930_v34  ;;  %v7929_v1 = vmax.f32 %v7913_v48, 0.0  ;;  %v7599_v39 = vadd.f32 %v9868_v19, %v7254_v13  ;;  %v6796_v51 = vadd.f32 %v11861_v22, %v6522_v21  ;;  %v7212_v7 = vpop.f32.mrf.mxu1 }
 0x3b9   : > { %v7863_v54 = vunpack.c.l.bf16 %v7822_v56  ;;  %v7832_v59 = vsel %vm10647_vm2, %v7827_v58, %v7831_v62  ;;  %v7255_v31 = vadd.f32 %v9837_v30, %v6798_v2  ;;  %v7597_v52 = vadd.f32 %v7554_v20, %v7252_v25 }
 0x3ba   : > { %8949 = vst [vmem:[%s11412_s17 + $0x28] sm:$0xff] %v8919_v61   ;;  %v8914_v12 = vpack.c.bf16 %v7929_v1, %v7928_v10  ;;  %v7902_v41 = vadd.f32 %v11883_v9, %v7599_v39  ;;  %v7861_v47 = vunpack.c.l.bf16 %v7798_v18  ;;  %v7808_v50 = vsel %vm10647_vm2, %v7803_v43, %v7807_v23 }
 0x3bb   : > { %v7253_v22 = vadd.f32 %v7212_v7, %v6796_v51  ;;  %v7900_v63 = vadd.f32 %v11883_v9, %v7597_v52  ;;  %v7600_v32 = vadd.f32 %v9869_v0, %v7255_v31  ;;  %v7864_v49 = vunpack.c.l.bf16 %v7832_v59 }
 0x3bc   : > { %8948 = vst [vmem:[%s11412_s17 + $0x20] sm:$0xff] %v8914_v12   ;;  %v7918_v36 = vadd.f32 %v7902_v41, %v7863_v54  ;;  %v7862_v24 = vunpack.c.l.bf16 %v7808_v50 }
 0x3bd   : > { %v7903_v53 = vadd.f32 %v11883_v9, %v7600_v32  ;;  %v7598_v60 = vadd.f32 %v7557_v26, %v7253_v22  ;;  %v7916_v3 = vadd.f32 %v7900_v63, %v7861_v47 }
 0x3be   : > { %v7934_v27 = vmax.f32 %v7918_v36, 0.0 }
 0x3bf   : > { %v7919_v35 = vadd.f32 %v7903_v53, %v7864_v49  ;;  %v7901_v15 = vadd.f32 %v11883_v9, %v7598_v60  ;;  %v7932_v42 = vmax.f32 %v7916_v3, 0.0 }
 0x3c1   : > { %v7935_v29 = vmax.f32 %v7919_v35, 0.0  ;;  %v7917_v33 = vadd.f32 %v7901_v15, %v7862_v24 }
 0x3c3   : > { %v8929_v45 = vpack.c.bf16 %v7935_v29, %v7934_v27  ;;  %v7933_v16 = vmax.f32 %v7917_v33, 0.0 }
 0x3c5   : > { %8951 = vst [vmem:[%s11412_s17 + $0x38] sm:$0xff] %v8929_v45   ;;  %v8924_v4 = vpack.c.bf16 %v7933_v16, %v7932_v42 }
 0x3c7   : > { %8950 = vst [vmem:[%s11412_s17 + $0x30] sm:$0xff] %v8924_v4  }
 0x3c8   : > { %10293 = shalt.err (!%p10290_p4)
}
 0x3c9   : > { %s10294_s2 = scalar_lea.hbm %s12028_s25, 1024  ;;  %s10298_s10 = scalar_lea.hbm %s12224_s15, 4096 }
 0x3ca   : > { %p10295_p13 = scmp.ne.s32.totalorder %s12028_s25, %s10294_s2  ;;  %p10299_p6 = scmp.lt.s32.totalorder %s12028_s25, %s12224_s15 }
 0x3cb   : > { %p10300_p1 = scmp.lt.s32.totalorder %s10298_s10, %s10294_s2 }
 0x3cc   : > { %p10296_p8 = pnand %p10295_p13, %p10517_p7 }
 0x3cd   : > { %p10301_p3 = por %p10300_p1, %p10299_p6 }
 0x3ce   : > { %p10297_p10 = pneg %p10296_p8 }
 0x3d0   : > { %p10302_p9 = pnand %p10301_p3, %p10297_p10 }
 0x3d2   : > { %10305 = shalt.err (!%p10302_p9)
}
 0x3d3   : > { %s10414_s5 = smov 64   ;;  %s10415_s24 = smov 4  }
 0x3d4   : > { %9883 = dma.vmem_to_hbm [thread:$0]  (%p10517_p7), %s12022_s7, 1024, %s12028_s25, %s12033_s6, %s10414_s5, %s10414_s5, %s10415_s24  }
 0x3d5 PF: > { %s12225_s12 = sld [smem:[#allocation14_spill]]  ;;  %p9905_p11 = scmp.ge.s32.totalorder %s10404_s28, 2 }
 0x3d6   : > { %s12226_s16 = sld [smem:[#allocation18_spill]] }
 0x3db   : > { %s8048_s8 = sand.u32 1, %s12225_s12  }
 0x3dc   : > { %p12227_p5 = scmp.ne.s32.totalorder %s12226_s16, 0  ;;  %s8049_s9 = scalar_lea.sflag [#allocation6], %s8048_s8 }
 0x3de   : > { %p9897_p12 = pnand %p9905_p11, %p12227_p5 }
 0x3e0   : > { %p9898_p0 = pneg %p9897_p12 }
 0x3e2   : > { %10359 = dma.done.wait (%p9898_p0), %s8049_s9, 1024  }
 0x3e3   : > { %10361 = vsyncadd (%p9898_p0), %s8049_s9, 4294966272  ;;  %s22_s28 = sadd.s32 1, %s10404_s28   ;;  %s12228_s11 = smov %s10596_s18 }
 0x3e4   : > { %p19_p2 = scmp.ge.s32.totalorder %s22_s28, 6   ;;  %s12229_s24 = sld [smem:[#allocation16_spill]] }
 0x3e5   : > { %s12230_s26 = sld [smem:[#allocation19_spill]]  ;;  %s12231_s18 = smov %s10368_s19 }
 0x3e6   : > { %s12232_s19 = smov %s10372_s20  ;;  %s12233_s20 = smov %s12228_s11 }
 0x3e7   : > { %s12234_s21 = smov %s10380_s22  ;;  %s12235_s22 = smov %s10384_s23 }
 0x3e8   : > { %s12236_s23 = smov %s10591_s13  ;;  %s12237_s25 = smov %s10400_s27 }
 0x3e9   : > { %s12238_s27 = smov %s12244_s14  ;;  %21 = sbr.rel (!%p19_p2) target bundleno = 14 (0xe), region = 107 }
 0x3ee   :  { %8054 = vsyncpa [#allocation5], 1 }
 0x3ef   :  { %8056 = vsyncpa [#allocation5 + $0x1], 1 }
 0x3f0   :  { %8057 = vsyncpa [#allocation8], 1 }
 0x3f1   :  { %8058 = vsyncpa [#allocation6], 1 }
 0x3f2   :  { %8060 = vsyncpa [#allocation6 + $0x1], 1 }

</bundles_post_ra>
